<compile_context>
chip_gen: v7x
topology: tpu7x:2x2x1
jax: 0.10.0
libtpu: 0.0.40
codegen_flags: <defaults>
</compile_context>

<pallas_src>
import jax
import jax.numpy as jnp
from jax import lax
from jax.experimental import pallas as pl
from jax.experimental.pallas import tpu as pltpu

HIDDEN = 128
IN_FEAT = 162
X_FEAT = 484
D = 512

_VMEM_SPEC = pl.BlockSpec(memory_space=pltpu.MemorySpace.VMEM)
_HBM_SPEC = pl.BlockSpec(memory_space=pl.ANY)


# --------------------------- fused forward kernel ----------------------------
def _make_fused_kernel(T, Bp):
    """Fused LSTM(162->128) + MLP(612->512x5->1) kernel, closed over static T, Bp."""

    def kernel(z_ref, x_ref,
               wih_ref, whh_ref, bl_ref,
               w1h_ref, b1_ref,
               w1x_hbm, w2_hbm, w3_hbm, w4_hbm, w5_hbm,
               b2_ref, b3_ref, b4_ref, b5_ref,
               w6_ref, b6_ref,
               out_ref,
               gx_ref, w1x_buf, w2_buf, w3_buf, w4_buf, w5_buf, sems):
        # ---- start DMAs of the late-use head weights; they overlap with the
        #      input projection + serial recurrence below ----
        head_copies = []
        for i, (hbm, buf) in enumerate(((w1x_hbm, w1x_buf), (w2_hbm, w2_buf),
                                        (w3_hbm, w3_buf), (w4_hbm, w4_buf),
                                        (w5_hbm, w5_buf))):
            cp = pltpu.make_async_copy(hbm, buf, sems.at[i])
            cp.start()
            head_copies.append(cp)

        # ---- hoisted input projection + bias: one big matmul, done once,
        #      off the serial critical path of the recurrence ----
        # z_ref is (T*Bp, 162), time-major rows; gx_ref is (T*Bp, 4*HIDDEN) f32.
        gx_ref[...] = (
            jnp.dot(z_ref[...].astype(jnp.bfloat16), wih_ref[...],
                    preferred_element_type=jnp.float32)
            + bl_ref[...]
        )

        # ---- serial recurrence: f32 h/c/whh to avoid compounding bf16 error;
        #      fori_loop(unroll=True) bounds live ranges (whh re-read per step) --
        # TODO(synk): hold W_hh in MXU weight registers across the recurrence
        # via pltpu.matmul_push_rhs / matmul_acc_lhs / matmul_pop once the
        # 128x512 staged-RHS pattern is validated across v5e/v6e/v7x.
        def step(t, hc):
            h, c = hc
            row = pl.multiple_of(t * Bp, 8)
            gates = gx_ref[pl.ds(row, Bp), :] + jnp.dot(
                h, whh_ref[...], preferred_element_type=jnp.float32)
            i_g = jax.nn.sigmoid(gates[:, 0 * HIDDEN:1 * HIDDEN])
            f_g = jax.nn.sigmoid(gates[:, 1 * HIDDEN:2 * HIDDEN])
            g_g = jnp.tanh(gates[:, 2 * HIDDEN:3 * HIDDEN])
            o_g = jax.nn.sigmoid(gates[:, 3 * HIDDEN:4 * HIDDEN])
            c_new = f_g * c + i_g * g_g
            h_new = o_g * jnp.tanh(c_new)
            return h_new, c_new

        h0 = jnp.zeros((Bp, HIDDEN), jnp.float32)
        c0 = jnp.zeros((Bp, HIDDEN), jnp.float32)
        h, _ = lax.fori_loop(0, T, step, (h0, c0), unroll=True)

        # ---- MLP head; dense1 split as h @ W1h + x @ W1x (no concat).
        #      Wait on each prefetched weight right before its matmul. ----
        hb = h.astype(jnp.bfloat16)
        xb = x_ref[...].astype(jnp.bfloat16)
        head_copies[0].wait()                                  # w1x resident
        a = (jnp.dot(hb, w1h_ref[...], preferred_element_type=jnp.float32)
             + jnp.dot(xb, w1x_buf[...], preferred_element_type=jnp.float32)
             + b1_ref[...])
        a = jnp.maximum(a, 0.0)
        for cp, w_buf, b_ref in ((head_copies[1], w2_buf, b2_ref),
                                 (head_copies[2], w3_buf, b3_ref),
                                 (head_copies[3], w4_buf, b4_ref),
                                 (head_copies[4], w5_buf, b5_ref)):
            cp.wait()
            a = jnp.dot(a.astype(jnp.bfloat16), w_buf[...],
                        preferred_element_type=jnp.float32) + b_ref[...]
            a = jnp.maximum(a, 0.0)

        # ---- final 512 -> 1 layer as VPU multiply + lane reduce (no N=1 MXU) ----
        w6_row = w6_ref[...].astype(jnp.float32)               # (1, 512)
        out_ref[...] = jnp.sum(a * w6_row, axis=-1, keepdims=True) + b6_ref[...]

    return kernel


def farmer_lstm_values(z, x, params):
    """z: [B, T, 162] f32, x: [B, 484] f32 -> values [B, 1] f32 (one pallas_call)."""
    (wih, whh, bl,
     w1h, w1x, b1, w2, b2, w3, b3, w4, b4, w5, b5, w6, b6) = params

    B, T, F = z.shape
    Bp = max(8, ((B + 7) // 8) * 8)          # pad batch to a sublane multiple
    pad = Bp - B
    z_p = jnp.pad(z, ((0, pad), (0, 0), (0, 0)))
    x_p = jnp.pad(x, ((0, pad), (0, 0)))
    # time-major rows so step t owns the aligned row block [t*Bp, (t+1)*Bp)
    z2d = jnp.transpose(z_p, (1, 0, 2)).reshape(T * Bp, F)

    # Advisory cost hint for the XLA scheduler around the custom call.
    flops = 2 * (T * Bp * IN_FEAT * 4 * HIDDEN      # hoisted input projection
                 + T * Bp * HIDDEN * 4 * HIDDEN     # recurrence h @ W_hh
                 + Bp * (HIDDEN + X_FEAT) * D       # dense1 (split)
                 + 4 * Bp * D * D                   # dense2..dense5
                 + Bp * D)                          # dense6 reduce
    transcendentals = T * Bp * 5 * HIDDEN           # 3 sigmoid + 2 tanh per step
    bytes_accessed = int(
        z2d.size * 4 + x_p.size * 4 + Bp * 4
        + sum(int(p.size) * p.dtype.itemsize for p in params))

    in_specs = [_VMEM_SPEC] * 7 + [_HBM_SPEC] * 5 + [_VMEM_SPEC] * 6

    values_p = pl.pallas_call(
        _make_fused_kernel(T, Bp),
        out_shape=jax.ShapeDtypeStruct((Bp, 1), jnp.float32),
        in_specs=in_specs,
        out_specs=_VMEM_SPEC,
        scratch_shapes=[
            pltpu.VMEM((T * Bp, 4 * HIDDEN), jnp.float32),   # hoisted gate proj
            pltpu.VMEM((X_FEAT, D), jnp.bfloat16),           # w1x prefetch buf
            pltpu.VMEM((D, D), jnp.bfloat16),                # w2
            pltpu.VMEM((D, D), jnp.bfloat16),                # w3
            pltpu.VMEM((D, D), jnp.bfloat16),                # w4
            pltpu.VMEM((D, D), jnp.bfloat16),                # w5
            pltpu.SemaphoreType.DMA((5,)),
        ],
        cost_estimate=pl.CostEstimate(
            flops=int(flops),
            transcendentals=int(transcendentals),
            bytes_accessed=bytes_accessed),
    )(z2d, x_p,
      wih, whh, bl,
      w1h, b1,
      w1x, w2, w3, w4, w5,
      b2, b3, b4, b5,
      w6, b6)
    return values_p[:B]


@jax.jit
def farmer_lstm_forward(z, x, params):
    values = farmer_lstm_values(z, x, params)
    # TODO(synk): epsilon-greedy exploration (np.random host-side in the original)
    # is left to the caller; only the deterministic argmax action is computed here.
    action = jnp.argmax(values, axis=0)[0]
    return values, action


# ------------------------------- params ---------------------------------------
def init_params(key):
    ks = jax.random.split(key, 17)
    scale = 0.05

    def u(k, shape):
        return jax.random.uniform(k, shape, jnp.float32, -scale, scale)

    # LSTM weights, stored transposed [in, out].  W_hh stays f32 (serial path
    # precision); the off-critical-path matmul weights are bf16.
    wih = u(ks[0], (IN_FEAT, 4 * HIDDEN)).astype(jnp.bfloat16)
    whh = u(ks[1], (HIDDEN, 4 * HIDDEN))                           # f32
    bl = u(ks[2], (1, 4 * HIDDEN)) + u(ks[3], (1, 4 * HIDDEN))     # b_ih + b_hh, f32

    # dense1 split into lstm-part (128->512) and x-part (484->512).
    w1h = u(ks[4], (HIDDEN, D)).astype(jnp.bfloat16)
    w1x = u(ks[5], (X_FEAT, D)).astype(jnp.bfloat16)
    b1 = u(ks[6], (1, D))
    w2 = u(ks[7], (D, D)).astype(jnp.bfloat16)
    b2 = u(ks[8], (1, D))
    w3 = u(ks[9], (D, D)).astype(jnp.bfloat16)
    b3 = u(ks[10], (1, D))
    w4 = u(ks[11], (D, D)).astype(jnp.bfloat16)
    b4 = u(ks[12], (1, D))
    w5 = u(ks[13], (D, D)).astype(jnp.bfloat16)
    b5 = u(ks[14], (1, D))
    w6 = u(ks[15], (1, D)).astype(jnp.bfloat16)     # kept as a row for the VPU reduce
    b6 = u(ks[16], (1, 1))
    return (wih, whh, bl, w1h, w1x, b1, w2, b2, w3, b3, w4, b4, w5, b5, w6, b6)


# ---------------------------- pure-JAX reference -------------------------------
def reference_values(z, x, params):
    (wih, whh, bl,
     w1h, w1x, b1, w2, b2, w3, b3, w4, b4, w5, b5, w6, b6) = params
    B, T, _ = z.shape
    h = jnp.zeros((B, HIDDEN), jnp.float32)
    c = jnp.zeros((B, HIDDEN), jnp.float32)
    gx = jnp.einsum('btf,fg->btg', z.astype(jnp.bfloat16), wih,
                    preferred_element_type=jnp.float32) + bl
    for t in range(T):
        gates = gx[:, t, :] + jnp.dot(h, whh, preferred_element_type=jnp.float32)
        i_g = jax.nn.sigmoid(gates[:, 0 * HIDDEN:1 * HIDDEN])
        f_g = jax.nn.sigmoid(gates[:, 1 * HIDDEN:2 * HIDDEN])
        g_g = jnp.tanh(gates[:, 2 * HIDDEN:3 * HIDDEN])
        o_g = jax.nn.sigmoid(gates[:, 3 * HIDDEN:4 * HIDDEN])
        c = f_g * c + i_g * g_g
        h = o_g * jnp.tanh(c)
    a = (jnp.dot(h.astype(jnp.bfloat16), w1h, preferred_element_type=jnp.float32)
         + jnp.dot(x.astype(jnp.bfloat16), w1x, preferred_element_type=jnp.float32)
         + b1)
    a = jnp.maximum(a, 0.0)
    for w, b in ((w2, b2), (w3, b3), (w4, b4), (w5, b5)):
        a = jnp.maximum(jnp.dot(a.astype(jnp.bfloat16), w,
                                preferred_element_type=jnp.float32) + b, 0.0)
    return jnp.sum(a * w6.astype(jnp.float32), axis=-1, keepdims=True) + b6


if __name__ == "__main__":
    key = jax.random.PRNGKey(0)
    k_z, k_x, k_p = jax.random.split(key, 3)

    B, T = 4, 8
    z = jax.random.normal(k_z, (B, T, IN_FEAT), jnp.float32)
    x = jax.random.normal(k_x, (B, X_FEAT), jnp.float32)
    params = init_params(k_p)

    values, action = farmer_lstm_forward(z, x, params)
    jax.block_until_ready(values)
    jax.block_until_ready(action)

    assert values.shape == (B, 1) and values.dtype == jnp.float32
    assert action.shape == ()

    ref = reference_values(z, x, params)
    assert jnp.allclose(values, ref, rtol=1e-2, atol=1e-2), (values, ref)

    print("KERNEL_OK")
</pallas_src>

<mosaic_0001>
module attributes {stable_mosaic.version = 11 : i64} {
  func.func @kernel(%arg0: memref<64x162xf32, #tpu.memory_space<vmem>>, %arg1: memref<8x484xf32, #tpu.memory_space<vmem>>, %arg2: memref<162x512xbf16, #tpu.memory_space<vmem>>, %arg3: memref<128x512xf32, #tpu.memory_space<vmem>>, %arg4: memref<1x512xf32, #tpu.memory_space<vmem>>, %arg5: memref<128x512xbf16, #tpu.memory_space<vmem>>, %arg6: memref<1x512xf32, #tpu.memory_space<vmem>>, %arg7: memref<484x512xbf16, #tpu.memory_space<any>>, %arg8: memref<512x512xbf16, #tpu.memory_space<any>>, %arg9: memref<512x512xbf16, #tpu.memory_space<any>>, %arg10: memref<512x512xbf16, #tpu.memory_space<any>>, %arg11: memref<512x512xbf16, #tpu.memory_space<any>>, %arg12: memref<1x512xf32, #tpu.memory_space<vmem>>, %arg13: memref<1x512xf32, #tpu.memory_space<vmem>>, %arg14: memref<1x512xf32, #tpu.memory_space<vmem>>, %arg15: memref<1x512xf32, #tpu.memory_space<vmem>>, %arg16: memref<1x512xbf16, #tpu.memory_space<vmem>>, %arg17: memref<1x1xf32, #tpu.memory_space<vmem>>, %arg18: memref<8x1xf32, #tpu.memory_space<vmem>>, %arg19: memref<64x512xf32, #tpu.memory_space<vmem>>, %arg20: memref<484x512xbf16, #tpu.memory_space<vmem>>, %arg21: memref<512x512xbf16, #tpu.memory_space<vmem>>, %arg22: memref<512x512xbf16, #tpu.memory_space<vmem>>, %arg23: memref<512x512xbf16, #tpu.memory_space<vmem>>, %arg24: memref<512x512xbf16, #tpu.memory_space<vmem>>, %arg25: memref<5x!tpu.dma_semaphore, #tpu.memory_space<semaphore_mem>>) attributes {dimension_semantics = [], scalar_prefetch = 0 : i64, scratch_operands = 7 : i64, tpu.core_type = #tpu.core_type<tc>} {
    %c0_i32 = arith.constant 0 : i32
    %0 = tpu.memref_slice %arg25[%c0_i32] : memref<5x!tpu.dma_semaphore, #tpu.memory_space<semaphore_mem>> -> memref<1x!tpu.dma_semaphore, #tpu.memory_space<semaphore_mem>>
    %1 = tpu.memref_squeeze %0 : memref<1x!tpu.dma_semaphore, #tpu.memory_space<semaphore_mem>> -> memref<!tpu.dma_semaphore, #tpu.memory_space<semaphore_mem>>
    tpu.enqueue_dma source(%arg7 : memref<484x512xbf16, #tpu.memory_space<any>>) target(%arg20 : memref<484x512xbf16, #tpu.memory_space<vmem>>) target_semaphore(%1 : memref<!tpu.dma_semaphore, #tpu.memory_space<semaphore_mem>>)
    %c1_i32 = arith.constant 1 : i32
    %2 = tpu.memref_slice %arg25[%c1_i32] : memref<5x!tpu.dma_semaphore, #tpu.memory_space<semaphore_mem>> -> memref<1x!tpu.dma_semaphore, #tpu.memory_space<semaphore_mem>>
    %3 = tpu.memref_squeeze %2 : memref<1x!tpu.dma_semaphore, #tpu.memory_space<semaphore_mem>> -> memref<!tpu.dma_semaphore, #tpu.memory_space<semaphore_mem>>
    tpu.enqueue_dma source(%arg8 : memref<512x512xbf16, #tpu.memory_space<any>>) target(%arg21 : memref<512x512xbf16, #tpu.memory_space<vmem>>) target_semaphore(%3 : memref<!tpu.dma_semaphore, #tpu.memory_space<semaphore_mem>>)
    %c2_i32 = arith.constant 2 : i32
    %4 = tpu.memref_slice %arg25[%c2_i32] : memref<5x!tpu.dma_semaphore, #tpu.memory_space<semaphore_mem>> -> memref<1x!tpu.dma_semaphore, #tpu.memory_space<semaphore_mem>>
    %5 = tpu.memref_squeeze %4 : memref<1x!tpu.dma_semaphore, #tpu.memory_space<semaphore_mem>> -> memref<!tpu.dma_semaphore, #tpu.memory_space<semaphore_mem>>
    tpu.enqueue_dma source(%arg9 : memref<512x512xbf16, #tpu.memory_space<any>>) target(%arg22 : memref<512x512xbf16, #tpu.memory_space<vmem>>) target_semaphore(%5 : memref<!tpu.dma_semaphore, #tpu.memory_space<semaphore_mem>>)
    %c3_i32 = arith.constant 3 : i32
    %6 = tpu.memref_slice %arg25[%c3_i32] : memref<5x!tpu.dma_semaphore, #tpu.memory_space<semaphore_mem>> -> memref<1x!tpu.dma_semaphore, #tpu.memory_space<semaphore_mem>>
    %7 = tpu.memref_squeeze %6 : memref<1x!tpu.dma_semaphore, #tpu.memory_space<semaphore_mem>> -> memref<!tpu.dma_semaphore, #tpu.memory_space<semaphore_mem>>
    tpu.enqueue_dma source(%arg10 : memref<512x512xbf16, #tpu.memory_space<any>>) target(%arg23 : memref<512x512xbf16, #tpu.memory_space<vmem>>) target_semaphore(%7 : memref<!tpu.dma_semaphore, #tpu.memory_space<semaphore_mem>>)
    %c4_i32 = arith.constant 4 : i32
    %8 = tpu.memref_slice %arg25[%c4_i32] : memref<5x!tpu.dma_semaphore, #tpu.memory_space<semaphore_mem>> -> memref<1x!tpu.dma_semaphore, #tpu.memory_space<semaphore_mem>>
    %9 = tpu.memref_squeeze %8 : memref<1x!tpu.dma_semaphore, #tpu.memory_space<semaphore_mem>> -> memref<!tpu.dma_semaphore, #tpu.memory_space<semaphore_mem>>
    tpu.enqueue_dma source(%arg11 : memref<512x512xbf16, #tpu.memory_space<any>>) target(%arg24 : memref<512x512xbf16, #tpu.memory_space<vmem>>) target_semaphore(%9 : memref<!tpu.dma_semaphore, #tpu.memory_space<semaphore_mem>>)
    %c0 = arith.constant 0 : index
    %c0_0 = arith.constant 0 : index
    %10 = vector.load %arg0[%c0, %c0_0] : memref<64x162xf32, #tpu.memory_space<vmem>>, vector<64x162xf32>
    %11 = arith.truncf %10 : vector<64x162xf32> to vector<64x162xbf16>
    %c0_1 = arith.constant 0 : index
    %c0_2 = arith.constant 0 : index
    %12 = vector.load %arg2[%c0_1, %c0_2] : memref<162x512xbf16, #tpu.memory_space<vmem>>, vector<162x512xbf16>
    %cst = arith.constant dense<0.000000e+00> : vector<64x512xf32>
    %13 = tpu.matmul %11, %12, %cst {dimension_numbers = #tpu.dot_dimension_numbers<[1], [0], [0], [1], [0, 0, 1, 1], [], []>} : vector<64x162xbf16>, vector<162x512xbf16>, vector<64x512xf32> -> vector<64x512xf32>
    %c0_3 = arith.constant 0 : index
    %c0_4 = arith.constant 0 : index
    %14 = vector.load %arg4[%c0_3, %c0_4] : memref<1x512xf32, #tpu.memory_space<vmem>>, vector<1x512xf32>
    %15 = vector.broadcast %14 : vector<1x512xf32> to vector<64x512xf32>
    %16 = arith.addf %13, %15 : vector<64x512xf32>
    %c0_5 = arith.constant 0 : index
    %c0_6 = arith.constant 0 : index
    %17 = vector.load %arg19[%c0_5, %c0_6] : memref<64x512xf32, #tpu.memory_space<vmem>>, vector<64x512xf32>
    tpu.vector_store %arg19[%c0_5, %c0_6], %16 {strides = array<i32>} : memref<64x512xf32, #tpu.memory_space<vmem>>, vector<64x512xf32>,
    %cst_7 = arith.constant 0.000000e+00 : f32
    %18 = vector.broadcast %cst_7 : f32 to vector<8x128xf32>
    %cst_8 = arith.constant 0.000000e+00 : f32
    %19 = vector.broadcast %cst_8 : f32 to vector<8x128xf32>
    %c0_i32_9 = arith.constant 0 : i32
    %c8_i32 = arith.constant 8 : i32
    %20 = arith.muli %c0_i32_9, %c8_i32 : i32
    %21 = tpu.assume_multiple %20, 8 : i32
    %22 = arith.index_cast %21 : i32 to index
    %c0_10 = arith.constant 0 : index
    %23 = vector.load %arg19[%22, %c0_10] : memref<64x512xf32, #tpu.memory_space<vmem>>, vector<8x512xf32>
    %c0_11 = arith.constant 0 : index
    %c0_12 = arith.constant 0 : index
    %24 = vector.load %arg3[%c0_11, %c0_12] : memref<128x512xf32, #tpu.memory_space<vmem>>, vector<128x512xf32>
    %cst_13 = arith.constant dense<0.000000e+00> : vector<8x512xf32>
    %25 = tpu.matmul %18, %24, %cst_13 {dimension_numbers = #tpu.dot_dimension_numbers<[1], [0], [0], [1], [0, 0, 1, 1], [], []>} : vector<8x128xf32>, vector<128x512xf32>, vector<8x512xf32> -> vector<8x512xf32>
    %26 = arith.addf %23, %25 : vector<8x512xf32>
    %27 = vector.extract_strided_slice %26 {offsets = [0, 0], sizes = [8, 128], strides = [1, 1]} : vector<8x512xf32> to vector<8x128xf32>
    %28 = arith.negf %27 : vector<8x128xf32>
    %29 = math.exp %28 : vector<8x128xf32>
    %cst_14 = arith.constant 1.000000e+00 : f32
    %30 = vector.broadcast %cst_14 : f32 to vector<8x128xf32>
    %31 = arith.addf %30, %29 : vector<8x128xf32>
    %32 = arith.divf %30, %31 : vector<8x128xf32>
    %33 = vector.extract_strided_slice %26 {offsets = [0, 128], sizes = [8, 128], strides = [1, 1]} : vector<8x512xf32> to vector<8x128xf32>
    %34 = arith.negf %33 : vector<8x128xf32>
    %35 = math.exp %34 : vector<8x128xf32>
    %cst_15 = arith.constant 1.000000e+00 : f32
    %36 = vector.broadcast %cst_15 : f32 to vector<8x128xf32>
    %37 = arith.addf %36, %35 : vector<8x128xf32>
    %38 = arith.divf %36, %37 : vector<8x128xf32>
    %39 = vector.extract_strided_slice %26 {offsets = [0, 256], sizes = [8, 128], strides = [1, 1]} : vector<8x512xf32> to vector<8x128xf32>
    %40 = math.tanh %39 : vector<8x128xf32>
    %41 = vector.extract_strided_slice %26 {offsets = [0, 384], sizes = [8, 128], strides = [1, 1]} : vector<8x512xf32> to vector<8x128xf32>
    %42 = arith.negf %41 : vector<8x128xf32>
    %43 = math.exp %42 : vector<8x128xf32>
    %cst_16 = arith.constant 1.000000e+00 : f32
    %44 = vector.broadcast %cst_16 : f32 to vector<8x128xf32>
    %45 = arith.addf %44, %43 : vector<8x128xf32>
    %46 = arith.divf %44, %45 : vector<8x128xf32>
    %47 = arith.mulf %38, %19 : vector<8x128xf32>
    %48 = arith.mulf %32, %40 : vector<8x128xf32>
    %49 = arith.addf %47, %48 : vector<8x128xf32>
    %50 = math.tanh %49 : vector<8x128xf32>
    %51 = arith.mulf %46, %50 : vector<8x128xf32>
    %c1_i32_17 = arith.constant 1 : i32
    %c8_i32_18 = arith.constant 8 : i32
    %52 = arith.muli %c1_i32_17, %c8_i32_18 : i32
    %53 = tpu.assume_multiple %52, 8 : i32
    %54 = arith.index_cast %53 : i32 to index
    %c0_19 = arith.constant 0 : index
    %55 = vector.load %arg19[%54, %c0_19] : memref<64x512xf32, #tpu.memory_space<vmem>>, vector<8x512xf32>
    %c0_20 = arith.constant 0 : index
    %c0_21 = arith.constant 0 : index
    %56 = vector.load %arg3[%c0_20, %c0_21] : memref<128x512xf32, #tpu.memory_space<vmem>>, vector<128x512xf32>
    %cst_22 = arith.constant dense<0.000000e+00> : vector<8x512xf32>
    %57 = tpu.matmul %51, %56, %cst_22 {dimension_numbers = #tpu.dot_dimension_numbers<[1], [0], [0], [1], [0, 0, 1, 1], [], []>} : vector<8x128xf32>, vector<128x512xf32>, vector<8x512xf32> -> vector<8x512xf32>
    %58 = arith.addf %55, %57 : vector<8x512xf32>
    %59 = vector.extract_strided_slice %58 {offsets = [0, 0], sizes = [8, 128], strides = [1, 1]} : vector<8x512xf32> to vector<8x128xf32>
    %60 = arith.negf %59 : vector<8x128xf32>
    %61 = math.exp %60 : vector<8x128xf32>
    %cst_23 = arith.constant 1.000000e+00 : f32
    %62 = vector.broadcast %cst_23 : f32 to vector<8x128xf32>
    %63 = arith.addf %62, %61 : vector<8x128xf32>
    %64 = arith.divf %62, %63 : vector<8x128xf32>
    %65 = vector.extract_strided_slice %58 {offsets = [0, 128], sizes = [8, 128], strides = [1, 1]} : vector<8x512xf32> to vector<8x128xf32>
    %66 = arith.negf %65 : vector<8x128xf32>
    %67 = math.exp %66 : vector<8x128xf32>
    %cst_24 = arith.constant 1.000000e+00 : f32
    %68 = vector.broadcast %cst_24 : f32 to vector<8x128xf32>
    %69 = arith.addf %68, %67 : vector<8x128xf32>
    %70 = arith.divf %68, %69 : vector<8x128xf32>
    %71 = vector.extract_strided_slice %58 {offsets = [0, 256], sizes = [8, 128], strides = [1, 1]} : vector<8x512xf32> to vector<8x128xf32>
    %72 = math.tanh %71 : vector<8x128xf32>
    %73 = vector.extract_strided_slice %58 {offsets = [0, 384], sizes = [8, 128], strides = [1, 1]} : vector<8x512xf32> to vector<8x128xf32>
    %74 = arith.negf %73 : vector<8x128xf32>
    %75 = math.exp %74 : vector<8x128xf32>
    %cst_25 = arith.constant 1.000000e+00 : f32
    %76 = vector.broadcast %cst_25 : f32 to vector<8x128xf32>
    %77 = arith.addf %76, %75 : vector<8x128xf32>
    %78 = arith.divf %76, %77 : vector<8x128xf32>
    %79 = arith.mulf %70, %49 : vector<8x128xf32>
    %80 = arith.mulf %64, %72 : vector<8x128xf32>
    %81 = arith.addf %79, %80 : vector<8x128xf32>
    %82 = math.tanh %81 : vector<8x128xf32>
    %83 = arith.mulf %78, %82 : vector<8x128xf32>
    %c2_i32_26 = arith.constant 2 : i32
    %c8_i32_27 = arith.constant 8 : i32
    %84 = arith.muli %c2_i32_26, %c8_i32_27 : i32
    %85 = tpu.assume_multiple %84, 8 : i32
    %86 = arith.index_cast %85 : i32 to index
    %c0_28 = arith.constant 0 : index
    %87 = vector.load %arg19[%86, %c0_28] : memref<64x512xf32, #tpu.memory_space<vmem>>, vector<8x512xf32>
    %c0_29 = arith.constant 0 : index
    %c0_30 = arith.constant 0 : index
    %88 = vector.load %arg3[%c0_29, %c0_30] : memref<128x512xf32, #tpu.memory_space<vmem>>, vector<128x512xf32>
    %cst_31 = arith.constant dense<0.000000e+00> : vector<8x512xf32>
    %89 = tpu.matmul %83, %88, %cst_31 {dimension_numbers = #tpu.dot_dimension_numbers<[1], [0], [0], [1], [0, 0, 1, 1], [], []>} : vector<8x128xf32>, vector<128x512xf32>, vector<8x512xf32> -> vector<8x512xf32>
    %90 = arith.addf %87, %89 : vector<8x512xf32>
    %91 = vector.extract_strided_slice %90 {offsets = [0, 0], sizes = [8, 128], strides = [1, 1]} : vector<8x512xf32> to vector<8x128xf32>
    %92 = arith.negf %91 : vector<8x128xf32>
    %93 = math.exp %92 : vector<8x128xf32>
    %cst_32 = arith.constant 1.000000e+00 : f32
    %94 = vector.broadcast %cst_32 : f32 to vector<8x128xf32>
    %95 = arith.addf %94, %93 : vector<8x128xf32>
    %96 = arith.divf %94, %95 : vector<8x128xf32>
    %97 = vector.extract_strided_slice %90 {offsets = [0, 128], sizes = [8, 128], strides = [1, 1]} : vector<8x512xf32> to vector<8x128xf32>
    %98 = arith.negf %97 : vector<8x128xf32>
    %99 = math.exp %98 : vector<8x128xf32>
    %cst_33 = arith.constant 1.000000e+00 : f32
    %100 = vector.broadcast %cst_33 : f32 to vector<8x128xf32>
    %101 = arith.addf %100, %99 : vector<8x128xf32>
    %102 = arith.divf %100, %101 : vector<8x128xf32>
    %103 = vector.extract_strided_slice %90 {offsets = [0, 256], sizes = [8, 128], strides = [1, 1]} : vector<8x512xf32> to vector<8x128xf32>
    %104 = math.tanh %103 : vector<8x128xf32>
    %105 = vector.extract_strided_slice %90 {offsets = [0, 384], sizes = [8, 128], strides = [1, 1]} : vector<8x512xf32> to vector<8x128xf32>
    %106 = arith.negf %105 : vector<8x128xf32>
    %107 = math.exp %106 : vector<8x128xf32>
    %cst_34 = arith.constant 1.000000e+00 : f32
    %108 = vector.broadcast %cst_34 : f32 to vector<8x128xf32>
    %109 = arith.addf %108, %107 : vector<8x128xf32>
    %110 = arith.divf %108, %109 : vector<8x128xf32>
    %111 = arith.mulf %102, %81 : vector<8x128xf32>
    %112 = arith.mulf %96, %104 : vector<8x128xf32>
    %113 = arith.addf %111, %112 : vector<8x128xf32>
    %114 = math.tanh %113 : vector<8x128xf32>
    %115 = arith.mulf %110, %114 : vector<8x128xf32>
    %c3_i32_35 = arith.constant 3 : i32
    %c8_i32_36 = arith.constant 8 : i32
    %116 = arith.muli %c3_i32_35, %c8_i32_36 : i32
    %117 = tpu.assume_multiple %116, 8 : i32
    %118 = arith.index_cast %117 : i32 to index
    %c0_37 = arith.constant 0 : index
    %119 = vector.load %arg19[%118, %c0_37] : memref<64x512xf32, #tpu.memory_space<vmem>>, vector<8x512xf32>
    %c0_38 = arith.constant 0 : index
    %c0_39 = arith.constant 0 : index
    %120 = vector.load %arg3[%c0_38, %c0_39] : memref<128x512xf32, #tpu.memory_space<vmem>>, vector<128x512xf32>
    %cst_40 = arith.constant dense<0.000000e+00> : vector<8x512xf32>
    %121 = tpu.matmul %115, %120, %cst_40 {dimension_numbers = #tpu.dot_dimension_numbers<[1], [0], [0], [1], [0, 0, 1, 1], [], []>} : vector<8x128xf32>, vector<128x512xf32>, vector<8x512xf32> -> vector<8x512xf32>
    %122 = arith.addf %119, %121 : vector<8x512xf32>
    %123 = vector.extract_strided_slice %122 {offsets = [0, 0], sizes = [8, 128], strides = [1, 1]} : vector<8x512xf32> to vector<8x128xf32>
    %124 = arith.negf %123 : vector<8x128xf32>
    %125 = math.exp %124 : vector<8x128xf32>
    %cst_41 = arith.constant 1.000000e+00 : f32
    %126 = vector.broadcast %cst_41 : f32 to vector<8x128xf32>
    %127 = arith.addf %126, %125 : vector<8x128xf32>
    %128 = arith.divf %126, %127 : vector<8x128xf32>
    %129 = vector.extract_strided_slice %122 {offsets = [0, 128], sizes = [8, 128], strides = [1, 1]} : vector<8x512xf32> to vector<8x128xf32>
    %130 = arith.negf %129 : vector<8x128xf32>
    %131 = math.exp %130 : vector<8x128xf32>
    %cst_42 = arith.constant 1.000000e+00 : f32
    %132 = vector.broadcast %cst_42 : f32 to vector<8x128xf32>
    %133 = arith.addf %132, %131 : vector<8x128xf32>
    %134 = arith.divf %132, %133 : vector<8x128xf32>
    %135 = vector.extract_strided_slice %122 {offsets = [0, 256], sizes = [8, 128], strides = [1, 1]} : vector<8x512xf32> to vector<8x128xf32>
    %136 = math.tanh %135 : vector<8x128xf32>
    %137 = vector.extract_strided_slice %122 {offsets = [0, 384], sizes = [8, 128], strides = [1, 1]} : vector<8x512xf32> to vector<8x128xf32>
    %138 = arith.negf %137 : vector<8x128xf32>
    %139 = math.exp %138 : vector<8x128xf32>
    %cst_43 = arith.constant 1.000000e+00 : f32
    %140 = vector.broadcast %cst_43 : f32 to vector<8x128xf32>
    %141 = arith.addf %140, %139 : vector<8x128xf32>
    %142 = arith.divf %140, %141 : vector<8x128xf32>
    %143 = arith.mulf %134, %113 : vector<8x128xf32>
    %144 = arith.mulf %128, %136 : vector<8x128xf32>
    %145 = arith.addf %143, %144 : vector<8x128xf32>
    %146 = math.tanh %145 : vector<8x128xf32>
    %147 = arith.mulf %142, %146 : vector<8x128xf32>
    %c4_i32_44 = arith.constant 4 : i32
    %c8_i32_45 = arith.constant 8 : i32
    %148 = arith.muli %c4_i32_44, %c8_i32_45 : i32
    %149 = tpu.assume_multiple %148, 8 : i32
    %150 = arith.index_cast %149 : i32 to index
    %c0_46 = arith.constant 0 : index
    %151 = vector.load %arg19[%150, %c0_46] : memref<64x512xf32, #tpu.memory_space<vmem>>, vector<8x512xf32>
    %c0_47 = arith.constant 0 : index
    %c0_48 = arith.constant 0 : index
    %152 = vector.load %arg3[%c0_47, %c0_48] : memref<128x512xf32, #tpu.memory_space<vmem>>, vector<128x512xf32>
    %cst_49 = arith.constant dense<0.000000e+00> : vector<8x512xf32>
    %153 = tpu.matmul %147, %152, %cst_49 {dimension_numbers = #tpu.dot_dimension_numbers<[1], [0], [0], [1], [0, 0, 1, 1], [], []>} : vector<8x128xf32>, vector<128x512xf32>, vector<8x512xf32> -> vector<8x512xf32>
    %154 = arith.addf %151, %153 : vector<8x512xf32>
    %155 = vector.extract_strided_slice %154 {offsets = [0, 0], sizes = [8, 128], strides = [1, 1]} : vector<8x512xf32> to vector<8x128xf32>
    %156 = arith.negf %155 : vector<8x128xf32>
    %157 = math.exp %156 : vector<8x128xf32>
    %cst_50 = arith.constant 1.000000e+00 : f32
    %158 = vector.broadcast %cst_50 : f32 to vector<8x128xf32>
    %159 = arith.addf %158, %157 : vector<8x128xf32>
    %160 = arith.divf %158, %159 : vector<8x128xf32>
    %161 = vector.extract_strided_slice %154 {offsets = [0, 128], sizes = [8, 128], strides = [1, 1]} : vector<8x512xf32> to vector<8x128xf32>
    %162 = arith.negf %161 : vector<8x128xf32>
    %163 = math.exp %162 : vector<8x128xf32>
    %cst_51 = arith.constant 1.000000e+00 : f32
    %164 = vector.broadcast %cst_51 : f32 to vector<8x128xf32>
    %165 = arith.addf %164, %163 : vector<8x128xf32>
    %166 = arith.divf %164, %165 : vector<8x128xf32>
    %167 = vector.extract_strided_slice %154 {offsets = [0, 256], sizes = [8, 128], strides = [1, 1]} : vector<8x512xf32> to vector<8x128xf32>
    %168 = math.tanh %167 : vector<8x128xf32>
    %169 = vector.extract_strided_slice %154 {offsets = [0, 384], sizes = [8, 128], strides = [1, 1]} : vector<8x512xf32> to vector<8x128xf32>
    %170 = arith.negf %169 : vector<8x128xf32>
    %171 = math.exp %170 : vector<8x128xf32>
    %cst_52 = arith.constant 1.000000e+00 : f32
    %172 = vector.broadcast %cst_52 : f32 to vector<8x128xf32>
    %173 = arith.addf %172, %171 : vector<8x128xf32>
    %174 = arith.divf %172, %173 : vector<8x128xf32>
    %175 = arith.mulf %166, %145 : vector<8x128xf32>
    %176 = arith.mulf %160, %168 : vector<8x128xf32>
    %177 = arith.addf %175, %176 : vector<8x128xf32>
    %178 = math.tanh %177 : vector<8x128xf32>
    %179 = arith.mulf %174, %178 : vector<8x128xf32>
    %c5_i32 = arith.constant 5 : i32
    %c8_i32_53 = arith.constant 8 : i32
    %180 = arith.muli %c5_i32, %c8_i32_53 : i32
    %181 = tpu.assume_multiple %180, 8 : i32
    %182 = arith.index_cast %181 : i32 to index
    %c0_54 = arith.constant 0 : index
    %183 = vector.load %arg19[%182, %c0_54] : memref<64x512xf32, #tpu.memory_space<vmem>>, vector<8x512xf32>
    %c0_55 = arith.constant 0 : index
    %c0_56 = arith.constant 0 : index
    %184 = vector.load %arg3[%c0_55, %c0_56] : memref<128x512xf32, #tpu.memory_space<vmem>>, vector<128x512xf32>
    %cst_57 = arith.constant dense<0.000000e+00> : vector<8x512xf32>
    %185 = tpu.matmul %179, %184, %cst_57 {dimension_numbers = #tpu.dot_dimension_numbers<[1], [0], [0], [1], [0, 0, 1, 1], [], []>} : vector<8x128xf32>, vector<128x512xf32>, vector<8x512xf32> -> vector<8x512xf32>
    %186 = arith.addf %183, %185 : vector<8x512xf32>
    %187 = vector.extract_strided_slice %186 {offsets = [0, 0], sizes = [8, 128], strides = [1, 1]} : vector<8x512xf32> to vector<8x128xf32>
    %188 = arith.negf %187 : vector<8x128xf32>
    %189 = math.exp %188 : vector<8x128xf32>
    %cst_58 = arith.constant 1.000000e+00 : f32
    %190 = vector.broadcast %cst_58 : f32 to vector<8x128xf32>
    %191 = arith.addf %190, %189 : vector<8x128xf32>
    %192 = arith.divf %190, %191 : vector<8x128xf32>
    %193 = vector.extract_strided_slice %186 {offsets = [0, 128], sizes = [8, 128], strides = [1, 1]} : vector<8x512xf32> to vector<8x128xf32>
    %194 = arith.negf %193 : vector<8x128xf32>
    %195 = math.exp %194 : vector<8x128xf32>
    %cst_59 = arith.constant 1.000000e+00 : f32
    %196 = vector.broadcast %cst_59 : f32 to vector<8x128xf32>
    %197 = arith.addf %196, %195 : vector<8x128xf32>
    %198 = arith.divf %196, %197 : vector<8x128xf32>
    %199 = vector.extract_strided_slice %186 {offsets = [0, 256], sizes = [8, 128], strides = [1, 1]} : vector<8x512xf32> to vector<8x128xf32>
    %200 = math.tanh %199 : vector<8x128xf32>
    %201 = vector.extract_strided_slice %186 {offsets = [0, 384], sizes = [8, 128], strides = [1, 1]} : vector<8x512xf32> to vector<8x128xf32>
    %202 = arith.negf %201 : vector<8x128xf32>
    %203 = math.exp %202 : vector<8x128xf32>
    %cst_60 = arith.constant 1.000000e+00 : f32
    %204 = vector.broadcast %cst_60 : f32 to vector<8x128xf32>
    %205 = arith.addf %204, %203 : vector<8x128xf32>
    %206 = arith.divf %204, %205 : vector<8x128xf32>
    %207 = arith.mulf %198, %177 : vector<8x128xf32>
    %208 = arith.mulf %192, %200 : vector<8x128xf32>
    %209 = arith.addf %207, %208 : vector<8x128xf32>
    %210 = math.tanh %209 : vector<8x128xf32>
    %211 = arith.mulf %206, %210 : vector<8x128xf32>
    %c6_i32 = arith.constant 6 : i32
    %c8_i32_61 = arith.constant 8 : i32
    %212 = arith.muli %c6_i32, %c8_i32_61 : i32
    %213 = tpu.assume_multiple %212, 8 : i32
    %214 = arith.index_cast %213 : i32 to index
    %c0_62 = arith.constant 0 : index
    %215 = vector.load %arg19[%214, %c0_62] : memref<64x512xf32, #tpu.memory_space<vmem>>, vector<8x512xf32>
    %c0_63 = arith.constant 0 : index
    %c0_64 = arith.constant 0 : index
    %216 = vector.load %arg3[%c0_63, %c0_64] : memref<128x512xf32, #tpu.memory_space<vmem>>, vector<128x512xf32>
    %cst_65 = arith.constant dense<0.000000e+00> : vector<8x512xf32>
    %217 = tpu.matmul %211, %216, %cst_65 {dimension_numbers = #tpu.dot_dimension_numbers<[1], [0], [0], [1], [0, 0, 1, 1], [], []>} : vector<8x128xf32>, vector<128x512xf32>, vector<8x512xf32> -> vector<8x512xf32>
    %218 = arith.addf %215, %217 : vector<8x512xf32>
    %219 = vector.extract_strided_slice %218 {offsets = [0, 0], sizes = [8, 128], strides = [1, 1]} : vector<8x512xf32> to vector<8x128xf32>
    %220 = arith.negf %219 : vector<8x128xf32>
    %221 = math.exp %220 : vector<8x128xf32>
    %cst_66 = arith.constant 1.000000e+00 : f32
    %222 = vector.broadcast %cst_66 : f32 to vector<8x128xf32>
    %223 = arith.addf %222, %221 : vector<8x128xf32>
    %224 = arith.divf %222, %223 : vector<8x128xf32>
    %225 = vector.extract_strided_slice %218 {offsets = [0, 128], sizes = [8, 128], strides = [1, 1]} : vector<8x512xf32> to vector<8x128xf32>
    %226 = arith.negf %225 : vector<8x128xf32>
    %227 = math.exp %226 : vector<8x128xf32>
    %cst_67 = arith.constant 1.000000e+00 : f32
    %228 = vector.broadcast %cst_67 : f32 to vector<8x128xf32>
    %229 = arith.addf %228, %227 : vector<8x128xf32>
    %230 = arith.divf %228, %229 : vector<8x128xf32>
    %231 = vector.extract_strided_slice %218 {offsets = [0, 256], sizes = [8, 128], strides = [1, 1]} : vector<8x512xf32> to vector<8x128xf32>
    %232 = math.tanh %231 : vector<8x128xf32>
    %233 = vector.extract_strided_slice %218 {offsets = [0, 384], sizes = [8, 128], strides = [1, 1]} : vector<8x512xf32> to vector<8x128xf32>
    %234 = arith.negf %233 : vector<8x128xf32>
    %235 = math.exp %234 : vector<8x128xf32>
    %cst_68 = arith.constant 1.000000e+00 : f32
    %236 = vector.broadcast %cst_68 : f32 to vector<8x128xf32>
    %237 = arith.addf %236, %235 : vector<8x128xf32>
    %238 = arith.divf %236, %237 : vector<8x128xf32>
    %239 = arith.mulf %230, %209 : vector<8x128xf32>
    %240 = arith.mulf %224, %232 : vector<8x128xf32>
    %241 = arith.addf %239, %240 : vector<8x128xf32>
    %242 = math.tanh %241 : vector<8x128xf32>
    %243 = arith.mulf %238, %242 : vector<8x128xf32>
    %c7_i32 = arith.constant 7 : i32
    %c8_i32_69 = arith.constant 8 : i32
    %244 = arith.muli %c7_i32, %c8_i32_69 : i32
    %245 = tpu.assume_multiple %244, 8 : i32
    %246 = arith.index_cast %245 : i32 to index
    %c0_70 = arith.constant 0 : index
    %247 = vector.load %arg19[%246, %c0_70] : memref<64x512xf32, #tpu.memory_space<vmem>>, vector<8x512xf32>
    %c0_71 = arith.constant 0 : index
    %c0_72 = arith.constant 0 : index
    %248 = vector.load %arg3[%c0_71, %c0_72] : memref<128x512xf32, #tpu.memory_space<vmem>>, vector<128x512xf32>
    %cst_73 = arith.constant dense<0.000000e+00> : vector<8x512xf32>
    %249 = tpu.matmul %243, %248, %cst_73 {dimension_numbers = #tpu.dot_dimension_numbers<[1], [0], [0], [1], [0, 0, 1, 1], [], []>} : vector<8x128xf32>, vector<128x512xf32>, vector<8x512xf32> -> vector<8x512xf32>
    %250 = arith.addf %247, %249 : vector<8x512xf32>
    %251 = vector.extract_strided_slice %250 {offsets = [0, 0], sizes = [8, 128], strides = [1, 1]} : vector<8x512xf32> to vector<8x128xf32>
    %252 = arith.negf %251 : vector<8x128xf32>
    %253 = math.exp %252 : vector<8x128xf32>
    %cst_74 = arith.constant 1.000000e+00 : f32
    %254 = vector.broadcast %cst_74 : f32 to vector<8x128xf32>
    %255 = arith.addf %254, %253 : vector<8x128xf32>
    %256 = arith.divf %254, %255 : vector<8x128xf32>
    %257 = vector.extract_strided_slice %250 {offsets = [0, 128], sizes = [8, 128], strides = [1, 1]} : vector<8x512xf32> to vector<8x128xf32>
    %258 = arith.negf %257 : vector<8x128xf32>
    %259 = math.exp %258 : vector<8x128xf32>
    %cst_75 = arith.constant 1.000000e+00 : f32
    %260 = vector.broadcast %cst_75 : f32 to vector<8x128xf32>
    %261 = arith.addf %260, %259 : vector<8x128xf32>
    %262 = arith.divf %260, %261 : vector<8x128xf32>
    %263 = vector.extract_strided_slice %250 {offsets = [0, 256], sizes = [8, 128], strides = [1, 1]} : vector<8x512xf32> to vector<8x128xf32>
    %264 = math.tanh %263 : vector<8x128xf32>
    %265 = vector.extract_strided_slice %250 {offsets = [0, 384], sizes = [8, 128], strides = [1, 1]} : vector<8x512xf32> to vector<8x128xf32>
    %266 = arith.negf %265 : vector<8x128xf32>
    %267 = math.exp %266 : vector<8x128xf32>
    %cst_76 = arith.constant 1.000000e+00 : f32
    %268 = vector.broadcast %cst_76 : f32 to vector<8x128xf32>
    %269 = arith.addf %268, %267 : vector<8x128xf32>
    %270 = arith.divf %268, %269 : vector<8x128xf32>
    %271 = arith.mulf %262, %241 : vector<8x128xf32>
    %272 = arith.mulf %256, %264 : vector<8x128xf32>
    %273 = arith.addf %271, %272 : vector<8x128xf32>
    %274 = math.tanh %273 : vector<8x128xf32>
    %275 = arith.mulf %270, %274 : vector<8x128xf32>
    %c8_i32_77 = arith.constant 8 : i32
    %276 = arith.truncf %275 : vector<8x128xf32> to vector<8x128xbf16>
    %c0_78 = arith.constant 0 : index
    %c0_79 = arith.constant 0 : index
    %277 = vector.load %arg1[%c0_78, %c0_79] : memref<8x484xf32, #tpu.memory_space<vmem>>, vector<8x484xf32>
    %278 = arith.truncf %277 : vector<8x484xf32> to vector<8x484xbf16>
    %c0_i32_80 = arith.constant 0 : i32
    %279 = tpu.memref_slice %arg25[%c0_i32_80] : memref<5x!tpu.dma_semaphore, #tpu.memory_space<semaphore_mem>> -> memref<1x!tpu.dma_semaphore, #tpu.memory_space<semaphore_mem>>
    %280 = tpu.memref_squeeze %279 : memref<1x!tpu.dma_semaphore, #tpu.memory_space<semaphore_mem>> -> memref<!tpu.dma_semaphore, #tpu.memory_space<semaphore_mem>>
    tpu.wait_dma2 semaphore(%280 : memref<!tpu.dma_semaphore, #tpu.memory_space<semaphore_mem>>) src(%arg7 : memref<484x512xbf16, #tpu.memory_space<any>>) dst(%arg20 : memref<484x512xbf16, #tpu.memory_space<vmem>>)
    %c0_81 = arith.constant 0 : index
    %c0_82 = arith.constant 0 : index
    %281 = vector.load %arg5[%c0_81, %c0_82] : memref<128x512xbf16, #tpu.memory_space<vmem>>, vector<128x512xbf16>
    %cst_83 = arith.constant dense<0.000000e+00> : vector<8x512xf32>
    %282 = tpu.matmul %276, %281, %cst_83 {dimension_numbers = #tpu.dot_dimension_numbers<[1], [0], [0], [1], [0, 0, 1, 1], [], []>} : vector<8x128xbf16>, vector<128x512xbf16>, vector<8x512xf32> -> vector<8x512xf32>
    %c0_84 = arith.constant 0 : index
    %c0_85 = arith.constant 0 : index
    %283 = vector.load %arg20[%c0_84, %c0_85] : memref<484x512xbf16, #tpu.memory_space<vmem>>, vector<484x512xbf16>
    %cst_86 = arith.constant dense<0.000000e+00> : vector<8x512xf32>
    %284 = tpu.matmul %278, %283, %cst_86 {dimension_numbers = #tpu.dot_dimension_numbers<[1], [0], [0], [1], [0, 0, 1, 1], [], []>} : vector<8x484xbf16>, vector<484x512xbf16>, vector<8x512xf32> -> vector<8x512xf32>
    %285 = arith.addf %282, %284 : vector<8x512xf32>
    %c0_87 = arith.constant 0 : index
    %c0_88 = arith.constant 0 : index
    %286 = vector.load %arg6[%c0_87, %c0_88] : memref<1x512xf32, #tpu.memory_space<vmem>>, vector<1x512xf32>
    %287 = vector.broadcast %286 : vector<1x512xf32> to vector<8x512xf32>
    %288 = arith.addf %285, %287 : vector<8x512xf32>
    %cst_89 = arith.constant 0.000000e+00 : f32
    %289 = vector.broadcast %cst_89 : f32 to vector<8x512xf32>
    %290 = arith.maximumf %288, %289 : vector<8x512xf32>
    %c1_i32_90 = arith.constant 1 : i32
    %291 = tpu.memref_slice %arg25[%c1_i32_90] : memref<5x!tpu.dma_semaphore, #tpu.memory_space<semaphore_mem>> -> memref<1x!tpu.dma_semaphore, #tpu.memory_space<semaphore_mem>>
    %292 = tpu.memref_squeeze %291 : memref<1x!tpu.dma_semaphore, #tpu.memory_space<semaphore_mem>> -> memref<!tpu.dma_semaphore, #tpu.memory_space<semaphore_mem>>
    tpu.wait_dma2 semaphore(%292 : memref<!tpu.dma_semaphore, #tpu.memory_space<semaphore_mem>>) src(%arg8 : memref<512x512xbf16, #tpu.memory_space<any>>) dst(%arg21 : memref<512x512xbf16, #tpu.memory_space<vmem>>)
    %293 = arith.truncf %290 : vector<8x512xf32> to vector<8x512xbf16>
    %c0_91 = arith.constant 0 : index
    %c0_92 = arith.constant 0 : index
    %294 = vector.load %arg21[%c0_91, %c0_92] : memref<512x512xbf16, #tpu.memory_space<vmem>>, vector<512x512xbf16>
    %cst_93 = arith.constant dense<0.000000e+00> : vector<8x512xf32>
    %295 = tpu.matmul %293, %294, %cst_93 {dimension_numbers = #tpu.dot_dimension_numbers<[1], [0], [0], [1], [0, 0, 1, 1], [], []>} : vector<8x512xbf16>, vector<512x512xbf16>, vector<8x512xf32> -> vector<8x512xf32>
    %c0_94 = arith.constant 0 : index
    %c0_95 = arith.constant 0 : index
    %296 = vector.load %arg12[%c0_94, %c0_95] : memref<1x512xf32, #tpu.memory_space<vmem>>, vector<1x512xf32>
    %297 = vector.broadcast %296 : vector<1x512xf32> to vector<8x512xf32>
    %298 = arith.addf %295, %297 : vector<8x512xf32>
    %cst_96 = arith.constant 0.000000e+00 : f32
    %299 = vector.broadcast %cst_96 : f32 to vector<8x512xf32>
    %300 = arith.maximumf %298, %299 : vector<8x512xf32>
    %c2_i32_97 = arith.constant 2 : i32
    %301 = tpu.memref_slice %arg25[%c2_i32_97] : memref<5x!tpu.dma_semaphore, #tpu.memory_space<semaphore_mem>> -> memref<1x!tpu.dma_semaphore, #tpu.memory_space<semaphore_mem>>
    %302 = tpu.memref_squeeze %301 : memref<1x!tpu.dma_semaphore, #tpu.memory_space<semaphore_mem>> -> memref<!tpu.dma_semaphore, #tpu.memory_space<semaphore_mem>>
    tpu.wait_dma2 semaphore(%302 : memref<!tpu.dma_semaphore, #tpu.memory_space<semaphore_mem>>) src(%arg9 : memref<512x512xbf16, #tpu.memory_space<any>>) dst(%arg22 : memref<512x512xbf16, #tpu.memory_space<vmem>>)
    %303 = arith.truncf %300 : vector<8x512xf32> to vector<8x512xbf16>
    %c0_98 = arith.constant 0 : index
    %c0_99 = arith.constant 0 : index
    %304 = vector.load %arg22[%c0_98, %c0_99] : memref<512x512xbf16, #tpu.memory_space<vmem>>, vector<512x512xbf16>
    %cst_100 = arith.constant dense<0.000000e+00> : vector<8x512xf32>
    %305 = tpu.matmul %303, %304, %cst_100 {dimension_numbers = #tpu.dot_dimension_numbers<[1], [0], [0], [1], [0, 0, 1, 1], [], []>} : vector<8x512xbf16>, vector<512x512xbf16>, vector<8x512xf32> -> vector<8x512xf32>
    %c0_101 = arith.constant 0 : index
    %c0_102 = arith.constant 0 : index
    %306 = vector.load %arg13[%c0_101, %c0_102] : memref<1x512xf32, #tpu.memory_space<vmem>>, vector<1x512xf32>
    %307 = vector.broadcast %306 : vector<1x512xf32> to vector<8x512xf32>
    %308 = arith.addf %305, %307 : vector<8x512xf32>
    %cst_103 = arith.constant 0.000000e+00 : f32
    %309 = vector.broadcast %cst_103 : f32 to vector<8x512xf32>
    %310 = arith.maximumf %308, %309 : vector<8x512xf32>
    %c3_i32_104 = arith.constant 3 : i32
    %311 = tpu.memref_slice %arg25[%c3_i32_104] : memref<5x!tpu.dma_semaphore, #tpu.memory_space<semaphore_mem>> -> memref<1x!tpu.dma_semaphore, #tpu.memory_space<semaphore_mem>>
    %312 = tpu.memref_squeeze %311 : memref<1x!tpu.dma_semaphore, #tpu.memory_space<semaphore_mem>> -> memref<!tpu.dma_semaphore, #tpu.memory_space<semaphore_mem>>
    tpu.wait_dma2 semaphore(%312 : memref<!tpu.dma_semaphore, #tpu.memory_space<semaphore_mem>>) src(%arg10 : memref<512x512xbf16, #tpu.memory_space<any>>) dst(%arg23 : memref<512x512xbf16, #tpu.memory_space<vmem>>)
    %313 = arith.truncf %310 : vector<8x512xf32> to vector<8x512xbf16>
    %c0_105 = arith.constant 0 : index
    %c0_106 = arith.constant 0 : index
    %314 = vector.load %arg23[%c0_105, %c0_106] : memref<512x512xbf16, #tpu.memory_space<vmem>>, vector<512x512xbf16>
    %cst_107 = arith.constant dense<0.000000e+00> : vector<8x512xf32>
    %315 = tpu.matmul %313, %314, %cst_107 {dimension_numbers = #tpu.dot_dimension_numbers<[1], [0], [0], [1], [0, 0, 1, 1], [], []>} : vector<8x512xbf16>, vector<512x512xbf16>, vector<8x512xf32> -> vector<8x512xf32>
    %c0_108 = arith.constant 0 : index
    %c0_109 = arith.constant 0 : index
    %316 = vector.load %arg14[%c0_108, %c0_109] : memref<1x512xf32, #tpu.memory_space<vmem>>, vector<1x512xf32>
    %317 = vector.broadcast %316 : vector<1x512xf32> to vector<8x512xf32>
    %318 = arith.addf %315, %317 : vector<8x512xf32>
    %cst_110 = arith.constant 0.000000e+00 : f32
    %319 = vector.broadcast %cst_110 : f32 to vector<8x512xf32>
    %320 = arith.maximumf %318, %319 : vector<8x512xf32>
    %c4_i32_111 = arith.constant 4 : i32
    %321 = tpu.memref_slice %arg25[%c4_i32_111] : memref<5x!tpu.dma_semaphore, #tpu.memory_space<semaphore_mem>> -> memref<1x!tpu.dma_semaphore, #tpu.memory_space<semaphore_mem>>
    %322 = tpu.memref_squeeze %321 : memref<1x!tpu.dma_semaphore, #tpu.memory_space<semaphore_mem>> -> memref<!tpu.dma_semaphore, #tpu.memory_space<semaphore_mem>>
    tpu.wait_dma2 semaphore(%322 : memref<!tpu.dma_semaphore, #tpu.memory_space<semaphore_mem>>) src(%arg11 : memref<512x512xbf16, #tpu.memory_space<any>>) dst(%arg24 : memref<512x512xbf16, #tpu.memory_space<vmem>>)
    %323 = arith.truncf %320 : vector<8x512xf32> to vector<8x512xbf16>
    %c0_112 = arith.constant 0 : index
    %c0_113 = arith.constant 0 : index
    %324 = vector.load %arg24[%c0_112, %c0_113] : memref<512x512xbf16, #tpu.memory_space<vmem>>, vector<512x512xbf16>
    %cst_114 = arith.constant dense<0.000000e+00> : vector<8x512xf32>
    %325 = tpu.matmul %323, %324, %cst_114 {dimension_numbers = #tpu.dot_dimension_numbers<[1], [0], [0], [1], [0, 0, 1, 1], [], []>} : vector<8x512xbf16>, vector<512x512xbf16>, vector<8x512xf32> -> vector<8x512xf32>
    %c0_115 = arith.constant 0 : index
    %c0_116 = arith.constant 0 : index
    %326 = vector.load %arg15[%c0_115, %c0_116] : memref<1x512xf32, #tpu.memory_space<vmem>>, vector<1x512xf32>
    %327 = vector.broadcast %326 : vector<1x512xf32> to vector<8x512xf32>
    %328 = arith.addf %325, %327 : vector<8x512xf32>
    %cst_117 = arith.constant 0.000000e+00 : f32
    %329 = vector.broadcast %cst_117 : f32 to vector<8x512xf32>
    %330 = arith.maximumf %328, %329 : vector<8x512xf32>
    %c0_118 = arith.constant 0 : index
    %c0_119 = arith.constant 0 : index
    %331 = vector.load %arg16[%c0_118, %c0_119] : memref<1x512xbf16, #tpu.memory_space<vmem>>, vector<1x512xbf16>
    %332 = arith.extf %331 : vector<1x512xbf16> to vector<1x512xf32>
    %333 = vector.broadcast %332 : vector<1x512xf32> to vector<8x512xf32>
    %334 = arith.mulf %330, %333 : vector<8x512xf32>
    %cst_120 = arith.constant dense<0.000000e+00> : vector<8xf32>
    %335 = vector.multi_reduction <add>, %334, %cst_120 [1] : vector<8x512xf32> to vector<8xf32>
    %336 = vector.shape_cast %335 : vector<8xf32> to vector<8x1xf32>
    %c0_121 = arith.constant 0 : index
    %c0_122 = arith.constant 0 : index
    %337 = vector.load %arg17[%c0_121, %c0_122] : memref<1x1xf32, #tpu.memory_space<vmem>>, vector<1x1xf32>
    %338 = vector.broadcast %337 : vector<1x1xf32> to vector<8x1xf32>
    %339 = arith.addf %336, %338 : vector<8x1xf32>
    %c0_123 = arith.constant 0 : index
    %c0_124 = arith.constant 0 : index
    %340 = vector.load %arg18[%c0_123, %c0_124] : memref<8x1xf32, #tpu.memory_space<vmem>>, vector<8x1xf32>
    tpu.vector_store %arg18[%c0_123, %c0_124], %339 {strides = array<i32>} : memref<8x1xf32, #tpu.memory_space<vmem>>, vector<8x1xf32>,
    return
  }
}

</mosaic_0001>

<bundles_post_ra>
// kernel: farmer_lstm_forward.1
= control target key start
LH: loop header
LB: loop body
LE: loop exit
PB: predicated region body
PF: predicated region fallthrough
CT: control target
= control target key end

     0   :  { %s7490_s0 = inlined_call_operand.vmem [shape: f32[64,162], index: 0, kind: input, shape index: {}]   ;;  %s7491_s1 = inlined_call_operand.vmem [shape: f32[8,484], index: 1, kind: input, shape index: {}]   ;;  %s7492_s2 = inlined_call_operand.hbm [shape: bf16[162,512], index: 2, kind: input, shape index: {}]   ;;  %s7493_s3 = inlined_call_operand.vmem [shape: f32[128,512], index: 3, kind: input, shape index: {}]   ;;  %s7494_s4 = inlined_call_operand.vmem [shape: f32[1,512], index: 4, kind: input, shape index: {}]   ;;  %s7495_s5 = inlined_call_operand.hbm [shape: bf16[128,512], index: 5, kind: input, shape index: {}]   ;;  %s7496_s6 = inlined_call_operand.vmem [shape: f32[1,512], index: 6, kind: input, shape index: {}]   ;;  %s7497_s7 = inlined_call_operand.hbm [shape: bf16[484,512], index: 7, kind: input, shape index: {}]   ;;  %s7498_s8 = inlined_call_operand.hbm [shape: bf16[512,512], index: 8, kind: input, shape index: {}]   ;;  %s7499_s9 = inlined_call_operand.hbm [shape: bf16[512,512], index: 9, kind: input, shape index: {}]   ;;  %s7500_s10 = inlined_call_operand.hbm [shape: bf16[512,512], index: 10, kind: input, shape index: {}]   ;;  %s7501_s11 = inlined_call_operand.hbm [shape: bf16[512,512], index: 11, kind: input, shape index: {}]   ;;  %s7502_s12 = inlined_call_operand.hbm [shape: f32[1,512], index: 12, kind: input, shape index: {}]   ;;  %s7503_s13 = inlined_call_operand.hbm [shape: f32[1,512], index: 13, kind: input, shape index: {}]   ;;  %s7504_s14 = inlined_call_operand.vmem [shape: f32[1,512], index: 14, kind: input, shape index: {}]   ;;  %s7505_s15 = inlined_call_operand.hbm [shape: f32[1,512], index: 15, kind: input, shape index: {}]   ;;  %s7506_s16 = inlined_call_operand.hbm [shape: bf16[1,512], index: 16, kind: input, shape index: {}]   ;;  %s7507_s17 = inlined_call_operand.<no memory space> [shape: f32[1,1], index: 17, kind: input, shape index: {}]   ;;  %s7508_s18 = inlined_call_operand.vmem [shape: f32[8,1], index: 18, kind: output, shape index: {}]  }
   0x1   :  { %7528 = sst [smem:[#allocation70_spill]] %s7490_s0  ;;  %v23_v0 = vstv %s7507_s17 }
   0x2   :  { %7529 = sst [smem:[#allocation71_spill]] %s7491_s1  ;;  %24 = vst [vmem:[#allocation9] sm:$0x1] %v23_v0 }
   0x3   :  { %7530 = sst [smem:[#allocation72_spill]] %s7492_s2 }
   0x4   :  { %25 = vsyncpa [#allocation11], 0 }
   0x5   :  { %26 = vsyncpa [#allocation13], 0 }
   0x6   :  { %27 = vsyncpa [#allocation16], 0 }
   0x7   :  { %28 = vsyncpa [#allocation19], 0  ;;  %s6331_s29 = smov [#allocation12]   ;;  %s6332_s0 = smov [#allocation15]  }
   0x8   :  { %s54_s30 = sshll.u32 %s6331_s29, 4  ;;  %s79_s19 = sshll.u32 %s6332_s0, 4  ;;  %s55_s30 = int_to_ptr.vmem [resolvable:$true] %s54_s30  ;;  %s80_s19 = int_to_ptr.vmem [resolvable:$true] %s79_s19 }
   0x9   :  { %s6159_s21 = scalar_lea.hbm %s7495_s5, 4096 }
   0xa   :  { %p6160_p0 = scmp.ne.s32.totalorder %s7495_s5, %s6159_s21  ;;  %p6163_p1 = scmp.lt.u32.totalorder %s6159_s21, %s7495_s5 }
   0xc   :  { %p6165_p2 = pnand %p6163_p1, %p6160_p0 }
   0xe   :  { %6168 = shalt.err (!%p6165_p2)
}
   0xf   :  { %s6169_s24 = scalar_lea.vmem %s55_s30, 4096  ;;  %p6174_p4 = scmp.lt.s32.totalorder %s55_s30, %s55_s30 }
  0x10   :  { %p6170_p3 = scmp.ne.s32.totalorder %s55_s30, %s6169_s24  ;;  %p6175_p5 = scmp.lt.s32.totalorder %s6169_s24, %s6169_s24 }
  0x12   :  { %p6176_p6 = por %p6175_p5, %p6174_p4 }
  0x14   :  { %p6177_p7 = pnand %p6176_p6, %p6170_p3 }
  0x16   :  { %6180 = shalt.err (!%p6177_p7)
}
  0x17   :  { %s6333_s25 = smov 256   ;;  %s6334_s26 = smov 16  }
  0x18   :  { %60 = dma.hbm_to_vmem [thread:$0]  %s7495_s5, 4096, %s55_s30, [#allocation13], %s6333_s25, %s6333_s25, %s6334_s26  }
  0x19   :  { %s6181_s1 = scalar_lea.hbm %s7503_s13, 64 }
  0x1a   :  { %p6182_p8 = scmp.ne.s32.totalorder %s7503_s13, %s6181_s1  ;;  %p6185_p9 = scmp.lt.u32.totalorder %s6181_s1, %s7503_s13 }
  0x1c   :  { %p6187_p10 = pnand %p6185_p9, %p6182_p8 }
  0x1e   :  { %6190 = shalt.err (!%p6187_p10)
}
  0x1f   :  { %s6191_s17 = scalar_lea.vmem %s80_s19, 64  ;;  %p6196_p12 = scmp.lt.s32.totalorder %s80_s19, %s80_s19 }
  0x20   :  { %p6192_p11 = scmp.ne.s32.totalorder %s80_s19, %s6191_s17  ;;  %p6197_p13 = scmp.lt.s32.totalorder %s6191_s17, %s6191_s17 }
  0x22   :  { %p6198_p0 = por %p6197_p13, %p6196_p12 }
  0x24   :  { %p6199_p1 = pnand %p6198_p0, %p6192_p11 }
  0x26   :  { %6202 = shalt.err (!%p6199_p1)
}
  0x27   :  { %82 = dma.hbm_to_vmem [thread:$0]  %s7503_s13, 64, %s80_s19, [#allocation16]  }
  0x28   :  { %s6335_s23 = smov [#allocation10]   ;;  %s6336_s27 = smov [#allocation14]  }
  0x29   :  { %s38_s24 = sshll.u32 %s6335_s23, 4  ;;  %s69_s28 = sshll.u32 %s6336_s27, 4  ;;  %s39_s24 = int_to_ptr.vmem [resolvable:$true] %s38_s24  ;;  %s70_s28 = int_to_ptr.vmem [resolvable:$true] %s69_s28 }
  0x2a   :  { %s7531_s1 = sld [smem:[#allocation72_spill]] }
  0x30   :  { %s6203_s20 = scalar_lea.hbm %s7531_s1, 5376 }
  0x31   :  { %p6204_p2 = scmp.ne.s32.totalorder %s7531_s1, %s6203_s20  ;;  %p6207_p3 = scmp.lt.u32.totalorder %s6203_s20, %s7531_s1 }
  0x33   :  { %p6209_p4 = pnand %p6207_p3, %p6204_p2 }
  0x35   :  { %6212 = shalt.err (!%p6209_p4)
}
  0x36   :  { %s6213_s13 = scalar_lea.vmem %s39_s24, 5376  ;;  %p6218_p6 = scmp.lt.s32.totalorder %s39_s24, %s39_s24 }
  0x37   :  { %p6214_p5 = scmp.ne.s32.totalorder %s39_s24, %s6213_s13  ;;  %p6219_p7 = scmp.lt.s32.totalorder %s6213_s13, %s6213_s13 }
  0x39   :  { %p6220_p8 = por %p6219_p7, %p6218_p6 }
  0x3b   :  { %p6221_p9 = pnand %p6220_p8, %p6214_p5 }
  0x3d   :  { %6224 = shalt.err (!%p6221_p9)
}
  0x3e   :  { %44 = dma.hbm_to_vmem [thread:$0]  %s7531_s1, 5376, %s39_s24, [#allocation11], %s6333_s25, %s6333_s25, %s6334_s26  }
  0x3f   :  { %s6225_s27 = scalar_lea.hbm %s7502_s12, 64 }
  0x40   :  { %p6226_p10 = scmp.ne.s32.totalorder %s7502_s12, %s6225_s27  ;;  %p6229_p11 = scmp.lt.u32.totalorder %s6225_s27, %s7502_s12 }
  0x42   :  { %p6231_p12 = pnand %p6229_p11, %p6226_p10 }
  0x44   :  { %6234 = shalt.err (!%p6231_p12)
}
  0x45   :  { %s6235_s22 = scalar_lea.vmem %s70_s28, 64  ;;  %p6240_p0 = scmp.lt.s32.totalorder %s70_s28, %s70_s28 }
  0x46   :  { %p6236_p13 = scmp.ne.s32.totalorder %s70_s28, %s6235_s22  ;;  %p6241_p1 = scmp.lt.s32.totalorder %s6235_s22, %s6235_s22 }
  0x48   :  { %p6242_p2 = por %p6241_p1, %p6240_p0 }
  0x4a   :  { %p6243_p3 = pnand %p6242_p2, %p6236_p13 }
  0x4c   :  { %6246 = shalt.err (!%p6243_p3)
}
  0x4d   :  { %72 = dma.hbm_to_vmem [thread:$0]  %s7502_s12, 64, %s70_s28, [#allocation13]  }
  0x4e   :  { %s6337_s1 = smov [#allocation17]   ;;  %s6338_s17 = smov [#allocation18]  }
  0x4f   :  { %s91_s2 = sshll.u32 %s6337_s1, 4  ;;  %s101_s13 = sshll.u32 %s6338_s17, 4  ;;  %s92_s2 = int_to_ptr.vmem [resolvable:$true] %s91_s2  ;;  %s102_s13 = int_to_ptr.vmem [resolvable:$true] %s101_s13 }
  0x50   :  { %s6247_s30 = scalar_lea.hbm %s7505_s15, 64 }
  0x51   :  { %p6248_p4 = scmp.ne.s32.totalorder %s7505_s15, %s6247_s30  ;;  %p6251_p5 = scmp.lt.u32.totalorder %s6247_s30, %s7505_s15 }
  0x53   :  { %p6253_p6 = pnand %p6251_p5, %p6248_p4 }
  0x55   :  { %6256 = shalt.err (!%p6253_p6)
}
  0x56   :  { %s6257_s12 = scalar_lea.vmem %s92_s2, 64  ;;  %p6262_p8 = scmp.lt.s32.totalorder %s92_s2, %s92_s2 }
  0x57   :  { %p6258_p7 = scmp.ne.s32.totalorder %s92_s2, %s6257_s12  ;;  %p6263_p9 = scmp.lt.s32.totalorder %s6257_s12, %s6257_s12 }
  0x59   :  { %p6264_p10 = por %p6263_p9, %p6262_p8 }
  0x5b   :  { %p6265_p11 = pnand %p6264_p10, %p6258_p7 }
  0x5d   :  { %6268 = shalt.err (!%p6265_p11)
}
  0x5e   :  { %94 = dma.hbm_to_vmem [thread:$0]  %s7505_s15, 64, %s92_s2, [#allocation16]  }
  0x5f   :  { %s6269_s26 = scalar_lea.hbm %s7506_s16, 64 }
  0x60   :  { %p6270_p12 = scmp.ne.s32.totalorder %s7506_s16, %s6269_s26  ;;  %p6273_p13 = scmp.lt.u32.totalorder %s6269_s26, %s7506_s16 }
  0x62   :  { %p6275_p0 = pnand %p6273_p13, %p6270_p12 }
  0x64   :  { %6278 = shalt.err (!%p6275_p0)
}
  0x65   :  { %s6279_s5 = scalar_lea.vmem %s102_s13, 64  ;;  %p6284_p2 = scmp.lt.s32.totalorder %s102_s13, %s102_s13 }
  0x66   :  { %p6280_p1 = scmp.ne.s32.totalorder %s102_s13, %s6279_s5  ;;  %p6285_p3 = scmp.lt.s32.totalorder %s6279_s5, %s6279_s5 }
  0x68   :  { %p6286_p4 = por %p6285_p3, %p6284_p2 }
  0x6a   :  { %p6287_p5 = pnand %p6286_p4, %p6280_p1 }
  0x6c   :  { %6290 = shalt.err (!%p6287_p5)
}
  0x6d   :  { %104 = dma.hbm_to_vmem [thread:$0]  %s7506_s16, 64, %s102_s13, [#allocation19]  }
  0x6e   :  { %6313 = dma.done.wait [#allocation11], 5376  }
  0x6f   :  { %6314 = vsyncadd [#allocation11], 4294961920 }
  0x70   :  { %6315 = dma.done.wait [#allocation13], 4160  }
  0x71   :  { %6316 = vsyncadd [#allocation13], 4294963136 }
  0x72   :  { %6317 = dma.done.wait [#allocation16], 128  }
  0x73   :  { %6318 = vsyncadd [#allocation16], 4294967168 }
  0x74   :  { %6319 = dma.done.wait [#allocation19], 64  }
  0x75   :  { %6320 = vsyncadd [#allocation19], 4294967232  ;;  %s142_s30 = sld [smem:[#allocation0]]   ;;  %s6339_s23 = smov 512  }
  0x76   :  { %154 = sst [smem:[#allocation25]] %s6339_s23  ;;  %s6340_s27 = smov 4  }
  0x77   :  { %156 = sst [smem:[#allocation25 + $0x1]] %s6339_s23  ;;  %s6341_s29 = smov 64  }
  0x78   :  { %158 = sst [smem:[#allocation25 + $0x2]] %s6340_s27  ;;  %s6342_s16 = smov [#allocation3]  }
  0x79   :  { %160 = sst [smem:[#allocation25 + $0x3]] %s6341_s29  ;;  %s133_s13 = sshll.u32 %s6342_s16, 4  ;;  %s134_s13 = int_to_ptr.vmem [resolvable:$true] %s133_s13 }
  0x7a   :  { %166 = sst [smem:[#allocation25 + $0x6]] %s6333_s25  ;;  %s6343_s28 = smov [#allocation4]  }
  0x7b   :  { %168 = sst [smem:[#allocation25 + $0x7]] %s6341_s29  ;;  %s4895_s0 = sshll.u32 %s142_s30, 26 }
  0x7c   :  { %170 = sst [smem:[#allocation25 + $0x8]] %s6340_s27  ;;  %s6542_s12 = sadd.s32 134217728, %s4895_s0 }
  0x7d   :  { %s150_s20 = sshll.u32 %s6343_s28, 4  ;;  %s6291_s26 = scalar_lea.hbm %s7497_s7, 15616  ;;  %s151_s20 = int_to_ptr.vmem [resolvable:$true] %s150_s20 }
  0x7e   :  { %p6292_p6 = scmp.ne.s32.totalorder %s7497_s7, %s6291_s26  ;;  %p6295_p7 = scmp.lt.u32.totalorder %s6291_s26, %s7497_s7 }
  0x80   :  { %p6297_p8 = pnand %p6295_p7, %p6292_p6 }
  0x82   :  { %6300 = shalt.err (!%p6297_p8)  }
  0x83   :  { %s6301_s5 = scalar_lea.vmem %s134_s13, 15616  ;;  %p6306_p10 = scmp.lt.s32.totalorder %s134_s13, %s134_s13 }
  0x84   :  { %p6302_p9 = scmp.ne.s32.totalorder %s134_s13, %s6301_s5  ;;  %p6307_p11 = scmp.lt.s32.totalorder %s6301_s5, %s6301_s5 }
  0x86   :  { %p6308_p12 = por %p6307_p11, %p6306_p10 }
  0x88   :  { %p6309_p13 = pnand %p6308_p12, %p6302_p9 }
  0x8a   :  { %6312 = shalt.err (!%p6309_p13)  }
  0x8b   :  { %136 = dma.hbm_to_vmem [thread:$0]  %s7497_s7, 15616, %s134_s13, [#allocation8]  ;;  %vm576_vm0 = vcmask 277504   ;;  %vm589_vm1 = vcmask 1040384  }
  0x8c   :  { %s6344_s30 = smov 128   ;;  %s6345_s16 = smov 2  }
  0x8d   :  { %162 = sst [smem:[#allocation25 + $0x4]] %s6344_s30  ;;  %s6346_s0 = smov [#allocation8 + $0x1]  }
  0x8e   :  { %164 = sst [smem:[#allocation25 + $0x5]] %s6345_s16  ;;  %s6347_s28 = smov [#allocation24]  }
  0x8f   :  { %172 = dma.general %s7498_s8, 16384, %s151_s20, %s6346_s0, %s6347_s28, [#allocation25], %s6542_s12, 0  }
  0x90   :  { %189 = sst [smem:[#allocation27]] %s6339_s23  ;;  %s6348_s26 = smov [#allocation5]  }
  0x91   :  { %191 = sst [smem:[#allocation27 + $0x1]] %s6339_s23  ;;  %s185_s7 = sshll.u32 %s6348_s26, 4  ;;  %s186_s7 = int_to_ptr.vmem [resolvable:$true] %s185_s7 }
  0x92   :  { %193 = sst [smem:[#allocation27 + $0x2]] %s6340_s27  ;;  %s6349_s8 = smov [#allocation8 + $0x2]  }
  0x93   :  { %195 = sst [smem:[#allocation27 + $0x3]] %s6341_s29  ;;  %s6350_s13 = smov [#allocation26]  }
  0x94   :  { %197 = sst [smem:[#allocation27 + $0x4]] %s6344_s30  ;;  %s6351_s1 = smov [#allocation6]  }
  0x95   :  { %199 = sst [smem:[#allocation27 + $0x5]] %s6345_s16  ;;  %s220_s17 = sshll.u32 %s6351_s1, 4  ;;  %s221_s17 = int_to_ptr.vmem [resolvable:$true] %s220_s17 }
  0x96   :  { %201 = sst [smem:[#allocation27 + $0x6]] %s6333_s25  ;;  %s6353_s19 = smov [#allocation28]  }
  0x97   :  { %203 = sst [smem:[#allocation27 + $0x7]] %s6341_s29  ;;  %s6354_s2 = smov [#allocation7]  }
  0x98   :  { %205 = sst [smem:[#allocation27 + $0x8]] %s6340_s27  ;;  %s255_s0 = sshll.u32 %s6354_s2, 4  ;;  %s256_s0 = int_to_ptr.vmem [resolvable:$true] %s255_s0 }
  0x99   :  { %207 = dma.general %s7499_s9, 16384, %s186_s7, %s6349_s8, %s6350_s13, [#allocation27], %s6542_s12, 0  }
  0x9a   :  { %224 = sst [smem:[#allocation29]] %s6339_s23  ;;  %s6352_s9 = smov [#allocation8 + $0x3]  }
  0x9b   :  { %226 = sst [smem:[#allocation29 + $0x1]] %s6339_s23  ;;  %s6356_s28 = smov [#allocation30]  }
  0x9c   :  { %228 = sst [smem:[#allocation29 + $0x2]] %s6340_s27 }
  0x9d   :  { %230 = sst [smem:[#allocation29 + $0x3]] %s6341_s29 }
  0x9e   :  { %232 = sst [smem:[#allocation29 + $0x4]] %s6344_s30 }
  0x9f   :  { %234 = sst [smem:[#allocation29 + $0x5]] %s6345_s16 }
  0xa0   :  { %236 = sst [smem:[#allocation29 + $0x6]] %s6333_s25 }
  0xa1   :  { %238 = sst [smem:[#allocation29 + $0x7]] %s6341_s29 }
  0xa2   :  { %240 = sst [smem:[#allocation29 + $0x8]] %s6340_s27 }
  0xa3   :  { %242 = dma.general %s7500_s10, 16384, %s221_s17, %s6352_s9, %s6353_s19, [#allocation29], %s6542_s12, 0  }
  0xa4   :  { %259 = sst [smem:[#allocation31]] %s6339_s23  ;;  %s6355_s10 = smov [#allocation8 + $0x4]  }
  0xa5   :  { %261 = sst [smem:[#allocation31 + $0x1]] %s6339_s23 }
  0xa6   :  { %263 = sst [smem:[#allocation31 + $0x2]] %s6340_s27 }
  0xa7   :  { %265 = sst [smem:[#allocation31 + $0x3]] %s6341_s29 }
  0xa8   :  { %267 = sst [smem:[#allocation31 + $0x4]] %s6344_s30 }
  0xa9   :  { %269 = sst [smem:[#allocation31 + $0x5]] %s6345_s16 }
  0xaa   :  { %271 = sst [smem:[#allocation31 + $0x6]] %s6333_s25 }
  0xab   :  { %273 = sst [smem:[#allocation31 + $0x7]] %s6341_s29 }
  0xac   :  { %275 = sst [smem:[#allocation31 + $0x8]] %s6340_s27 }
  0xad   :  { %277 = dma.general %s7501_s11, 16384, %s256_s0, %s6355_s10, %s6356_s28, [#allocation31], %s6542_s12, 0  }
  0xae   :  { %s7532_s7 = sld [smem:[#allocation71_spill]]  ;;  %v5735_v9 = vld [vmem:[#allocation10 + $0x4] ss:$16 sps:$4 sm:$0xff]   ;;  %v5737_v10 = vld [vmem:[#allocation10 + $0xc] ss:$16 sps:$4 sm:$0xff]   ;;  %s7537_s13 = sld [smem:[#allocation70_spill]] }
  0xaf   :  { %v5739_v11 = vld [vmem:[#allocation10] ss:$16 sps:$4 sm:$0xff]   ;;  %v5740_v12 = vld [vmem:[#allocation10 + $0x8] ss:$16 sps:$4 sm:$0xff]   ;;  %602 = vmatprep.subr.bf16.mxu0 %v5735_v9  ;;  %v5741_v13 = vld [vmem:[#allocation10 + $0x24] ss:$16 sps:$4 sm:$0xff]   ;;  %675 = vmatprep.subr.bf16.mxu1 %v5737_v10 }
  0xb0   :  { %603 = vmatpush1.bf16.msra.mxu0 %v5739_v11  ;;  %v5743_v14 = vld [vmem:[#allocation10 + $0x2c] ss:$16 sps:$4 sm:$0xff]   ;;  %676 = vmatpush1.bf16.msra.mxu1 %v5740_v12  ;;  %v5745_v15 = vld [vmem:[#allocation10 + $0x20] ss:$16 sps:$4 sm:$0xff]   ;;  %v5746_v16 = vld [vmem:[#allocation10 + $0x28] ss:$16 sps:$4 sm:$0xff]  }
  0xb1   :  { %604 = vmatprep.subr.bf16.mxu0 %v5741_v13  ;;  %677 = vmatprep.subr.bf16.mxu1 %v5743_v14  ;;  %v5747_v17 = vld [vmem:[#allocation10 + $0x44] ss:$16 sps:$4 sm:$0xff]   ;;  %v5749_v18 = vld [vmem:[#allocation10 + $0x4c] ss:$16 sps:$4 sm:$0xff]   ;;  %v5751_v19 = vld [vmem:[#allocation10 + $0x40] ss:$16 sps:$4 sm:$0xff]  }
  0xb2   :  { %v5752_v20 = vld [vmem:[#allocation10 + $0x48] ss:$16 sps:$4 sm:$0xff]   ;;  %v5753_v21 = vld [vmem:[#allocation10 + $0x64] ss:$16 sps:$4 sm:$0xff]   ;;  %v5755_v22 = vld [vmem:[#allocation10 + $0x6c] ss:$16 sps:$4 sm:$0xff]  }
  0xb3   :  { %v5757_v23 = vld [vmem:[#allocation10 + $0x60] ss:$16 sps:$4 sm:$0xff]   ;;  %v5758_v24 = vld [vmem:[#allocation10 + $0x68] ss:$16 sps:$4 sm:$0xff]   ;;  %v5759_v25 = vld [vmem:[#allocation10 + $0x84] ss:$16 sps:$4 sm:$0xff]  }
  0xb4   :  { %v2261_v1 = vld [vmem:[%s7532_s7] sm:$0xff]  ;;  %v2262_v2 = vld [vmem:[%s7532_s7 + $0x8] sm:$0xff]  ;;  %v2263_v3 = vld [vmem:[%s7532_s7 + $0x10] sm:$0xff]  ;;  %605 = vmatpush1.bf16.msra.mxu0 %v5745_v15  ;;  %678 = vmatpush1.bf16.msra.mxu1 %v5746_v16 }
  0xb5   :  { %v2264_v4 = vld [vmem:[%s7532_s7 + $0x18] sm:$0xff]  ;;  %v6613_v5 = vpack.c.bf16 %v2261_v1, %v2261_v1  ;;  %v6615_v6 = vpack.c.bf16 %v2262_v2, %v2262_v2  ;;  %v6617_v7 = vpack.c.bf16 %v2263_v3, %v2263_v3  ;;  %606 = vmatprep.subr.bf16.mxu0 %v5747_v17  ;;  %679 = vmatprep.subr.bf16.mxu1 %v5749_v18  ;;  %v5763_v27 = vld [vmem:[#allocation10 + $0x80] ss:$16 sps:$4 sm:$0xff]   ;;  %v279_v39 = vld [vmem:[%s7537_s13 + $0x8] sm:$0xff] }
  0xb6   :  { %v6619_v8 = vpack.c.bf16 %v2264_v4, %v2264_v4  ;;  %v5761_v26 = vld [vmem:[#allocation10 + $0x8c] ss:$16 sps:$4 sm:$0xff]   ;;  %v5764_v28 = vld [vmem:[#allocation10 + $0x88] ss:$16 sps:$4 sm:$0xff]   ;;  %v5765_v29 = vld [vmem:[#allocation10 + $0xa4] ss:$16 sps:$4 sm:$0xff]  }
  0xb7   :  { %7533 = vst [vmem:[#allocation41_spill] sm:$0xff] %v6613_v5  ;;  %7534 = vst [vmem:[#allocation42_spill] sm:$0xff] %v6615_v6  ;;  %v5767_v30 = vld [vmem:[#allocation10 + $0xac] ss:$16 sps:$4 sm:$0xff]   ;;  %v5769_v31 = vld [vmem:[#allocation10 + $0xa0] ss:$16 sps:$4 sm:$0xff]  }
  0xb8   :  { %7535 = vst [vmem:[#allocation43_spill] sm:$0xff] %v6617_v7  ;;  %7536 = vst [vmem:[#allocation44_spill] sm:$0xff] %v6619_v8  ;;  %607 = vmatpush1.bf16.msra.mxu0 %v5751_v19  ;;  %680 = vmatpush1.bf16.msra.mxu1 %v5752_v20  ;;  %v5770_v32 = vld [vmem:[#allocation10 + $0xa8] ss:$16 sps:$4 sm:$0xff]   ;;  %v5771_v33 = vld [vmem:[#allocation10 + $0xc4] ss:$16 sps:$4 sm:$0xff]  }
  0xb9   :  { %608 = vmatprep.subr.bf16.mxu0 %v5753_v21  ;;  %681 = vmatprep.subr.bf16.mxu1 %v5755_v22  ;;  %v5773_v34 = vld [vmem:[#allocation10 + $0xcc] ss:$16 sps:$4 sm:$0xff]   ;;  %v5775_v35 = vld [vmem:[#allocation10 + $0xc0] ss:$16 sps:$4 sm:$0xff]   ;;  %v5776_v36 = vld [vmem:[#allocation10 + $0xc8] ss:$16 sps:$4 sm:$0xff]  }
  0xba   :  { %v5777_v37 = vld [vmem:[#allocation10 + $0xe4] ss:$16 sps:$4 sm:$0xff]   ;;  %v5779_v38 = vld [vmem:[#allocation10 + $0xec] ss:$16 sps:$4 sm:$0xff]   ;;  %v5781_v40 = vld [vmem:[#allocation10 + $0xe0] ss:$16 sps:$4 sm:$0xff]  }
  0xbb   :  { %v281_v41 = vld [vmem:[%s7537_s13 + $0x18] sm:$0xff]  ;;  %v5787_v46 = vld [vmem:[#allocation10 + $0x100] ss:$16 sps:$4 sm:$0xff]   ;;  %v788_v58 = vld [vmem:[%s7493_s3 + $0x8] sm:$0xff] }
  0xbc   :  { %609 = vmatpush1.bf16.msra.mxu0 %v5757_v23  ;;  %682 = vmatpush1.bf16.msra.mxu1 %v5758_v24  ;;  %v5782_v42 = vld [vmem:[#allocation10 + $0xe8] ss:$16 sps:$4 sm:$0xff]   ;;  %v5783_v43 = vld [vmem:[#allocation10 + $0x104] ss:$16 sps:$4 sm:$0xff]   ;;  %v295_v44 = vpack.c.bf16 %v281_v41, %v279_v39  ;;  %v5785_v45 = vld [vmem:[#allocation10 + $0x10c] ss:$16 sps:$4 sm:$0xff]  }
  0xbd   :  { %610 = vmatprep.subr.bf16.mxu0 %v5759_v25  ;;  %683 = vmatprep.subr.bf16.mxu1 %v5761_v26  ;;  %v5788_v47 = vld [vmem:[#allocation10 + $0x108] ss:$16 sps:$4 sm:$0xff]   ;;  %v5789_v48 = vld [vmem:[#allocation10 + $0x124] ss:$16 sps:$4 sm:$0xff]   ;;  %v5791_v49 = vld [vmem:[#allocation10 + $0x12c] ss:$16 sps:$4 sm:$0xff]  }
  0xbe   :  { %4948 = vmatprep.mubr.msk.bf16.mxu0 %vm576_vm0, %v295_v44  ;;  %4953 = vmatprep.mubr.msk.bf16.mxu1 %vm576_vm0, %v295_v44  ;;  %v342_v50 = vld [vmem:[#allocation10 + $0x140] sm:$0x11]  ;;  %v343_v51 = vld [vmem:[#allocation10 + $0x148] sm:$0x11]  ;;  %v792_v59 = vld [vmem:[%s7493_s3 + $0x28] sm:$0xff] }
  0xbf   :  { %v5793_v52 = vld [vmem:[#allocation10 + $0x120] ss:$16 sps:$4 sm:$0xff]   ;;  %v5794_v53 = vld [vmem:[#allocation10 + $0x128] ss:$16 sps:$4 sm:$0xff]   ;;  %v4944_v54 = vcombine.high %v342_v50, %v342_v50  ;;  %v4943_v55 = vcombine.low %v342_v50, %v342_v50  ;;  %v4946_v56 = vcombine.high %v343_v51, %v343_v51  ;;  %v4945_v57 = vcombine.low %v343_v51, %v343_v51 }
  0xc0   :  { %611 = vmatpush1.bf16.msra.mxu0 %v5763_v27  ;;  %684 = vmatpush1.bf16.msra.mxu1 %v5764_v28  ;;  %v790_v60 = vld [vmem:[%s7493_s3 + $0x18] sm:$0xff]  ;;  %v278_v62 = vld [vmem:[%s7537_s13] sm:$0xff]  ;;  %v280_v63 = vld [vmem:[%s7537_s13 + $0x10] sm:$0xff]  ;;  %v6652_v2 = vpack.c.bf16 %v792_v59, %v788_v58 }
  0xc1   :  { %612 = vmatprep.subr.bf16.mxu0 %v5765_v29  ;;  %685 = vmatprep.subr.bf16.mxu1 %v5767_v30  ;;  %v794_v61 = vld [vmem:[%s7493_s3 + $0x38] sm:$0xff]  ;;  %v787_v0 = vld [vmem:[%s7493_s3] sm:$0xff]  ;;  %v591_v1 = vsel %vm589_vm1, %v4943_v55, 0  ;;  %v789_v4 = vld [vmem:[%s7493_s3 + $0x10] sm:$0xff]  ;;  %v597_v10 = vsel %vm589_vm1, %v4945_v57, 0  ;;  %v294_v15 = vpack.c.bf16 %v280_v63, %v278_v62 }
  0xc2   :  { %v791_v3 = vld [vmem:[%s7493_s3 + $0x20] sm:$0xff]  ;;  %v793_v9 = vld [vmem:[%s7493_s3 + $0x30] sm:$0xff]  ;;  %v6665_v11 = vpack.c.bf16 %v794_v61, %v790_v60  ;;  %v796_v12 = vld [vmem:[%s7493_s3 + $0x48] sm:$0xff] }
  0xc3   :  { %v800_v13 = vld [vmem:[%s7493_s3 + $0x68] sm:$0xff]  ;;  %v798_v14 = vld [vmem:[%s7493_s3 + $0x58] sm:$0xff]  ;;  %v6685_v19 = vpack.c.bf16 %v791_v3, %v787_v0  ;;  %v6688_v20 = vpack.c.bf16 %v793_v9, %v789_v4  ;;  %v795_v22 = vld [vmem:[%s7493_s3 + $0x40] sm:$0xff] }
  0xc4   :  { %613 = vmatpush1.bf16.msra.mxu0 %v5769_v31  ;;  %686 = vmatpush1.bf16.msra.mxu1 %v5770_v32  ;;  %v802_v16 = vld [vmem:[%s7493_s3 + $0x78] sm:$0xff]  ;;  %v283_v17 = vld [vmem:[%s7537_s13 + $0x28] sm:$0xff]  ;;  %v6690_v21 = vpack.c.bf16 %v800_v13, %v796_v12  ;;  %v799_v23 = vld [vmem:[%s7493_s3 + $0x60] sm:$0xff] }
  0xc5   :  { %614 = vmatprep.subr.bf16.mxu0 %v5771_v33  ;;  %687 = vmatprep.subr.bf16.mxu1 %v5773_v34  ;;  %v285_v18 = vld [vmem:[%s7537_s13 + $0x38] sm:$0xff]  ;;  %v797_v24 = vld [vmem:[%s7493_s3 + $0x50] sm:$0xff]  ;;  %v6702_v25 = vpack.c.bf16 %v802_v16, %v798_v14  ;;  %v804_v28 = vld [vmem:[%s7493_s3 + $0x88] sm:$0xff]  ;;  %v6720_v32 = vpack.c.bf16 %v799_v23, %v795_v22 }
  0xc6   :  { %v801_v26 = vld [vmem:[%s7493_s3 + $0x70] sm:$0xff]  ;;  %v297_v27 = vpack.c.bf16 %v285_v18, %v283_v17  ;;  %v808_v29 = vld [vmem:[%s7493_s3 + $0xa8] sm:$0xff]  ;;  %v806_v30 = vld [vmem:[%s7493_s3 + $0x98] sm:$0xff] }
  0xc7   :  { %v810_v31 = vld [vmem:[%s7493_s3 + $0xb8] sm:$0xff]  ;;  %v282_v33 = vld [vmem:[%s7537_s13 + $0x20] sm:$0xff]  ;;  %v284_v34 = vld [vmem:[%s7537_s13 + $0x30] sm:$0xff] }
  0xc8   :  { %615 = vmatpush1.bf16.msra.mxu0 %v5775_v35  ;;  %688 = vmatpush1.bf16.msra.mxu1 %v5776_v36  ;;  %v803_v35 = vld [vmem:[%s7493_s3 + $0x80] sm:$0xff]  ;;  %v6733_v36 = vpack.c.bf16 %v801_v26, %v797_v24  ;;  %v805_v39 = vld [vmem:[%s7493_s3 + $0x90] sm:$0xff]  ;;  %v6748_v41 = vpack.c.bf16 %v810_v31, %v806_v30  ;;  %v814_v44 = vld [vmem:[%s7493_s3 + $0xd8] sm:$0xff] }
  0xc9   :  { %616 = vmatprep.subr.bf16.mxu0 %v5777_v37  ;;  %689 = vmatprep.subr.bf16.mxu1 %v5779_v38  ;;  %v6735_v37 = vpack.c.bf16 %v808_v29, %v804_v28  ;;  %v807_v38 = vld [vmem:[%s7493_s3 + $0xa0] sm:$0xff]  ;;  %v820_v58 = vld [vmem:[%s7493_s3 + $0x108] sm:$0xff]  ;;  %v822_v60 = vld [vmem:[%s7493_s3 + $0x118] sm:$0xff] }
  0xca   :  { %v824_v59 = vld [vmem:[%s7493_s3 + $0x128] sm:$0xff]  ;;  %v826_v61 = vld [vmem:[%s7493_s3 + $0x138] sm:$0xff]  ;;  %v286_v63 = vld [vmem:[%s7537_s13 + $0x40] sm:$0xff] }
  0xcb   :  { %v288_v0 = vld [vmem:[%s7537_s13 + $0x50] sm:$0xff]  ;;  %v6821_v4 = vpack.c.bf16 %v824_v59, %v820_v58  ;;  %v823_v9 = vld [vmem:[%s7493_s3 + $0x120] sm:$0xff]  ;;  %v6834_v13 = vpack.c.bf16 %v826_v61, %v822_v60  ;;  %v828_v14 = vld [vmem:[%s7493_s3 + $0x148] sm:$0xff] }
  0xcc   :  { %617 = vmatpush1.bf16.msra.mxu0 %v5781_v40  ;;  %690 = vmatpush1.bf16.msra.mxu1 %v5782_v42  ;;  %v809_v40 = vld [vmem:[%s7493_s3 + $0xb0] sm:$0xff]  ;;  %v812_v42 = vld [vmem:[%s7493_s3 + $0xc8] sm:$0xff]  ;;  %v830_v16 = vld [vmem:[%s7493_s3 + $0x158] sm:$0xff]  ;;  %v298_v17 = vpack.c.bf16 %v288_v0, %v286_v63 }
  0xcd   :  { %618 = vmatprep.subr.bf16.mxu0 %v5783_v43  ;;  %691 = vmatprep.subr.bf16.mxu1 %v5785_v45  ;;  %v816_v43 = vld [vmem:[%s7493_s3 + $0xe8] sm:$0xff]  ;;  %v296_v45 = vpack.c.bf16 %v284_v34, %v282_v33  ;;  %v6774_v50 = vpack.c.bf16 %v809_v40, %v805_v39  ;;  %v825_v12 = vld [vmem:[%s7493_s3 + $0x130] sm:$0xff]  ;;  %v834_v18 = vld [vmem:[%s7493_s3 + $0x178] sm:$0xff] }
  0xce   :  { %v6776_v51 = vpack.c.bf16 %v816_v43, %v812_v42  ;;  %v291_v22 = vld [vmem:[%s7537_s13 + $0x68] sm:$0xff]  ;;  %v293_v23 = vld [vmem:[%s7537_s13 + $0x78] sm:$0xff]  ;;  %v827_v28 = vld [vmem:[%s7493_s3 + $0x140] sm:$0xff]  ;;  %v6874_v31 = vpack.c.bf16 %v834_v18, %v830_v16  ;;  %v346_v18 = vlaneseq }
  0xcf   :  { %v831_v29 = vld [vmem:[%s7493_s3 + $0x160] sm:$0xff]  ;;  %v829_v30 = vld [vmem:[%s7493_s3 + $0x150] sm:$0xff]  ;;  %v301_v34 = vpack.c.bf16 %v293_v23, %v291_v22  ;;  %v838_v39 = vld [vmem:[%s7493_s3 + $0x198] sm:$0xff] }
  0xd0   :  { %619 = vmatpush1.bf16.msra.mxu0 %v5787_v46  ;;  %692 = vmatpush1.bf16.msra.mxu1 %v5788_v47  ;;  %v818_v46 = vld [vmem:[%s7493_s3 + $0xf8] sm:$0xff]  ;;  %v287_v47 = vld [vmem:[%s7537_s13 + $0x48] sm:$0xff]  ;;  %v833_v33 = vld [vmem:[%s7493_s3 + $0x170] sm:$0xff]  ;;  %v6892_v42 = vpack.c.bf16 %v831_v29, %v827_v28  ;;  %v7009_v22 = vshrl.u32 %v346_v18, 7 }
  0xd1   :  { %620 = vmatprep.subr.bf16.mxu0 %v5789_v48  ;;  %693 = vmatprep.subr.bf16.mxu1 %v5791_v49  ;;  %v289_v48 = vld [vmem:[%s7537_s13 + $0x58] sm:$0xff]  ;;  %v6770_v49 = vpack.c.bf16 %v807_v38, %v803_v35  ;;  %v6788_v55 = vpack.c.bf16 %v818_v46, %v814_v44  ;;  %v836_v35 = vld [vmem:[%s7493_s3 + $0x188] sm:$0xff]  ;;  %v290_v43 = vld [vmem:[%s7537_s13 + $0x60] sm:$0xff] }
  0xd2   :  { %v299_v57 = vpack.c.bf16 %v289_v48, %v287_v47  ;;  %v840_v38 = vld [vmem:[%s7493_s3 + $0x1a8] sm:$0xff]  ;;  %v842_v40 = vld [vmem:[%s7493_s3 + $0x1b8] sm:$0xff]  ;;  %v292_v44 = vld [vmem:[%s7537_s13 + $0x70] sm:$0xff]  ;;  %7538 = vst [vmem:[#allocation45_spill] sm:$0xff] %v7009_v22  ;;  %v7012_v23 = vsub.s32 2, %v7009_v22  ;;  %v7015_v28 = vsub.s32 0, %v7009_v22 }
  0xd3   :  { %v6904_v46 = vpack.c.bf16 %v840_v38, %v836_v35  ;;  %v835_v47 = vld [vmem:[%s7493_s3 + $0x180] sm:$0xff]  ;;  %v300_v58 = vpack.c.bf16 %v292_v44, %v290_v43  ;;  %v846_v59 = vld [vmem:[%s7493_s3 + $0x1d8] sm:$0xff]  ;;  %v7018_v29 = vsub.s32 3, %v7009_v22 }
  0xd4   :  { %621 = vmatpush1.bf16.msra.mxu0 %v5793_v52  ;;  %694 = vmatpush1.bf16.msra.mxu1 %v5794_v53  ;;  %v811_v52 = vld [vmem:[%s7493_s3 + $0xc0] sm:$0xff]  ;;  %v850_v60 = vld [vmem:[%s7493_s3 + $0x1f8] sm:$0xff]  ;;  %7539 = vst [vmem:[#allocation46_spill] sm:$0xff] %v7012_v23  ;;  %7540 = vst [vmem:[#allocation47_spill] sm:$0xff] %v7015_v28 }
  0xd5   :  { %4947 = vmatprep.subr.msk.bf16.mxu0 %vm589_vm1, %v4944_v54  ;;  %4952 = vmatprep.subr.msk.bf16.mxu1 %vm589_vm1, %v4946_v56  ;;  %v815_v53 = vld [vmem:[%s7493_s3 + $0xe0] sm:$0xff]  ;;  %v813_v54 = vld [vmem:[%s7493_s3 + $0xd0] sm:$0xff]  ;;  %7541 = vst [vmem:[#allocation48_spill] sm:$0xff] %v7018_v29 }
  0xd6   :  { %v817_v56 = vld [vmem:[%s7493_s3 + $0xf0] sm:$0xff]  ;;  %v6806_v62 = vpack.c.bf16 %v815_v53, %v811_v52  ;;  %v839_v48 = vld [vmem:[%s7493_s3 + $0x1a0] sm:$0xff]  ;;  %v6917_v53 = vpack.c.bf16 %v842_v40, %v838_v39 }
  0xd7   :  { %v6819_v3 = vpack.c.bf16 %v817_v56, %v813_v54  ;;  %v837_v52 = vld [vmem:[%s7493_s3 + $0x190] sm:$0xff]  ;;  %v844_v56 = vld [vmem:[%s7493_s3 + $0x1c8] sm:$0xff]  ;;  %v6936_v61 = vpack.c.bf16 %v839_v48, %v835_v47 }
  0xd8   :  { %623 = vmatpush1.bf16.msra.mxu0 %v591_v1  ;;  %696 = vmatpush1.bf16.msra.mxu1 %v597_v10  ;;  %v819_v1 = vld [vmem:[%s7493_s3 + $0x100] sm:$0xff]  ;;  %v821_v10 = vld [vmem:[%s7493_s3 + $0x110] sm:$0xff] }
  0xd9   :  { %5148 = vmatprep.subr.bf16.mxu0 %v6652_v2  ;;  %5180 = vmatprep.subr.bf16.mxu1 %v6665_v11  ;;  %v6856_v24 = vpack.c.bf16 %v823_v9, %v819_v1  ;;  %v6860_v26 = vpack.c.bf16 %v825_v12, %v821_v10  ;;  %v841_v54 = vld [vmem:[%s7493_s3 + $0x1b0] sm:$0xff]  ;;  %v843_v1 = vld [vmem:[%s7493_s3 + $0x1c0] sm:$0xff]  ;;  %v6951_v10 = vpack.c.bf16 %v850_v60, %v846_v59 }
  0xda   :  { %v6940_v63 = vpack.c.bf16 %v841_v54, %v837_v52  ;;  %v847_v9 = vld [vmem:[%s7493_s3 + $0x1e0] sm:$0xff]  ;;  %v845_v12 = vld [vmem:[%s7493_s3 + $0x1d0] sm:$0xff] }
  0xdb   :  { %635 = vmatmul.mubr.bf16.vlgmr.msra.gmra.mrb[0].mxu0 %v294_v15  ;;  %708 = vmatmul.mubr.bf16.vlgmr.msra.gmra.mrb[0].mxu1 %v294_v15  ;;  %v832_v15 = vld [vmem:[%s7493_s3 + $0x168] sm:$0xff] }
  0xdc   :  { %5150 = vmatpush1.bf16.msra.mxu0 %v6685_v19  ;;  %5182 = vmatpush1.bf16.msra.mxu1 %v6688_v20 }
  0xdd   :  { %5152 = vmatprep.subr.bf16.mxu0 %v6690_v21  ;;  %5184 = vmatprep.subr.bf16.mxu1 %v6702_v25 }
  0xde   :  { %4949 = vmatprep.mubr.msk.bf16.mxu0 %vm576_vm0, %v297_v27  ;;  %4954 = vmatprep.mubr.msk.bf16.mxu1 %vm576_vm0, %v297_v27  ;;  %v6862_v27 = vpack.c.bf16 %v832_v15, %v828_v14  ;;  %v849_v14 = vld [vmem:[%s7493_s3 + $0x1f0] sm:$0xff]  ;;  %v6960_v15 = vpack.c.bf16 %v847_v9, %v843_v1 }
  0xdf   :  { %v6964_v16 = vpack.c.bf16 %v849_v14, %v845_v12 }
  0xe0   :  { %5154 = vmatpush1.bf16.msra.mxu0 %v6720_v32  ;;  %5186 = vmatpush1.bf16.msra.mxu1 %v6733_v36 }
  0xe1   :  { %5156 = vmatprep.subr.bf16.mxu0 %v6735_v37  ;;  %5188 = vmatprep.subr.bf16.mxu1 %v6748_v41 }
  0xe3   :  { %645 = vmatmul.mubr.bf16.gmra.mrb[4].mxu0 %v296_v45  ;;  %718 = vmatmul.mubr.bf16.gmra.mrb[4].mxu1 %v296_v45  ;;  %v6902_v45 = vpack.c.bf16 %v833_v33, %v829_v30  ;;  %v344_v30 = vld [vmem:[%s7494_s4] sm:$0xf]  ;;  %v7024_v33 = vsub.s32 1, %v7009_v22 }
  0xe4   :  { %5158 = vmatpush1.bf16.msra.mxu0 %v6770_v49  ;;  %5190 = vmatpush1.bf16.msra.mxu1 %v6774_v50  ;;  %v7029_v35 = vrot.slane %v344_v30, %v7012_v23  ;;  %v349_v38 = vrot.slane %v344_v30, %v7015_v28  ;;  %v7033_v43 = vrot.slane %v344_v30, %v7018_v29 }
  0xe5   :  { %5160 = vmatprep.subr.bf16.mxu0 %v6776_v51  ;;  %5192 = vmatprep.subr.bf16.mxu1 %v6788_v55  ;;  %7542 = vst [vmem:[#allocation49_spill] sm:$0xff] %v7024_v33  ;;  %v353_v44 = vrot.slane %v344_v30, %v7024_v33 }
  0xe6   :  { %4950 = vmatprep.mubr.msk.bf16.mxu0 %vm576_vm0, %v299_v57  ;;  %4955 = vmatprep.mubr.msk.bf16.mxu1 %vm576_vm0, %v299_v57  ;;  %v848_v57 = vld [vmem:[%s7493_s3 + $0x1e8] sm:$0xff] }
  0xe7   :  { %v6942_v0 = vpack.c.bf16 %v848_v57, %v844_v56 }
  0xe8   :  { %5162 = vmatpush1.bf16.msra.mxu0 %v6806_v62  ;;  %5194 = vmatpush1.bf16.msra.mxu1 %v6819_v3 }
  0xe9   :  { %5164 = vmatprep.subr.bf16.mxu0 %v6821_v4  ;;  %5196 = vmatprep.subr.bf16.mxu1 %v6834_v13 }
  0xeb   :  { %655 = vmatmul.mubr.bf16.gmra.mrb[8].mxu0 %v298_v17  ;;  %728 = vmatmul.mubr.bf16.gmra.mrb[8].mxu1 %v298_v17  ;;  %v7512_v17 = vmov 0.0  }
  0xec   :  { %5166 = vmatpush1.bf16.msra.mxu0 %v6856_v24  ;;  %5198 = vmatpush1.bf16.msra.mxu1 %v6860_v26 }
  0xed   :  { %5168 = vmatprep.subr.bf16.mxu0 %v6862_v27  ;;  %5200 = vmatprep.subr.bf16.mxu1 %v6874_v31 }
  0xee   :  { %4951 = vmatprep.mubr.msk.bf16.mxu0 %vm576_vm0, %v301_v34  ;;  %4956 = vmatprep.mubr.msk.bf16.mxu1 %vm576_vm0, %v301_v34 }
  0xf0   :  { %5170 = vmatpush1.bf16.msra.mxu0 %v6892_v42  ;;  %5202 = vmatpush1.bf16.msra.mxu1 %v6902_v45 }
  0xf1   :  { %5172 = vmatprep.subr.bf16.mxu0 %v6904_v46  ;;  %5204 = vmatprep.subr.bf16.mxu1 %v6917_v53 }
  0xf3   :  { %665 = vmatmul.mubr.bf16.gmra.mrb[12].mxu0 %v300_v58  ;;  %738 = vmatmul.mubr.bf16.gmra.mrb[12].mxu1 %v300_v58 }
  0xf4   :  { %5174 = vmatpush1.bf16.msra.mxu0 %v6936_v61  ;;  %5206 = vmatpush1.bf16.msra.mxu1 %v6940_v63 }
  0xf5   :  { %5176 = vmatprep.subr.bf16.mxu0 %v6942_v0  ;;  %5208 = vmatprep.subr.bf16.mxu1 %v6951_v10 }
  0xf6   :  { %915 = vmatprep.mubr.f32.mxu0 %v7512_v17  ;;  %986 = vmatprep.mubr.f32.mxu1 %v7512_v17 }
  0xf8   :  { %5178 = vmatpush1.bf16.msra.mxu0 %v6960_v15  ;;  %5210 = vmatpush1.bf16.msra.mxu1 %v6964_v16 }
  0xf9   :  { %5212 = vmatprep.subr.bf16.mxu0 %v6652_v2  ;;  %5244 = vmatprep.subr.bf16.mxu1 %v6665_v11 }
  0xfb   :  { %916 = vmatmul.mubr.f32.vlgmr.msra.gmra.mrb[16].mxu0 %v7512_v17  ;;  %987 = vmatmul.mubr.f32.vlgmr.msra.gmra.mrb[16].mxu1 %v7512_v17 }
  0xfc   :  { %5214 = vmatpush1.bf16.msra.mxu0 %v6685_v19  ;;  %5246 = vmatpush1.bf16.msra.mxu1 %v6688_v20 }
  0xfd   :  { %5216 = vmatprep.subr.bf16.mxu0 %v6690_v21  ;;  %5248 = vmatprep.subr.bf16.mxu1 %v6702_v25 }
  0xfe   :  { %1092 = vmatprep.mubr.f32.mxu0 %v7512_v17  ;;  %1163 = vmatprep.mubr.f32.mxu1 %v7512_v17 }
 0x100   :  { %5218 = vmatpush1.bf16.msra.mxu0 %v6720_v32  ;;  %5250 = vmatpush1.bf16.msra.mxu1 %v6733_v36 }
 0x101   :  { %5220 = vmatprep.subr.bf16.mxu0 %v6735_v37  ;;  %5252 = vmatprep.subr.bf16.mxu1 %v6748_v41 }
 0x104   :  { %5222 = vmatpush1.bf16.msra.mxu0 %v6770_v49  ;;  %5254 = vmatpush1.bf16.msra.mxu1 %v6774_v50 }
 0x105   :  { %5224 = vmatprep.subr.bf16.mxu0 %v6776_v51  ;;  %5256 = vmatprep.subr.bf16.mxu1 %v6788_v55 }
 0x108   :  { %5226 = vmatpush1.bf16.msra.mxu0 %v6806_v62  ;;  %5258 = vmatpush1.bf16.msra.mxu1 %v6819_v3 }
 0x109   :  { %5228 = vmatprep.subr.bf16.mxu0 %v6821_v4  ;;  %5260 = vmatprep.subr.bf16.mxu1 %v6834_v13 }
 0x10c   :  { %5230 = vmatpush1.bf16.msra.mxu0 %v6856_v24  ;;  %5262 = vmatpush1.bf16.msra.mxu1 %v6860_v26 }
 0x10d   :  { %5232 = vmatprep.subr.bf16.mxu0 %v6862_v27  ;;  %5264 = vmatprep.subr.bf16.mxu1 %v6874_v31 }
 0x110   :  { %5234 = vmatpush1.bf16.msra.mxu0 %v6892_v42  ;;  %5266 = vmatpush1.bf16.msra.mxu1 %v6902_v45 }
 0x111   :  { %5236 = vmatprep.subr.bf16.mxu0 %v6904_v46  ;;  %5268 = vmatprep.subr.bf16.mxu1 %v6917_v53 }
 0x114   :  { %5238 = vmatpush1.bf16.msra.mxu0 %v6936_v61  ;;  %5270 = vmatpush1.bf16.msra.mxu1 %v6940_v63 }
 0x115   :  { %5240 = vmatprep.subr.bf16.mxu0 %v6942_v0  ;;  %5272 = vmatprep.subr.bf16.mxu1 %v6951_v10 }
 0x118   :  { %5242 = vmatpush1.bf16.msra.mxu0 %v6960_v15  ;;  %5274 = vmatpush1.bf16.msra.mxu1 %v6964_v16 }
 0x119   :  { %5276 = vmatprep.subr.bf16.mxu0 %v6652_v2  ;;  %5308 = vmatprep.subr.bf16.mxu1 %v6665_v11 }
 0x1ae   :  { %v7026_v34 = vpop.f32.mrb[0].mxu0  ;;  %v709_v40 = vpop.f32.mrb[0].mxu1 }
 0x1af   :  { %v638_v39 = vpop.f32.mrb[1].mxu0  ;;  %v711_v48 = vpop.f32.mrb[1].mxu1 }
 0x1b0   :  { %v640_v47 = vpop.f32.mrb[2].mxu0  ;;  %v713_v56 = vpop.f32.mrb[2].mxu1 }
 0x1b1   :  { %v7036_v52 = vadd.f32 %v640_v47, %v349_v38  ;;  %v642_v54 = vpop.f32.mrb[3].mxu0  ;;  %v7041_v58 = vadd.f32 %v713_v56, %v7029_v35  ;;  %v715_v59 = vpop.f32.mrb[3].mxu1 }
 0x1b2   :  { %v7038_v57 = vadd.f32 %v642_v54, %v353_v44  ;;  %v7044_v60 = vadd.f32 %v715_v59, %v7033_v43 }
 0x1b6   :  { %v646_v1 = vpop.f32.mrb[4].mxu0  ;;  %v719_v14 = vpop.f32.mrb[4].mxu1 }
 0x1b7   :  { %v7046_v9 = vadd.f32 %v646_v1, %v349_v38  ;;  %v648_v12 = vpop.f32.mrb[5].mxu0  ;;  %v7051_v47 = vadd.f32 %v719_v14, %v7029_v35  ;;  %v721_v54 = vpop.f32.mrb[5].mxu1 }
 0x1b8   :  { %v7048_v18 = vadd.f32 %v648_v12, %v353_v44  ;;  %v650_v30 = vpop.f32.mrb[6].mxu0  ;;  %v7056_v22 = vadd.f32 %v721_v54, %v7033_v43  ;;  %v723_v59 = vpop.f32.mrb[6].mxu1 }
 0x1b9   :  { %v7053_v17 = vadd.f32 %v650_v30, %v349_v38  ;;  %v652_v56 = vpop.f32.mrb[7].mxu0  ;;  %v7061_v1 = vadd.f32 %v723_v59, %v7029_v35  ;;  %v725_v33 = vpop.f32.mrb[7].mxu1 }
 0x1ba   :  { %v7058_v29 = vadd.f32 %v652_v56, %v353_v44  ;;  %v7064_v12 = vadd.f32 %v725_v33, %v7033_v43 }
 0x1bb   :  { %7543 = vst [vmem:[#allocation50_spill] sm:$0xff] %v7053_v17  ;;  %7545 = vst [vmem:[#allocation52_spill] sm:$0xff] %v7061_v1 }
 0x1bc   :  { %7544 = vst [vmem:[#allocation51_spill] sm:$0xff] %v7058_v29  ;;  %7546 = vst [vmem:[#allocation53_spill] sm:$0xff] %v7064_v12 }
 0x1be   :  { %v656_v23 = vpop.f32.mrb[8].mxu0  ;;  %v729_v30 = vpop.f32.mrb[8].mxu1 }
 0x1bf   :  { %v7066_v14 = vadd.f32 %v656_v23, %v349_v38  ;;  %v658_v28 = vpop.f32.mrb[9].mxu0  ;;  %v7071_v54 = vadd.f32 %v729_v30, %v7029_v35  ;;  %v731_v56 = vpop.f32.mrb[9].mxu1 }
 0x1c0   :  { %v7068_v5 = vadd.f32 %v658_v28, %v353_v44  ;;  %v660_v7 = vpop.f32.mrb[10].mxu0  ;;  %v7076_v6 = vadd.f32 %v731_v56, %v7033_v43  ;;  %v733_v33 = vpop.f32.mrb[10].mxu1 }
 0x1c1   :  { %7547 = vst [vmem:[#allocation54_spill] sm:$0xff] %v7066_v14  ;;  %7549 = vst [vmem:[#allocation56_spill] sm:$0xff] %v7071_v54  ;;  %v7073_v8 = vadd.f32 %v660_v7, %v349_v38  ;;  %v662_v59 = vpop.f32.mrb[11].mxu0  ;;  %v7081_v23 = vadd.f32 %v733_v33, %v7029_v35  ;;  %v735_v14 = vpop.f32.mrb[11].mxu1 }
 0x1c2   :  { %7548 = vst [vmem:[#allocation55_spill] sm:$0xff] %v7068_v5  ;;  %7551 = vst [vmem:[#allocation58_spill] sm:$0xff] %v7076_v6  ;;  %v7078_v12 = vadd.f32 %v662_v59, %v353_v44  ;;  %v7084_v28 = vadd.f32 %v735_v14, %v7033_v43 }
 0x1c3   :  { %7550 = vst [vmem:[#allocation57_spill] sm:$0xff] %v7073_v8  ;;  %7553 = vst [vmem:[#allocation60_spill] sm:$0xff] %v7081_v23 }
 0x1c4   :  { %7552 = vst [vmem:[#allocation59_spill] sm:$0xff] %v7078_v12  ;;  %7554 = vst [vmem:[#allocation61_spill] sm:$0xff] %v7084_v28 }
 0x1c6   :  { %v666_v5 = vpop.f32.mrb[12].mxu0  ;;  %v739_v7 = vpop.f32.mrb[12].mxu1 }
 0x1c7   :  { %v7086_v30 = vadd.f32 %v666_v5, %v349_v38  ;;  %v668_v54 = vpop.f32.mrb[13].mxu0  ;;  %v7091_v56 = vadd.f32 %v739_v7, %v7029_v35  ;;  %v741_v59 = vpop.f32.mrb[13].mxu1  ;;  %v637_v7 = vadd.f32 %v7026_v34, %v349_v38 }
 0x1c8   :  { %v7088_v8 = vadd.f32 %v668_v54, %v353_v44  ;;  %v670_v29 = vpop.f32.mrb[14].mxu0  ;;  %v7096_v23 = vadd.f32 %v741_v59, %v7033_v43  ;;  %v743_v14 = vpop.f32.mrb[14].mxu1 }
 0x1c9   :  { %7555 = vst [vmem:[#allocation62_spill] sm:$0xff] %v7086_v30  ;;  %7557 = vst [vmem:[#allocation64_spill] sm:$0xff] %v7091_v56  ;;  %v7093_v12 = vadd.f32 %v670_v29, %v349_v38  ;;  %v672_v33 = vpop.f32.mrb[15].mxu0  ;;  %v7101_v5 = vadd.f32 %v743_v14, %v7029_v35  ;;  %v745_v30 = vpop.f32.mrb[15].mxu1  ;;  %v710_v29 = vadd.f32 %v709_v40, %v7029_v35 }
 0x1ca   :  { %7556 = vst [vmem:[#allocation63_spill] sm:$0xff] %v7088_v8  ;;  %7559 = vst [vmem:[#allocation66_spill] sm:$0xff] %v7096_v23  ;;  %v7098_v28 = vadd.f32 %v672_v33, %v353_v44  ;;  %v7104_v54 = vadd.f32 %v745_v30, %v7033_v43  ;;  %v639_v8 = vadd.f32 %v638_v39, %v353_v44 }
 0x1cb   :  { %7558 = vst [vmem:[#allocation65_spill] sm:$0xff] %v7093_v12  ;;  %7561 = vst [vmem:[#allocation68_spill] sm:$0xff] %v7101_v5  ;;  %v712_v56 = vadd.f32 %v711_v48, %v7033_v43 }
 0x1cc   :  { %7560 = vst [vmem:[#allocation67_spill] sm:$0xff] %v7098_v28  ;;  %7562 = vst [vmem:[#allocation69_spill] sm:$0xff] %v7104_v54 }
 0x1ce   :  { %v917_v12 = vpop.f32.mrb[16].mxu0  ;;  %v988_v23 = vpop.f32.mrb[16].mxu1 }
 0x1cf   :  { %v993_v59 = vadd.f32 %v917_v12, %v637_v7  ;;  %v919_v6 = vpop.f32.mrb[17].mxu0  ;;  %v995_v33 = vadd.f32 %v988_v23, %v710_v29  ;;  %v990_v1 = vpop.f32.mrb[17].mxu1 }
 0x1d0   :  { %v994_v28 = vadd.f32 %v919_v6, %v639_v8  ;;  %v996_v5 = vadd.f32 %v990_v1, %v712_v56 }
 0x1d1   :  { %v4957_v14 = vmul.f32 -1.442695, %v993_v59 }
 0x1d2   :  { %v4958_v17 = vmul.f32 -1.442695, %v994_v28  ;;  %v4959_v30 = vmul.f32 -1.442695, %v996_v5  ;;  %v7563_v28 = vmov 0.0  }
 0x1d3   :  { %5799 = vpow2.f32 %v4957_v14 }
 0x1d4   :  { %5801 = vpow2.f32 %v4958_v17 }
 0x1d5   :  { %5803 = vpow2.f32 %v4959_v30 }
 0x1d6   :  { %5805 = vtanh.f32 %v995_v33 }
 0x1dd   :  { %v5800_v54 = vpop.eup %5799 }
 0x1de   :  { %v5802_v34 = vpop.eup %5801  ;;  %v1000_v38 = vadd.f32 1.0, %v5800_v54 }
 0x1df   :  { %v1006_v35 = vadd.f32 1.0, %v5802_v34  ;;  %v5804_v39 = vpop.eup %5803 }
 0x1e0   :  { %5807 = vrcp.f32 %v1000_v38  ;;  %v5806_v40 = vpop.eup %5805  ;;  %v1013_v8 = vadd.f32 1.0, %v5804_v39 }
 0x1e1   :  { %5809 = vrcp.f32 %v1006_v35 }
 0x1e2   :  { %5811 = vrcp.f32 %v1013_v8 }
 0x1ea   :  { %v5808_v43 = vpop.eup %5807 }
 0x1eb   :  { %v5810_v44 = vpop.eup %5809  ;;  %v1017_v6 = vmul.f32 %v5808_v43, %v5806_v40 }
 0x1ec   :  { %v1016_v48 = vmul.f32 0.0, %v5810_v44  ;;  %v5812_v17 = vpop.eup %5811 }
 0x1ee   :  { %v7109_v1 = vadd.f32 %v1017_v6, %v1016_v48 }
 0x1f0   :  { %5813 = vtanh.f32 %v7109_v1 }
 0x1fa   :  { %v5814_v12 = vpop.eup %5813 }
 0x1fb   :  { %v1020_v23 = vmul.f32 %v5814_v12, %v5812_v17 }
 0x1fd   :  { %1093 = vmatmul.mubr.f32.vlgmr.msra.gmra.mrb[18].mxu0 %v1020_v23  ;;  %1164 = vmatmul.mubr.f32.vlgmr.msra.gmra.mrb[18].mxu1 %v1020_v23 }
 0x1fe   :  { %5278 = vmatpush1.bf16.msra.mxu0 %v6685_v19  ;;  %5310 = vmatpush1.bf16.msra.mxu1 %v6688_v20 }
 0x1ff   :  { %5280 = vmatprep.subr.bf16.mxu0 %v6690_v21  ;;  %5312 = vmatprep.subr.bf16.mxu1 %v6702_v25 }
 0x200   :  { %1269 = vmatprep.mubr.f32.mxu0 %v7563_v28  ;;  %1340 = vmatprep.mubr.f32.mxu1 %v7563_v28 }
 0x202   :  { %5282 = vmatpush1.bf16.msra.mxu0 %v6720_v32  ;;  %5314 = vmatpush1.bf16.msra.mxu1 %v6733_v36 }
 0x203   :  { %5284 = vmatprep.subr.bf16.mxu0 %v6735_v37  ;;  %5316 = vmatprep.subr.bf16.mxu1 %v6748_v41 }
 0x206   :  { %5286 = vmatpush1.bf16.msra.mxu0 %v6770_v49  ;;  %5318 = vmatpush1.bf16.msra.mxu1 %v6774_v50 }
 0x207   :  { %5288 = vmatprep.subr.bf16.mxu0 %v6776_v51  ;;  %5320 = vmatprep.subr.bf16.mxu1 %v6788_v55 }
 0x20a   :  { %5290 = vmatpush1.bf16.msra.mxu0 %v6806_v62  ;;  %5322 = vmatpush1.bf16.msra.mxu1 %v6819_v3 }
 0x20b   :  { %5292 = vmatprep.subr.bf16.mxu0 %v6821_v4  ;;  %5324 = vmatprep.subr.bf16.mxu1 %v6834_v13 }
 0x20e   :  { %5294 = vmatpush1.bf16.msra.mxu0 %v6856_v24  ;;  %5326 = vmatpush1.bf16.msra.mxu1 %v6860_v26 }
 0x20f   :  { %5296 = vmatprep.subr.bf16.mxu0 %v6862_v27  ;;  %5328 = vmatprep.subr.bf16.mxu1 %v6874_v31 }
 0x212   :  { %5298 = vmatpush1.bf16.msra.mxu0 %v6892_v42  ;;  %5330 = vmatpush1.bf16.msra.mxu1 %v6902_v45 }
 0x213   :  { %5300 = vmatprep.subr.bf16.mxu0 %v6904_v46  ;;  %5332 = vmatprep.subr.bf16.mxu1 %v6917_v53 }
 0x216   :  { %5302 = vmatpush1.bf16.msra.mxu0 %v6936_v61  ;;  %5334 = vmatpush1.bf16.msra.mxu1 %v6940_v63 }
 0x217   :  { %5304 = vmatprep.subr.bf16.mxu0 %v6942_v0  ;;  %5336 = vmatprep.subr.bf16.mxu1 %v6951_v10 }
 0x21a   :  { %5306 = vmatpush1.bf16.msra.mxu0 %v6960_v15  ;;  %5338 = vmatpush1.bf16.msra.mxu1 %v6964_v16 }
 0x21b   :  { %5340 = vmatprep.subr.bf16.mxu0 %v6652_v2  ;;  %5372 = vmatprep.subr.bf16.mxu1 %v6665_v11 }
 0x2d0   :  { %v1094_v56 = vpop.f32.mrb[18].mxu0  ;;  %v1165_v5 = vpop.f32.mrb[18].mxu1 }
 0x2d1   :  { %v1170_v54 = vadd.f32 %v1094_v56, %v7036_v52  ;;  %v1172_v7 = vadd.f32 %v1165_v5, %v7041_v58  ;;  %v1096_v29 = vpop.f32.mrb[19].mxu0  ;;  %v1167_v59 = vpop.f32.mrb[19].mxu1 }
 0x2d2   :  { %v1171_v33 = vadd.f32 %v1096_v29, %v7038_v57  ;;  %v1173_v14 = vadd.f32 %v1167_v59, %v7044_v60 }
 0x2d3   :  { %v4960_v30 = vmul.f32 -1.442695, %v1170_v54 }
 0x2d4   :  { %v4961_v34 = vmul.f32 -1.442695, %v1171_v33  ;;  %v4962_v38 = vmul.f32 -1.442695, %v1173_v14 }
 0x2d5   :  { %5815 = vpow2.f32 %v4960_v30 }
 0x2d6   :  { %5817 = vpow2.f32 %v4961_v34 }
 0x2d7   :  { %5819 = vpow2.f32 %v4962_v38 }
 0x2d8   :  { %5821 = vtanh.f32 %v1172_v7 }
 0x2df   :  { %v5816_v35 = vpop.eup %5815 }
 0x2e0   :  { %v5818_v39 = vpop.eup %5817  ;;  %v1177_v40 = vadd.f32 1.0, %v5816_v35 }
 0x2e1   :  { %v1183_v43 = vadd.f32 1.0, %v5818_v39  ;;  %v5820_v52 = vpop.eup %5819 }
 0x2e2   :  { %5823 = vrcp.f32 %v1177_v40  ;;  %v5822_v58 = vpop.eup %5821  ;;  %v1190_v8 = vadd.f32 1.0, %v5820_v52 }
 0x2e3   :  { %5825 = vrcp.f32 %v1183_v43 }
 0x2e4   :  { %5827 = vrcp.f32 %v1190_v8 }
 0x2ec   :  { %v5824_v44 = vpop.eup %5823 }
 0x2ed   :  { %v5826_v6 = vpop.eup %5825  ;;  %v1194_v57 = vmul.f32 %v5824_v44, %v5822_v58 }
 0x2ee   :  { %v1193_v60 = vmul.f32 %v5826_v6, %v7109_v1  ;;  %v5828_v17 = vpop.eup %5827 }
 0x2f0   :  { %v7151_v48 = vadd.f32 %v1194_v57, %v1193_v60 }
 0x2f2   :  { %5829 = vtanh.f32 %v7151_v48 }
 0x2fc   :  { %v5830_v12 = vpop.eup %5829 }
 0x2fd   :  { %v1197_v23 = vmul.f32 %v5830_v12, %v5828_v17  ;;  %v7564_v17 = vld [vmem:[#allocation50_spill] sm:$0xff] }
 0x2ff   :  { %1270 = vmatmul.mubr.f32.vlgmr.msra.gmra.mrb[20].mxu0 %v1197_v23  ;;  %1341 = vmatmul.mubr.f32.vlgmr.msra.gmra.mrb[20].mxu1 %v1197_v23  ;;  %v7565_v23 = vld [vmem:[#allocation52_spill] sm:$0xff] }
 0x300   :  { %5342 = vmatpush1.bf16.msra.mxu0 %v6685_v19  ;;  %5374 = vmatpush1.bf16.msra.mxu1 %v6688_v20 }
 0x301   :  { %5344 = vmatprep.subr.bf16.mxu0 %v6690_v21  ;;  %5376 = vmatprep.subr.bf16.mxu1 %v6702_v25 }
 0x302   :  { %1446 = vmatprep.mubr.f32.mxu0 %v7563_v28  ;;  %1517 = vmatprep.mubr.f32.mxu1 %v7563_v28 }
 0x304   :  { %5346 = vmatpush1.bf16.msra.mxu0 %v6720_v32  ;;  %5378 = vmatpush1.bf16.msra.mxu1 %v6733_v36 }
 0x305   :  { %5348 = vmatprep.subr.bf16.mxu0 %v6735_v37  ;;  %5380 = vmatprep.subr.bf16.mxu1 %v6748_v41 }
 0x308   :  { %5350 = vmatpush1.bf16.msra.mxu0 %v6770_v49  ;;  %5382 = vmatpush1.bf16.msra.mxu1 %v6774_v50 }
 0x309   :  { %5352 = vmatprep.subr.bf16.mxu0 %v6776_v51  ;;  %5384 = vmatprep.subr.bf16.mxu1 %v6788_v55 }
 0x30c   :  { %5354 = vmatpush1.bf16.msra.mxu0 %v6806_v62  ;;  %5386 = vmatpush1.bf16.msra.mxu1 %v6819_v3 }
 0x30d   :  { %5356 = vmatprep.subr.bf16.mxu0 %v6821_v4  ;;  %5388 = vmatprep.subr.bf16.mxu1 %v6834_v13 }
 0x310   :  { %5358 = vmatpush1.bf16.msra.mxu0 %v6856_v24  ;;  %5390 = vmatpush1.bf16.msra.mxu1 %v6860_v26 }
 0x311   :  { %5360 = vmatprep.subr.bf16.mxu0 %v6862_v27  ;;  %5392 = vmatprep.subr.bf16.mxu1 %v6874_v31 }
 0x314   :  { %5362 = vmatpush1.bf16.msra.mxu0 %v6892_v42  ;;  %5394 = vmatpush1.bf16.msra.mxu1 %v6902_v45 }
 0x315   :  { %5364 = vmatprep.subr.bf16.mxu0 %v6904_v46  ;;  %5396 = vmatprep.subr.bf16.mxu1 %v6917_v53 }
 0x318   :  { %5366 = vmatpush1.bf16.msra.mxu0 %v6936_v61  ;;  %5398 = vmatpush1.bf16.msra.mxu1 %v6940_v63 }
 0x319   :  { %5368 = vmatprep.subr.bf16.mxu0 %v6942_v0  ;;  %5400 = vmatprep.subr.bf16.mxu1 %v6951_v10 }
 0x31c   :  { %5370 = vmatpush1.bf16.msra.mxu0 %v6960_v15  ;;  %5402 = vmatpush1.bf16.msra.mxu1 %v6964_v16 }
 0x31d   :  { %5404 = vmatprep.subr.bf16.mxu0 %v6652_v2  ;;  %5436 = vmatprep.subr.bf16.mxu1 %v6665_v11 }
 0x3d2   :  { %v1271_v1 = vpop.f32.mrb[20].mxu0  ;;  %v1342_v56 = vpop.f32.mrb[20].mxu1 }
 0x3d3   :  { %v1347_v5 = vadd.f32 %v1271_v1, %v7046_v9  ;;  %v1349_v54 = vadd.f32 %v1342_v56, %v7051_v47  ;;  %v1273_v7 = vpop.f32.mrb[21].mxu0  ;;  %v1344_v29 = vpop.f32.mrb[21].mxu1 }
 0x3d4   :  { %v1348_v59 = vadd.f32 %v1273_v7, %v7048_v18  ;;  %v1350_v33 = vadd.f32 %v1344_v29, %v7056_v22  ;;  %v7567_v29 = vld [vmem:[#allocation53_spill] sm:$0xff] }
 0x3d5   :  { %v4963_v14 = vmul.f32 -1.442695, %v1347_v5 }
 0x3d6   :  { %v4964_v30 = vmul.f32 -1.442695, %v1348_v59  ;;  %v4965_v34 = vmul.f32 -1.442695, %v1350_v33 }
 0x3d7   :  { %5831 = vpow2.f32 %v4963_v14 }
 0x3d8   :  { %5833 = vpow2.f32 %v4964_v30 }
 0x3d9   :  { %5835 = vpow2.f32 %v4965_v34 }
 0x3da   :  { %5837 = vtanh.f32 %v1349_v54  ;;  %v7566_v54 = vld [vmem:[#allocation51_spill] sm:$0xff] }
 0x3e1   :  { %v5832_v38 = vpop.eup %5831 }
 0x3e2   :  { %v5834_v35 = vpop.eup %5833  ;;  %v1354_v39 = vadd.f32 1.0, %v5832_v38 }
 0x3e3   :  { %v1360_v40 = vadd.f32 1.0, %v5834_v35  ;;  %v5836_v9 = vpop.eup %5835 }
 0x3e4   :  { %5839 = vrcp.f32 %v1354_v39  ;;  %v5838_v47 = vpop.eup %5837  ;;  %v1367_v58 = vadd.f32 1.0, %v5836_v9 }
 0x3e5   :  { %5841 = vrcp.f32 %v1360_v40 }
 0x3e6   :  { %5843 = vrcp.f32 %v1367_v58 }
 0x3ee   :  { %v5840_v43 = vpop.eup %5839 }
 0x3ef   :  { %v5842_v52 = vpop.eup %5841  ;;  %v1371_v18 = vmul.f32 %v5840_v43, %v5838_v47 }
 0x3f0   :  { %v1370_v22 = vmul.f32 %v5842_v52, %v7151_v48  ;;  %v5844_v6 = vpop.eup %5843 }
 0x3f2   :  { %v7193_v44 = vadd.f32 %v1371_v18, %v1370_v22 }
 0x3f4   :  { %5845 = vtanh.f32 %v7193_v44 }
 0x3fe   :  { %v5846_v57 = vpop.eup %5845 }
 0x3ff   :  { %v1374_v8 = vmul.f32 %v5846_v57, %v5844_v6 }
 0x401   :  { %1447 = vmatmul.mubr.f32.vlgmr.msra.gmra.mrb[22].mxu0 %v1374_v8  ;;  %1518 = vmatmul.mubr.f32.vlgmr.msra.gmra.mrb[22].mxu1 %v1374_v8 }
 0x402   :  { %5406 = vmatpush1.bf16.msra.mxu0 %v6685_v19  ;;  %5438 = vmatpush1.bf16.msra.mxu1 %v6688_v20 }
 0x403   :  { %5408 = vmatprep.subr.bf16.mxu0 %v6690_v21  ;;  %5440 = vmatprep.subr.bf16.mxu1 %v6702_v25 }
 0x404   :  { %1623 = vmatprep.mubr.f32.mxu0 %v7563_v28  ;;  %1694 = vmatprep.mubr.f32.mxu1 %v7563_v28 }
 0x406   :  { %5410 = vmatpush1.bf16.msra.mxu0 %v6720_v32  ;;  %5442 = vmatpush1.bf16.msra.mxu1 %v6733_v36 }
 0x407   :  { %5412 = vmatprep.subr.bf16.mxu0 %v6735_v37  ;;  %5444 = vmatprep.subr.bf16.mxu1 %v6748_v41 }
 0x40a   :  { %5414 = vmatpush1.bf16.msra.mxu0 %v6770_v49  ;;  %5446 = vmatpush1.bf16.msra.mxu1 %v6774_v50 }
 0x40b   :  { %5416 = vmatprep.subr.bf16.mxu0 %v6776_v51  ;;  %5448 = vmatprep.subr.bf16.mxu1 %v6788_v55 }
 0x40e   :  { %5418 = vmatpush1.bf16.msra.mxu0 %v6806_v62  ;;  %5450 = vmatpush1.bf16.msra.mxu1 %v6819_v3 }
 0x40f   :  { %5420 = vmatprep.subr.bf16.mxu0 %v6821_v4  ;;  %5452 = vmatprep.subr.bf16.mxu1 %v6834_v13 }
 0x412   :  { %5422 = vmatpush1.bf16.msra.mxu0 %v6856_v24  ;;  %5454 = vmatpush1.bf16.msra.mxu1 %v6860_v26 }
 0x413   :  { %5424 = vmatprep.subr.bf16.mxu0 %v6862_v27  ;;  %5456 = vmatprep.subr.bf16.mxu1 %v6874_v31 }
 0x416   :  { %5426 = vmatpush1.bf16.msra.mxu0 %v6892_v42  ;;  %5458 = vmatpush1.bf16.msra.mxu1 %v6902_v45 }
 0x417   :  { %5428 = vmatprep.subr.bf16.mxu0 %v6904_v46  ;;  %5460 = vmatprep.subr.bf16.mxu1 %v6917_v53 }
 0x41a   :  { %5430 = vmatpush1.bf16.msra.mxu0 %v6936_v61  ;;  %5462 = vmatpush1.bf16.msra.mxu1 %v6940_v63 }
 0x41b   :  { %5432 = vmatprep.subr.bf16.mxu0 %v6942_v0  ;;  %5464 = vmatprep.subr.bf16.mxu1 %v6951_v10 }
 0x41e   :  { %5434 = vmatpush1.bf16.msra.mxu0 %v6960_v15  ;;  %5466 = vmatpush1.bf16.msra.mxu1 %v6964_v16 }
 0x41f   :  { %5468 = vmatprep.subr.bf16.mxu0 %v6652_v2  ;;  %5500 = vmatprep.subr.bf16.mxu1 %v6665_v11 }
 0x4d4   :  { %v1448_v60 = vpop.f32.mrb[22].mxu0  ;;  %v1519_v48 = vpop.f32.mrb[22].mxu1 }
 0x4d5   :  { %v1524_v12 = vadd.f32 %v1448_v60, %v7564_v17  ;;  %v1526_v1 = vadd.f32 %v1519_v48, %v7565_v23  ;;  %v1450_v56 = vpop.f32.mrb[23].mxu0  ;;  %v1521_v5 = vpop.f32.mrb[23].mxu1  ;;  %v7568_v48 = vld [vmem:[#allocation54_spill] sm:$0xff] }
 0x4d6   :  { %v1525_v7 = vadd.f32 %v1450_v56, %v7566_v54  ;;  %v1527_v59 = vadd.f32 %v1521_v5, %v7567_v29  ;;  %v7570_v5 = vld [vmem:[#allocation55_spill] sm:$0xff] }
 0x4d7   :  { %v4966_v33 = vmul.f32 -1.442695, %v1524_v12  ;;  %v7569_v12 = vld [vmem:[#allocation56_spill] sm:$0xff] }
 0x4d8   :  { %v4967_v14 = vmul.f32 -1.442695, %v1525_v7  ;;  %v4968_v30 = vmul.f32 -1.442695, %v1527_v59  ;;  %v7571_v7 = vld [vmem:[#allocation58_spill] sm:$0xff] }
 0x4d9   :  { %5847 = vpow2.f32 %v4966_v33 }
 0x4da   :  { %5849 = vpow2.f32 %v4967_v14 }
 0x4db   :  { %5851 = vpow2.f32 %v4968_v30 }
 0x4dc   :  { %5853 = vtanh.f32 %v1526_v1 }
 0x4e3   :  { %v5848_v34 = vpop.eup %5847 }
 0x4e4   :  { %v5850_v38 = vpop.eup %5849  ;;  %v1531_v35 = vadd.f32 1.0, %v5848_v34 }
 0x4e5   :  { %v1537_v39 = vadd.f32 1.0, %v5850_v38  ;;  %v5852_v40 = vpop.eup %5851 }
 0x4e6   :  { %5855 = vrcp.f32 %v1531_v35  ;;  %v5854_v9 = vpop.eup %5853  ;;  %v1544_v18 = vadd.f32 1.0, %v5852_v40 }
 0x4e7   :  { %5857 = vrcp.f32 %v1537_v39 }
 0x4e8   :  { %5859 = vrcp.f32 %v1544_v18 }
 0x4f0   :  { %v5856_v47 = vpop.eup %5855 }
 0x4f1   :  { %v5858_v43 = vpop.eup %5857  ;;  %v1548_v52 = vmul.f32 %v5856_v47, %v5854_v9 }
 0x4f2   :  { %v1547_v58 = vmul.f32 %v5858_v43, %v7193_v44  ;;  %v5860_v6 = vpop.eup %5859 }
 0x4f4   :  { %v7235_v22 = vadd.f32 %v1548_v52, %v1547_v58 }
 0x4f6   :  { %5861 = vtanh.f32 %v7235_v22 }
 0x500   :  { %v5862_v57 = vpop.eup %5861 }
 0x501   :  { %v1551_v8 = vmul.f32 %v5862_v57, %v5860_v6 }
 0x503   :  { %1624 = vmatmul.mubr.f32.vlgmr.msra.gmra.mrb[24].mxu0 %v1551_v8  ;;  %1695 = vmatmul.mubr.f32.vlgmr.msra.gmra.mrb[24].mxu1 %v1551_v8 }
 0x504   :  { %5470 = vmatpush1.bf16.msra.mxu0 %v6685_v19  ;;  %5502 = vmatpush1.bf16.msra.mxu1 %v6688_v20 }
 0x505   :  { %5472 = vmatprep.subr.bf16.mxu0 %v6690_v21  ;;  %5504 = vmatprep.subr.bf16.mxu1 %v6702_v25 }
 0x506   :  { %1800 = vmatprep.mubr.f32.mxu0 %v7563_v28  ;;  %1871 = vmatprep.mubr.f32.mxu1 %v7563_v28 }
 0x508   :  { %5474 = vmatpush1.bf16.msra.mxu0 %v6720_v32  ;;  %5506 = vmatpush1.bf16.msra.mxu1 %v6733_v36 }
 0x509   :  { %5476 = vmatprep.subr.bf16.mxu0 %v6735_v37  ;;  %5508 = vmatprep.subr.bf16.mxu1 %v6748_v41 }
 0x50c   :  { %5478 = vmatpush1.bf16.msra.mxu0 %v6770_v49  ;;  %5510 = vmatpush1.bf16.msra.mxu1 %v6774_v50 }
 0x50d   :  { %5480 = vmatprep.subr.bf16.mxu0 %v6776_v51  ;;  %5512 = vmatprep.subr.bf16.mxu1 %v6788_v55 }
 0x510   :  { %5482 = vmatpush1.bf16.msra.mxu0 %v6806_v62  ;;  %5514 = vmatpush1.bf16.msra.mxu1 %v6819_v3 }
 0x511   :  { %5484 = vmatprep.subr.bf16.mxu0 %v6821_v4  ;;  %5516 = vmatprep.subr.bf16.mxu1 %v6834_v13 }
 0x514   :  { %5486 = vmatpush1.bf16.msra.mxu0 %v6856_v24  ;;  %5518 = vmatpush1.bf16.msra.mxu1 %v6860_v26 }
 0x515   :  { %5488 = vmatprep.subr.bf16.mxu0 %v6862_v27  ;;  %5520 = vmatprep.subr.bf16.mxu1 %v6874_v31 }
 0x518   :  { %5490 = vmatpush1.bf16.msra.mxu0 %v6892_v42  ;;  %5522 = vmatpush1.bf16.msra.mxu1 %v6902_v45 }
 0x519   :  { %5492 = vmatprep.subr.bf16.mxu0 %v6904_v46  ;;  %5524 = vmatprep.subr.bf16.mxu1 %v6917_v53 }
 0x51c   :  { %5494 = vmatpush1.bf16.msra.mxu0 %v6936_v61  ;;  %5526 = vmatpush1.bf16.msra.mxu1 %v6940_v63 }
 0x51d   :  { %5496 = vmatprep.subr.bf16.mxu0 %v6942_v0  ;;  %5528 = vmatprep.subr.bf16.mxu1 %v6951_v10 }
 0x520   :  { %5498 = vmatpush1.bf16.msra.mxu0 %v6960_v15  ;;  %5530 = vmatpush1.bf16.msra.mxu1 %v6964_v16 }
 0x521   :  { %5532 = vmatprep.subr.bf16.mxu0 %v6652_v2  ;;  %5564 = vmatprep.subr.bf16.mxu1 %v6665_v11 }
 0x5d6   :  { %v1625_v44 = vpop.f32.mrb[24].mxu0  ;;  %v1696_v60 = vpop.f32.mrb[24].mxu1 }
 0x5d7   :  { %v1701_v17 = vadd.f32 %v1625_v44, %v7568_v48  ;;  %v1703_v23 = vadd.f32 %v1696_v60, %v7569_v12  ;;  %v1627_v1 = vpop.f32.mrb[25].mxu0  ;;  %v1698_v56 = vpop.f32.mrb[25].mxu1  ;;  %v7572_v60 = vld [vmem:[#allocation57_spill] sm:$0xff] }
 0x5d8   :  { %v1702_v54 = vadd.f32 %v1627_v1, %v7570_v5  ;;  %v1704_v29 = vadd.f32 %v1698_v56, %v7571_v7  ;;  %v7574_v56 = vld [vmem:[#allocation59_spill] sm:$0xff] }
 0x5d9   :  { %v4969_v59 = vmul.f32 -1.442695, %v1701_v17  ;;  %v7573_v17 = vld [vmem:[#allocation60_spill] sm:$0xff] }
 0x5da   :  { %v4970_v33 = vmul.f32 -1.442695, %v1702_v54  ;;  %v4971_v14 = vmul.f32 -1.442695, %v1704_v29  ;;  %v7575_v54 = vld [vmem:[#allocation61_spill] sm:$0xff] }
 0x5db   :  { %5863 = vpow2.f32 %v4969_v59 }
 0x5dc   :  { %5865 = vpow2.f32 %v4970_v33 }
 0x5dd   :  { %5867 = vpow2.f32 %v4971_v14 }
 0x5de   :  { %5869 = vtanh.f32 %v1703_v23 }
 0x5e5   :  { %v5864_v30 = vpop.eup %5863 }
 0x5e6   :  { %v5866_v34 = vpop.eup %5865  ;;  %v1708_v38 = vadd.f32 1.0, %v5864_v30 }
 0x5e7   :  { %v1714_v35 = vadd.f32 1.0, %v5866_v34  ;;  %v5868_v39 = vpop.eup %5867 }
 0x5e8   :  { %5871 = vrcp.f32 %v1708_v38  ;;  %v5870_v40 = vpop.eup %5869  ;;  %v1721_v52 = vadd.f32 1.0, %v5868_v39 }
 0x5e9   :  { %5873 = vrcp.f32 %v1714_v35 }
 0x5ea   :  { %5875 = vrcp.f32 %v1721_v52 }
 0x5f2   :  { %v5872_v9 = vpop.eup %5871 }
 0x5f3   :  { %v5874_v47 = vpop.eup %5873  ;;  %v1725_v43 = vmul.f32 %v5872_v9, %v5870_v40 }
 0x5f4   :  { %v1724_v18 = vmul.f32 %v5874_v47, %v7235_v22  ;;  %v5876_v6 = vpop.eup %5875 }
 0x5f6   :  { %v7277_v58 = vadd.f32 %v1725_v43, %v1724_v18 }
 0x5f8   :  { %5877 = vtanh.f32 %v7277_v58 }
 0x602   :  { %v5878_v57 = vpop.eup %5877 }
 0x603   :  { %v1728_v8 = vmul.f32 %v5878_v57, %v5876_v6  ;;  %v7580_v57 = vld [vmem:[#allocation65_spill] sm:$0xff] }
 0x605   :  { %1801 = vmatmul.mubr.f32.vlgmr.msra.gmra.mrb[26].mxu0 %v1728_v8  ;;  %1872 = vmatmul.mubr.f32.vlgmr.msra.gmra.mrb[26].mxu1 %v1728_v8 }
 0x606   :  { %5534 = vmatpush1.bf16.msra.mxu0 %v6685_v19  ;;  %5566 = vmatpush1.bf16.msra.mxu1 %v6688_v20 }
 0x607   :  { %5536 = vmatprep.subr.bf16.mxu0 %v6690_v21  ;;  %5568 = vmatprep.subr.bf16.mxu1 %v6702_v25 }
 0x608   :  { %1977 = vmatprep.mubr.f32.mxu0 %v7563_v28  ;;  %2048 = vmatprep.mubr.f32.mxu1 %v7563_v28 }
 0x60a   :  { %5538 = vmatpush1.bf16.msra.mxu0 %v6720_v32  ;;  %5570 = vmatpush1.bf16.msra.mxu1 %v6733_v36 }
 0x60b   :  { %5540 = vmatprep.subr.bf16.mxu0 %v6735_v37  ;;  %5572 = vmatprep.subr.bf16.mxu1 %v6748_v41 }
 0x60e   :  { %5542 = vmatpush1.bf16.msra.mxu0 %v6770_v49  ;;  %5574 = vmatpush1.bf16.msra.mxu1 %v6774_v50 }
 0x60f   :  { %5544 = vmatprep.subr.bf16.mxu0 %v6776_v51  ;;  %5576 = vmatprep.subr.bf16.mxu1 %v6788_v55 }
 0x612   :  { %5546 = vmatpush1.bf16.msra.mxu0 %v6806_v62  ;;  %5578 = vmatpush1.bf16.msra.mxu1 %v6819_v3 }
 0x613   :  { %5548 = vmatprep.subr.bf16.mxu0 %v6821_v4  ;;  %5580 = vmatprep.subr.bf16.mxu1 %v6834_v13 }
 0x616   :  { %5550 = vmatpush1.bf16.msra.mxu0 %v6856_v24  ;;  %5582 = vmatpush1.bf16.msra.mxu1 %v6860_v26 }
 0x617   :  { %5552 = vmatprep.subr.bf16.mxu0 %v6862_v27  ;;  %5584 = vmatprep.subr.bf16.mxu1 %v6874_v31 }
 0x61a   :  { %5554 = vmatpush1.bf16.msra.mxu0 %v6892_v42  ;;  %5586 = vmatpush1.bf16.msra.mxu1 %v6902_v45 }
 0x61b   :  { %5556 = vmatprep.subr.bf16.mxu0 %v6904_v46  ;;  %5588 = vmatprep.subr.bf16.mxu1 %v6917_v53 }
 0x61e   :  { %5558 = vmatpush1.bf16.msra.mxu0 %v6936_v61  ;;  %5590 = vmatpush1.bf16.msra.mxu1 %v6940_v63 }
 0x61f   :  { %5560 = vmatprep.subr.bf16.mxu0 %v6942_v0  ;;  %5592 = vmatprep.subr.bf16.mxu1 %v6951_v10 }
 0x622   :  { %5562 = vmatpush1.bf16.msra.mxu0 %v6960_v15  ;;  %5594 = vmatpush1.bf16.msra.mxu1 %v6964_v16 }
 0x623   :  { %5596 = vmatprep.subr.bf16.mxu0 %v6652_v2  ;;  %5628 = vmatprep.subr.bf16.mxu1 %v6665_v11 }
 0x6d8   :  { %v1802_v22 = vpop.f32.mrb[26].mxu0  ;;  %v1873_v44 = vpop.f32.mrb[26].mxu1 }
 0x6d9   :  { %v1878_v48 = vadd.f32 %v1802_v22, %v7572_v60  ;;  %v1880_v12 = vadd.f32 %v1873_v44, %v7573_v17  ;;  %v1804_v23 = vpop.f32.mrb[27].mxu0  ;;  %v1875_v1 = vpop.f32.mrb[27].mxu1  ;;  %v7581_v22 = vld [vmem:[#allocation68_spill] sm:$0xff]  ;;  %v7582_v17 = vld [vmem:[#allocation67_spill] sm:$0xff] }
 0x6da   :  { %v1879_v5 = vadd.f32 %v1804_v23, %v7574_v56  ;;  %v1881_v7 = vadd.f32 %v1875_v1, %v7575_v54  ;;  %v7583_v23 = vld [vmem:[#allocation69_spill] sm:$0xff] }
 0x6db   :  { %v4972_v29 = vmul.f32 -1.442695, %v1878_v48 }
 0x6dc   :  { %v4973_v59 = vmul.f32 -1.442695, %v1879_v5  ;;  %v4974_v33 = vmul.f32 -1.442695, %v1881_v7 }
 0x6dd   :  { %5879 = vpow2.f32 %v4972_v29 }
 0x6de   :  { %5881 = vpow2.f32 %v4973_v59 }
 0x6df   :  { %5883 = vpow2.f32 %v4974_v33 }
 0x6e0   :  { %5885 = vtanh.f32 %v1880_v12 }
 0x6e7   :  { %v5880_v2 = vpop.eup %5879 }
 0x6e8   :  { %v5882_v14 = vpop.eup %5881  ;;  %v1885_v11 = vadd.f32 1.0, %v5880_v2 }
 0x6e9   :  { %v1891_v30 = vadd.f32 1.0, %v5882_v14  ;;  %v5884_v34 = vpop.eup %5883 }
 0x6ea   :  { %5887 = vrcp.f32 %v1885_v11  ;;  %v5886_v38 = vpop.eup %5885  ;;  %v1898_v9 = vadd.f32 1.0, %v5884_v34 }
 0x6eb   :  { %5889 = vrcp.f32 %v1891_v30 }
 0x6ec   :  { %5891 = vrcp.f32 %v1898_v9 }
 0x6f4   :  { %v5888_v35 = vpop.eup %5887 }
 0x6f5   :  { %v5890_v39 = vpop.eup %5889  ;;  %v1902_v40 = vmul.f32 %v5888_v35, %v5886_v38 }
 0x6f6   :  { %v1901_v47 = vmul.f32 %v5890_v39, %v7277_v58  ;;  %v5892_v52 = vpop.eup %5891 }
 0x6f8   :  { %v7319_v43 = vadd.f32 %v1902_v40, %v1901_v47 }
 0x6fa   :  { %5893 = vtanh.f32 %v7319_v43 }
 0x704   :  { %v5894_v18 = vpop.eup %5893 }
 0x705   :  { %v1905_v6 = vmul.f32 %v5894_v18, %v5892_v52 }
 0x707   :  { %1978 = vmatmul.mubr.f32.vlgmr.msra.gmra.mrb[28].mxu0 %v1905_v6  ;;  %2049 = vmatmul.mubr.f32.vlgmr.msra.gmra.mrb[28].mxu1 %v1905_v6 }
 0x708   :  { %5598 = vmatpush1.bf16.msra.mxu0 %v6685_v19  ;;  %5630 = vmatpush1.bf16.msra.mxu1 %v6688_v20 }
 0x709   :  { %5600 = vmatprep.subr.bf16.mxu0 %v6690_v21  ;;  %5632 = vmatprep.subr.bf16.mxu1 %v6702_v25  ;;  %v7576_v21 = vld [vmem:[#allocation62_spill] sm:$0xff] }
 0x70a   :  { %2154 = vmatprep.mubr.f32.mxu0 %v7563_v28  ;;  %2225 = vmatprep.mubr.f32.mxu1 %v7563_v28 }
 0x70c   :  { %5602 = vmatpush1.bf16.msra.mxu0 %v6720_v32  ;;  %5634 = vmatpush1.bf16.msra.mxu1 %v6733_v36  ;;  %v7577_v32 = vld [vmem:[#allocation64_spill] sm:$0xff] }
 0x70d   :  { %5604 = vmatprep.subr.bf16.mxu0 %v6735_v37  ;;  %5636 = vmatprep.subr.bf16.mxu1 %v6748_v41 }
 0x710   :  { %5606 = vmatpush1.bf16.msra.mxu0 %v6770_v49  ;;  %5638 = vmatpush1.bf16.msra.mxu1 %v6774_v50  ;;  %v7578_v49 = vld [vmem:[#allocation63_spill] sm:$0xff] }
 0x711   :  { %5608 = vmatprep.subr.bf16.mxu0 %v6776_v51  ;;  %5640 = vmatprep.subr.bf16.mxu1 %v6788_v55  ;;  %v7579_v51 = vld [vmem:[#allocation66_spill] sm:$0xff] }
 0x714   :  { %5610 = vmatpush1.bf16.msra.mxu0 %v6806_v62  ;;  %5642 = vmatpush1.bf16.msra.mxu1 %v6819_v3 }
 0x715   :  { %5612 = vmatprep.subr.bf16.mxu0 %v6821_v4  ;;  %5644 = vmatprep.subr.bf16.mxu1 %v6834_v13 }
 0x718   :  { %5614 = vmatpush1.bf16.msra.mxu0 %v6856_v24  ;;  %5646 = vmatpush1.bf16.msra.mxu1 %v6860_v26 }
 0x719   :  { %5616 = vmatprep.subr.bf16.mxu0 %v6862_v27  ;;  %5648 = vmatprep.subr.bf16.mxu1 %v6874_v31 }
 0x71c   :  { %5618 = vmatpush1.bf16.msra.mxu0 %v6892_v42  ;;  %5650 = vmatpush1.bf16.msra.mxu1 %v6902_v45 }
 0x71d   :  { %5620 = vmatprep.subr.bf16.mxu0 %v6904_v46  ;;  %5652 = vmatprep.subr.bf16.mxu1 %v6917_v53 }
 0x720   :  { %5622 = vmatpush1.bf16.msra.mxu0 %v6936_v61  ;;  %5654 = vmatpush1.bf16.msra.mxu1 %v6940_v63 }
 0x721   :  { %5624 = vmatprep.subr.bf16.mxu0 %v6942_v0  ;;  %5656 = vmatprep.subr.bf16.mxu1 %v6951_v10 }
 0x724   :  { %5626 = vmatpush1.bf16.msra.mxu0 %v6960_v15  ;;  %5658 = vmatpush1.bf16.msra.mxu1 %v6964_v16 }
 0x7da   :  { %v1979_v19 = vpop.f32.mrb[28].mxu0  ;;  %v2050_v20 = vpop.f32.mrb[28].mxu1 }
 0x7db   :  { %v2055_v25 = vadd.f32 %v1979_v19, %v7576_v21  ;;  %v2057_v36 = vadd.f32 %v2050_v20, %v7577_v32  ;;  %v1981_v37 = vpop.f32.mrb[29].mxu0  ;;  %v2052_v41 = vpop.f32.mrb[29].mxu1 }
 0x7dc   :  { %v2056_v50 = vadd.f32 %v1981_v37, %v7578_v49  ;;  %v2058_v55 = vadd.f32 %v2052_v41, %v7579_v51 }
 0x7dd   :  { %v4975_v62 = vmul.f32 -1.442695, %v2055_v25 }
 0x7de   :  { %v4976_v3 = vmul.f32 -1.442695, %v2056_v50  ;;  %v4977_v4 = vmul.f32 -1.442695, %v2058_v55 }
 0x7df   :  { %5895 = vpow2.f32 %v4975_v62 }
 0x7e0   :  { %5897 = vpow2.f32 %v4976_v3 }
 0x7e1   :  { %5899 = vpow2.f32 %v4977_v4 }
 0x7e2   :  { %5901 = vtanh.f32 %v2057_v36 }
 0x7e9   :  { %v5896_v13 = vpop.eup %5895 }
 0x7ea   :  { %v5898_v24 = vpop.eup %5897  ;;  %v2062_v26 = vadd.f32 1.0, %v5896_v13 }
 0x7eb   :  { %v2068_v27 = vadd.f32 1.0, %v5898_v24  ;;  %v5900_v31 = vpop.eup %5899 }
 0x7ec   :  { %5903 = vrcp.f32 %v2062_v26  ;;  %v5902_v42 = vpop.eup %5901  ;;  %v2075_v61 = vadd.f32 1.0, %v5900_v31 }
 0x7ed   :  { %5905 = vrcp.f32 %v2068_v27 }
 0x7ee   :  { %5907 = vrcp.f32 %v2075_v61 }
 0x7f6   :  { %v5904_v45 = vpop.eup %5903 }
 0x7f7   :  { %v5906_v46 = vpop.eup %5905  ;;  %v2079_v53 = vmul.f32 %v5904_v45, %v5902_v42 }
 0x7f8   :  { %v2078_v63 = vmul.f32 %v5906_v46, %v7319_v43  ;;  %v5908_v10 = vpop.eup %5907 }
 0x7fa   :  { %v2080_v0 = vadd.f32 %v2079_v53, %v2078_v63 }
 0x7fc   :  { %5909 = vtanh.f32 %v2080_v0 }
 0x806   :  { %v5910_v15 = vpop.eup %5909 }
 0x807   :  { %v2082_v16 = vmul.f32 %v5910_v15, %v5908_v10 }
 0x809   :  { %2155 = vmatmul.mubr.f32.vlgmr.msra.gmra.mrb[30].mxu0 %v2082_v16  ;;  %2226 = vmatmul.mubr.f32.vlgmr.msra.gmra.mrb[30].mxu1 %v2082_v16 }
 0x8dc   :  { %v2156_v28 = vpop.f32.mrb[30].mxu0  ;;  %v2227_v58 = vpop.f32.mrb[30].mxu1 }
 0x8dd   :  { %v2232_v8 = vadd.f32 %v2156_v28, %v7580_v57  ;;  %v2234_v44 = vadd.f32 %v2227_v58, %v7581_v22  ;;  %v2158_v60 = vpop.f32.mrb[31].mxu0  ;;  %v2229_v48 = vpop.f32.mrb[31].mxu1 }
 0x8de   :  { %v2233_v12 = vadd.f32 %v2158_v60, %v7582_v17  ;;  %v2235_v1 = vadd.f32 %v2229_v48, %v7583_v23 }
 0x8df   :  { %v4978_v56 = vmul.f32 -1.442695, %v2232_v8 }
 0x8e0   :  { %v4979_v5 = vmul.f32 -1.442695, %v2233_v12  ;;  %v4980_v54 = vmul.f32 -1.442695, %v2235_v1 }
 0x8e1   :  { %5911 = vpow2.f32 %v4978_v56 }
 0x8e2   :  { %5913 = vpow2.f32 %v4979_v5 }
 0x8e3   :  { %5915 = vpow2.f32 %v4980_v54 }
 0x8e4   :  { %5917 = vtanh.f32 %v2234_v44 }
 0x8eb   :  { %v5912_v7 = vpop.eup %5911 }
 0x8ec   :  { %v5914_v29 = vpop.eup %5913  ;;  %v2239_v59 = vadd.f32 1.0, %v5912_v7 }
 0x8ed   :  { %v2245_v33 = vadd.f32 1.0, %v5914_v29  ;;  %v5916_v2 = vpop.eup %5915 }
 0x8ee   :  { %5919 = vrcp.f32 %v2239_v59  ;;  %v5918_v14 = vpop.eup %5917  ;;  %v2252_v38 = vadd.f32 1.0, %v5916_v2 }
 0x8ef   :  { %5921 = vrcp.f32 %v2245_v33 }
 0x8f0   :  { %5923 = vrcp.f32 %v2252_v38 }
 0x8f8   :  { %v5920_v11 = vpop.eup %5919 }
 0x8f9   :  { %v5922_v30 = vpop.eup %5921  ;;  %v2256_v34 = vmul.f32 %v5920_v11, %v5918_v14 }
 0x8fa   :  { %v2255_v35 = vmul.f32 %v5922_v30, %v2080_v0  ;;  %v5924_v40 = vpop.eup %5923 }
 0x8fc   :  { %v2257_v39 = vadd.f32 %v2256_v34, %v2255_v35 }
 0x8fe   :  { %5925 = vtanh.f32 %v2257_v39 }
 0x908   :  { %v5926_v9 = vpop.eup %5925 }
 0x909   :  { %v2259_v47 = vmul.f32 %v5926_v9, %v5924_v40 }
 0x90b   :  { %v7363_v43 = vpack.c.bf16 %v2259_v47, %v2259_v47 }
 0x90c   :  { %6321 = dma.done.wait [#allocation8], 15616 }
 0x90d   :  { %6322 = vsyncadd [#allocation8], 4294951680  ;;  %vm3037_vm2 = vcmask 818176   ;;  %v7584_v52 = vld [vmem:[#allocation42_spill] sm:$0xff]  ;;  %v7585_v18 = vld [vmem:[#allocation44_spill] sm:$0xff]  ;;  %vm3041_vm3 = vcmask 1041408  }
 0x90e   :  { %3086 = vmatprep.mubr.bf16.mxu0 %v7584_v52  ;;  %5106 = vmatprep.mubr.msk.bf16.mxu1 %vm3037_vm2, %v7585_v18  ;;  %v5927_v6 = vld [vmem:[#allocation3 + $0x4] ss:$16 sps:$4 sm:$0xff]   ;;  %v5931_v20 = vld [vmem:[#allocation3] ss:$16 sps:$4 sm:$0xff]  }
 0x90f   :  { %v5929_v19 = vld [vmem:[#allocation3 + $0x204] ss:$16 sps:$4 sm:$0xff]   ;;  %3054 = vmatprep.subr.bf16.mxu0 %v5927_v6  ;;  %v5932_v21 = vld [vmem:[#allocation3 + $0x200] ss:$16 sps:$4 sm:$0xff]  }
 0x910   :  { %3095 = vmatprep.subr.bf16.mxu1 %v5929_v19  ;;  %v5933_v25 = vld [vmem:[#allocation3 + $0x24] ss:$16 sps:$4 sm:$0xff]   ;;  %3055 = vmatpush1.bf16.msra.mxu0 %v5931_v20  ;;  %v5937_v36 = vld [vmem:[#allocation3 + $0x20] ss:$16 sps:$4 sm:$0xff]   ;;  %v6020_v20 = vld [vmem:[#allocation3 + $0xc] ss:$16 sps:$4 sm:$0xff]  }
 0x911   :  { %3096 = vmatpush1.bf16.msra.mxu1 %v5932_v21  ;;  %v5935_v32 = vld [vmem:[#allocation3 + $0x224] ss:$16 sps:$4 sm:$0xff]   ;;  %3056 = vmatprep.subr.bf16.mxu0 %v5933_v25  ;;  %v5938_v37 = vld [vmem:[#allocation3 + $0x220] ss:$16 sps:$4 sm:$0xff]   ;;  %v6018_v21 = vld [vmem:[#allocation3 + $0x8] ss:$16 sps:$4 sm:$0xff]  }
 0x912   :  { %3097 = vmatprep.subr.bf16.mxu1 %v5935_v32  ;;  %v5939_v41 = vld [vmem:[#allocation3 + $0x44] ss:$16 sps:$4 sm:$0xff]   ;;  %v5943_v50 = vld [vmem:[#allocation3 + $0x40] ss:$16 sps:$4 sm:$0xff]   ;;  %v6024_v32 = vld [vmem:[#allocation3 + $0x2c] ss:$16 sps:$4 sm:$0xff]  }
 0x913   :  { %v5941_v49 = vld [vmem:[#allocation3 + $0x244] ss:$16 sps:$4 sm:$0xff]   ;;  %v5944_v51 = vld [vmem:[#allocation3 + $0x240] ss:$16 sps:$4 sm:$0xff]  }
 0x914   :  { %3057 = vmatpush1.bf16.msra.mxu0 %v5937_v36  ;;  %v5945_v55 = vld [vmem:[#allocation3 + $0x64] ss:$16 sps:$4 sm:$0xff]   ;;  %v5949_v3 = vld [vmem:[#allocation3 + $0x60] ss:$16 sps:$4 sm:$0xff]   ;;  %v6027_v36 = vld [vmem:[#allocation3 + $0x20c] ss:$16 sps:$4 sm:$0xff]  }
 0x915   :  { %3098 = vmatpush1.bf16.msra.mxu1 %v5938_v37  ;;  %3058 = vmatprep.subr.bf16.mxu0 %v5939_v41  ;;  %v5947_v62 = vld [vmem:[#allocation3 + $0x264] ss:$16 sps:$4 sm:$0xff]   ;;  %v5950_v4 = vld [vmem:[#allocation3 + $0x260] ss:$16 sps:$4 sm:$0xff]   ;;  %v6022_v41 = vld [vmem:[#allocation3 + $0x28] ss:$16 sps:$4 sm:$0xff]  }
 0x916   :  { %3099 = vmatprep.subr.bf16.mxu1 %v5941_v49  ;;  %v5951_v13 = vld [vmem:[#allocation3 + $0x84] ss:$16 sps:$4 sm:$0xff]   ;;  %v5955_v26 = vld [vmem:[#allocation3 + $0x80] ss:$16 sps:$4 sm:$0xff]   ;;  %v6025_v49 = vld [vmem:[#allocation3 + $0x208] ss:$16 sps:$4 sm:$0xff]  }
 0x917   :  { %v5953_v24 = vld [vmem:[#allocation3 + $0x284] ss:$16 sps:$4 sm:$0xff]   ;;  %v5956_v27 = vld [vmem:[#allocation3 + $0x280] ss:$16 sps:$4 sm:$0xff]  }
 0x918   :  { %3059 = vmatpush1.bf16.msra.mxu0 %v5943_v50  ;;  %v5957_v31 = vld [vmem:[#allocation3 + $0xa4] ss:$16 sps:$4 sm:$0xff]   ;;  %v5961_v45 = vld [vmem:[#allocation3 + $0xa0] ss:$16 sps:$4 sm:$0xff]   ;;  %v6030_v50 = vld [vmem:[#allocation3 + $0x4c] ss:$16 sps:$4 sm:$0xff]  }
 0x919   :  { %3100 = vmatpush1.bf16.msra.mxu1 %v5944_v51  ;;  %3060 = vmatprep.subr.bf16.mxu0 %v5945_v55  ;;  %v5959_v42 = vld [vmem:[#allocation3 + $0x2a4] ss:$16 sps:$4 sm:$0xff]   ;;  %v5962_v46 = vld [vmem:[#allocation3 + $0x2a0] ss:$16 sps:$4 sm:$0xff]   ;;  %v6033_v51 = vld [vmem:[#allocation3 + $0x22c] ss:$16 sps:$4 sm:$0xff]  }
 0x91a   :  { %3101 = vmatprep.subr.bf16.mxu1 %v5947_v62  ;;  %v5963_v53 = vld [vmem:[#allocation3 + $0xc4] ss:$16 sps:$4 sm:$0xff]   ;;  %v5967_v63 = vld [vmem:[#allocation3 + $0xc0] ss:$16 sps:$4 sm:$0xff]   ;;  %v6028_v62 = vld [vmem:[#allocation3 + $0x48] ss:$16 sps:$4 sm:$0xff]  }
 0x91b   :  { %v5965_v61 = vld [vmem:[#allocation3 + $0x2c4] ss:$16 sps:$4 sm:$0xff]   ;;  %v5968_v0 = vld [vmem:[#allocation3 + $0x2c0] ss:$16 sps:$4 sm:$0xff]  }
 0x91c   :  { %3061 = vmatpush1.bf16.msra.mxu0 %v5949_v3  ;;  %v5969_v10 = vld [vmem:[#allocation3 + $0xe4] ss:$16 sps:$4 sm:$0xff]   ;;  %v5973_v16 = vld [vmem:[#allocation3 + $0xe0] ss:$16 sps:$4 sm:$0xff]   ;;  %v6031_v3 = vld [vmem:[#allocation3 + $0x228] ss:$16 sps:$4 sm:$0xff]  }
 0x91d   :  { %3102 = vmatpush1.bf16.msra.mxu1 %v5950_v4  ;;  %3062 = vmatprep.subr.bf16.mxu0 %v5951_v13  ;;  %v5971_v15 = vld [vmem:[#allocation3 + $0x2e4] ss:$16 sps:$4 sm:$0xff]   ;;  %v5974_v28 = vld [vmem:[#allocation3 + $0x2e0] ss:$16 sps:$4 sm:$0xff]   ;;  %v6036_v4 = vld [vmem:[#allocation3 + $0x6c] ss:$16 sps:$4 sm:$0xff]  }
 0x91e   :  { %3103 = vmatprep.subr.bf16.mxu1 %v5953_v24  ;;  %v5975_v58 = vld [vmem:[#allocation3 + $0x104] ss:$16 sps:$4 sm:$0xff]   ;;  %v5979_v8 = vld [vmem:[#allocation3 + $0x100] ss:$16 sps:$4 sm:$0xff]   ;;  %v6039_v13 = vld [vmem:[#allocation3 + $0x24c] ss:$16 sps:$4 sm:$0xff]  }
 0x91f   :  { %v5977_v57 = vld [vmem:[#allocation3 + $0x304] ss:$16 sps:$4 sm:$0xff]   ;;  %v5980_v22 = vld [vmem:[#allocation3 + $0x300] ss:$16 sps:$4 sm:$0xff]   ;;  %v6034_v24 = vld [vmem:[#allocation3 + $0x68] ss:$16 sps:$4 sm:$0xff]  }
 0x920   :  { %3063 = vmatpush1.bf16.msra.mxu0 %v5955_v26  ;;  %v5981_v44 = vld [vmem:[#allocation3 + $0x124] ss:$16 sps:$4 sm:$0xff]   ;;  %v5985_v48 = vld [vmem:[#allocation3 + $0x120] ss:$16 sps:$4 sm:$0xff]   ;;  %v6037_v26 = vld [vmem:[#allocation3 + $0x248] ss:$16 sps:$4 sm:$0xff]  }
 0x921   :  { %3104 = vmatpush1.bf16.msra.mxu1 %v5956_v27  ;;  %3064 = vmatprep.subr.bf16.mxu0 %v5957_v31  ;;  %v5983_v60 = vld [vmem:[#allocation3 + $0x324] ss:$16 sps:$4 sm:$0xff]   ;;  %v5986_v17 = vld [vmem:[#allocation3 + $0x320] ss:$16 sps:$4 sm:$0xff]   ;;  %v6045_v27 = vld [vmem:[#allocation3 + $0x26c] ss:$16 sps:$4 sm:$0xff]  }
 0x922   :  { %3105 = vmatprep.subr.bf16.mxu1 %v5959_v42  ;;  %v5987_v12 = vld [vmem:[#allocation3 + $0x144] ss:$16 sps:$4 sm:$0xff]   ;;  %v5991_v1 = vld [vmem:[#allocation3 + $0x140] ss:$16 sps:$4 sm:$0xff]   ;;  %v6040_v31 = vld [vmem:[#allocation3 + $0x88] ss:$16 sps:$4 sm:$0xff]  }
 0x923   :  { %v5989_v23 = vld [vmem:[#allocation3 + $0x344] ss:$16 sps:$4 sm:$0xff]   ;;  %v5992_v56 = vld [vmem:[#allocation3 + $0x340] ss:$16 sps:$4 sm:$0xff]   ;;  %v6043_v42 = vld [vmem:[#allocation3 + $0x268] ss:$16 sps:$4 sm:$0xff]  }
 0x924   :  { %3065 = vmatpush1.bf16.msra.mxu0 %v5961_v45  ;;  %v5993_v5 = vld [vmem:[#allocation3 + $0x164] ss:$16 sps:$4 sm:$0xff]   ;;  %v5997_v7 = vld [vmem:[#allocation3 + $0x160] ss:$16 sps:$4 sm:$0xff]   ;;  %v6048_v45 = vld [vmem:[#allocation3 + $0xac] ss:$16 sps:$4 sm:$0xff]  }
 0x925   :  { %3106 = vmatpush1.bf16.msra.mxu1 %v5962_v46  ;;  %3066 = vmatprep.subr.bf16.mxu0 %v5963_v53  ;;  %v5995_v54 = vld [vmem:[#allocation3 + $0x364] ss:$16 sps:$4 sm:$0xff]   ;;  %v5998_v29 = vld [vmem:[#allocation3 + $0x360] ss:$16 sps:$4 sm:$0xff]   ;;  %v6051_v46 = vld [vmem:[#allocation3 + $0x28c] ss:$16 sps:$4 sm:$0xff]  }
 0x926   :  { %3107 = vmatprep.subr.bf16.mxu1 %v5965_v61  ;;  %v5999_v59 = vld [vmem:[#allocation3 + $0x184] ss:$16 sps:$4 sm:$0xff]   ;;  %v6003_v2 = vld [vmem:[#allocation3 + $0x180] ss:$16 sps:$4 sm:$0xff]   ;;  %v6046_v53 = vld [vmem:[#allocation3 + $0xa8] ss:$16 sps:$4 sm:$0xff]  }
 0x927   :  { %v6001_v33 = vld [vmem:[#allocation3 + $0x384] ss:$16 sps:$4 sm:$0xff]   ;;  %v6004_v14 = vld [vmem:[#allocation3 + $0x380] ss:$16 sps:$4 sm:$0xff]   ;;  %v6054_v61 = vld [vmem:[#allocation3 + $0xcc] ss:$16 sps:$4 sm:$0xff]  }
 0x928   :  { %3067 = vmatpush1.bf16.msra.mxu0 %v5967_v63  ;;  %v6005_v11 = vld [vmem:[#allocation3 + $0x1a4] ss:$16 sps:$4 sm:$0xff]   ;;  %v6009_v38 = vld [vmem:[#allocation3 + $0x1a0] ss:$16 sps:$4 sm:$0xff]   ;;  %v6057_v63 = vld [vmem:[#allocation3 + $0x2ac] ss:$16 sps:$4 sm:$0xff]  }
 0x929   :  { %3108 = vmatpush1.bf16.msra.mxu1 %v5968_v0  ;;  %3068 = vmatprep.subr.bf16.mxu0 %v5969_v10  ;;  %v6007_v30 = vld [vmem:[#allocation3 + $0x3a4] ss:$16 sps:$4 sm:$0xff]   ;;  %v6010_v35 = vld [vmem:[#allocation3 + $0x3a0] ss:$16 sps:$4 sm:$0xff]   ;;  %v6052_v0 = vld [vmem:[#allocation3 + $0xc8] ss:$16 sps:$4 sm:$0xff]  }
 0x92a   :  { %3109 = vmatprep.subr.bf16.mxu1 %v5971_v15  ;;  %v2425_v34 = vld [vmem:[#allocation3 + $0x3c0] sm:$0x33]  ;;  %v7587_v55 = vld [vmem:[#allocation41_spill] sm:$0xff]  ;;  %v6060_v15 = vld [vmem:[#allocation3 + $0xec] ss:$16 sps:$4 sm:$0xff]  }
 0x92b   :  { %v6011_v39 = vld [vmem:[#allocation3 + $0x1c4] ss:$16 sps:$4 sm:$0xff]   ;;  %v5102_v40 = vcombine.high %v2425_v34, %v2425_v34  ;;  %v5101_v9 = vcombine.low %v2425_v34, %v2425_v34  ;;  %v6014_v47 = vld [vmem:[#allocation3 + $0x1c0] ss:$16 sps:$4 sm:$0xff]   ;;  %v6055_v10 = vld [vmem:[#allocation3 + $0x2a8] ss:$16 sps:$4 sm:$0xff]  }
 0x92c   :  { %3069 = vmatpush1.bf16.msra.mxu0 %v5973_v16  ;;  %v6016_v19 = vld [vmem:[#allocation3 + $0x1e4] ss:$16 sps:$4 sm:$0xff]   ;;  %v6021_v25 = vld [vmem:[#allocation3 + $0x1e0] ss:$16 sps:$4 sm:$0xff]   ;;  %v6063_v16 = vld [vmem:[#allocation3 + $0x2cc] ss:$16 sps:$4 sm:$0xff]  }
 0x92d   :  { %3110 = vmatpush1.bf16.msra.mxu1 %v5974_v28  ;;  %3070 = vmatprep.subr.bf16.mxu0 %v5975_v58  ;;  %v3043_v6 = vsel %vm3041_vm3, %v5101_v9, 0  ;;  %v7586_v37 = vld [vmem:[#allocation43_spill] sm:$0xff]  ;;  %v6099_v34 = vld [vmem:[#allocation3 + $0x38c] ss:$16 sps:$4 sm:$0xff]  }
 0x92e   :  { %3111 = vmatprep.subr.bf16.mxu1 %v5977_v57  ;;  %v6058_v28 = vld [vmem:[#allocation3 + $0xe8] ss:$16 sps:$4 sm:$0xff]   ;;  %v6066_v57 = vld [vmem:[#allocation3 + $0x10c] ss:$16 sps:$4 sm:$0xff]  }
 0x92f   :  { %v6061_v58 = vld [vmem:[#allocation3 + $0x2c8] ss:$16 sps:$4 sm:$0xff]  }
 0x930   :  { %3071 = vmatpush1.bf16.msra.mxu0 %v5979_v8  ;;  %v6069_v8 = vld [vmem:[#allocation3 + $0x2ec] ss:$16 sps:$4 sm:$0xff]  }
 0x931   :  { %3112 = vmatpush1.bf16.msra.mxu1 %v5980_v22  ;;  %3072 = vmatprep.subr.bf16.mxu0 %v5981_v44  ;;  %v6064_v22 = vld [vmem:[#allocation3 + $0x108] ss:$16 sps:$4 sm:$0xff]  }
 0x932   :  { %3113 = vmatprep.subr.bf16.mxu1 %v5983_v60  ;;  %v6067_v44 = vld [vmem:[#allocation3 + $0x2e8] ss:$16 sps:$4 sm:$0xff]   ;;  %v6072_v60 = vld [vmem:[#allocation3 + $0x12c] ss:$16 sps:$4 sm:$0xff]  }
 0x933   :  { %v2426_v9 = vld [vmem:[#allocation3 + $0x3c8] sm:$0x33] }
 0x934   :  { %3073 = vmatpush1.bf16.msra.mxu0 %v5985_v48  ;;  %v6075_v48 = vld [vmem:[#allocation3 + $0x30c] ss:$16 sps:$4 sm:$0xff]  }
 0x935   :  { %3114 = vmatpush1.bf16.msra.mxu1 %v5986_v17  ;;  %3074 = vmatprep.subr.bf16.mxu0 %v5987_v12  ;;  %v6070_v17 = vld [vmem:[#allocation3 + $0x128] ss:$16 sps:$4 sm:$0xff]  }
 0x936   :  { %3115 = vmatprep.subr.bf16.mxu1 %v5989_v23  ;;  %v6073_v12 = vld [vmem:[#allocation3 + $0x308] ss:$16 sps:$4 sm:$0xff]   ;;  %v6078_v23 = vld [vmem:[#allocation3 + $0x14c] ss:$16 sps:$4 sm:$0xff]  }
 0x938   :  { %3075 = vmatpush1.bf16.msra.mxu0 %v5991_v1  ;;  %v6081_v1 = vld [vmem:[#allocation3 + $0x32c] ss:$16 sps:$4 sm:$0xff]  }
 0x939   :  { %3116 = vmatpush1.bf16.msra.mxu1 %v5992_v56  ;;  %3076 = vmatprep.subr.bf16.mxu0 %v5993_v5  ;;  %v6076_v56 = vld [vmem:[#allocation3 + $0x148] ss:$16 sps:$4 sm:$0xff]  }
 0x93a   :  { %3117 = vmatprep.subr.bf16.mxu1 %v5995_v54  ;;  %v6079_v5 = vld [vmem:[#allocation3 + $0x328] ss:$16 sps:$4 sm:$0xff]   ;;  %v6084_v54 = vld [vmem:[#allocation3 + $0x16c] ss:$16 sps:$4 sm:$0xff]  }
 0x93c   :  { %3077 = vmatpush1.bf16.msra.mxu0 %v5997_v7  ;;  %v6087_v7 = vld [vmem:[#allocation3 + $0x34c] ss:$16 sps:$4 sm:$0xff]  }
 0x93d   :  { %3118 = vmatpush1.bf16.msra.mxu1 %v5998_v29  ;;  %3078 = vmatprep.subr.bf16.mxu0 %v5999_v59  ;;  %v6082_v29 = vld [vmem:[#allocation3 + $0x168] ss:$16 sps:$4 sm:$0xff]  }
 0x93e   :  { %3119 = vmatprep.subr.bf16.mxu1 %v6001_v33  ;;  %v6085_v59 = vld [vmem:[#allocation3 + $0x348] ss:$16 sps:$4 sm:$0xff]   ;;  %v6090_v33 = vld [vmem:[#allocation3 + $0x18c] ss:$16 sps:$4 sm:$0xff]  }
 0x940   :  { %3079 = vmatpush1.bf16.msra.mxu0 %v6003_v2  ;;  %v6093_v2 = vld [vmem:[#allocation3 + $0x36c] ss:$16 sps:$4 sm:$0xff]  }
 0x941   :  { %3120 = vmatpush1.bf16.msra.mxu1 %v6004_v14  ;;  %3080 = vmatprep.subr.bf16.mxu0 %v6005_v11  ;;  %v6088_v14 = vld [vmem:[#allocation3 + $0x188] ss:$16 sps:$4 sm:$0xff]  }
 0x942   :  { %3121 = vmatprep.subr.bf16.mxu1 %v6007_v30  ;;  %v6091_v11 = vld [vmem:[#allocation3 + $0x368] ss:$16 sps:$4 sm:$0xff]   ;;  %v6096_v30 = vld [vmem:[#allocation3 + $0x1ac] ss:$16 sps:$4 sm:$0xff]  }
 0x944   :  { %3081 = vmatpush1.bf16.msra.mxu0 %v6009_v38  ;;  %v6094_v38 = vld [vmem:[#allocation3 + $0x1a8] ss:$16 sps:$4 sm:$0xff]  }
 0x945   :  { %3122 = vmatpush1.bf16.msra.mxu1 %v6010_v35  ;;  %3082 = vmatprep.subr.bf16.mxu0 %v6011_v39  ;;  %v6097_v35 = vld [vmem:[#allocation3 + $0x388] ss:$16 sps:$4 sm:$0xff]   ;;  %v6102_v39 = vld [vmem:[#allocation3 + $0x1cc] ss:$16 sps:$4 sm:$0xff]  }
 0x946   :  { %5105 = vmatprep.subr.msk.bf16.mxu1 %vm3041_vm3, %v5102_v40  ;;  %v6105_v40 = vld [vmem:[#allocation3 + $0x3ac] ss:$16 sps:$4 sm:$0xff]  }
 0x948   :  { %3083 = vmatpush1.bf16.msra.mxu0 %v6014_v47  ;;  %v6100_v47 = vld [vmem:[#allocation3 + $0x1c8] ss:$16 sps:$4 sm:$0xff]  }
 0x949   :  { %3124 = vmatpush1.bf16.msra.mxu1 %v3043_v6  ;;  %3084 = vmatprep.subr.bf16.mxu0 %v6016_v19  ;;  %v6103_v6 = vld [vmem:[#allocation3 + $0x3a8] ss:$16 sps:$4 sm:$0xff]   ;;  %v6108_v19 = vld [vmem:[#allocation3 + $0x1ec] ss:$16 sps:$4 sm:$0xff]  }
 0x94a   :  { %3136 = vmatprep.subr.bf16.mxu1 %v6020_v20  ;;  %v5104_v20 = vcombine.high %v2426_v9, %v2426_v9 }
 0x94c   :  { %3128 = vmatmul.mubr.bf16.vlgmr.msra.gmra.mrb[32].mxu1 %v7586_v37  ;;  %3085 = vmatpush1.bf16.msra.mxu0 %v6021_v25  ;;  %v6106_v25 = vld [vmem:[#allocation3 + $0x1e8] ss:$16 sps:$4 sm:$0xff]  }
 0x94d   :  { %3137 = vmatpush1.bf16.msra.mxu1 %v6018_v21  ;;  %3177 = vmatprep.subr.bf16.mxu0 %v6027_v36  ;;  %v5103_v21 = vcombine.low %v2426_v9, %v2426_v9  ;;  %v6113_v36 = vld [vmem:[#allocation12 + $0x4] ss:$16 sps:$4 sm:$0xff]   ;;  %v7589_v9 = vld [vmem:[#allocation46_spill] sm:$0xff] }
 0x94e   :  { %3138 = vmatprep.subr.bf16.mxu1 %v6024_v32  ;;  %3168 = vmatprep.mubr.bf16.mxu1 %v7584_v52  ;;  %v6042_v52 = vld [vmem:[#allocation3 + $0x8c] ss:$16 sps:$4 sm:$0xff]  }
 0x94f   :  { %3087 = vmatmul.mubr.bf16.vlgmr.msra.gmra.mrb[32].mxu0 %v7587_v55  ;;  %v3049_v32 = vsel %vm3041_vm3, %v5103_v21, 0 }
 0x950   :  { %3178 = vmatpush1.bf16.msra.mxu0 %v6025_v49  ;;  %5108 = vmatprep.mubr.msk.bf16.mxu0 %vm3037_vm2, %v7585_v18  ;;  %v6049_v18 = vld [vmem:[#allocation3 + $0x288] ss:$16 sps:$4 sm:$0xff]   ;;  %v6111_v49 = vld [vmem:[#allocation12] ss:$16 sps:$4 sm:$0xff]  }
 0x951   :  { %3139 = vmatpush1.bf16.msra.mxu1 %v6022_v41  ;;  %3179 = vmatprep.subr.bf16.mxu0 %v6033_v51  ;;  %v6116_v41 = vld [vmem:[#allocation12 + $0xc] ss:$16 sps:$4 sm:$0xff]   ;;  %v6119_v51 = vld [vmem:[#allocation12 + $0x24] ss:$16 sps:$4 sm:$0xff]  }
 0x952   :  { %3140 = vmatprep.subr.bf16.mxu1 %v6030_v50  ;;  %v6114_v50 = vld [vmem:[#allocation12 + $0x8] ss:$16 sps:$4 sm:$0xff]  }
 0x954   :  { %3180 = vmatpush1.bf16.msra.mxu0 %v6031_v3  ;;  %v6117_v3 = vld [vmem:[#allocation12 + $0x20] ss:$16 sps:$4 sm:$0xff]  }
 0x955   :  { %3141 = vmatpush1.bf16.msra.mxu1 %v6028_v62  ;;  %3181 = vmatprep.subr.bf16.mxu0 %v6039_v13  ;;  %v6122_v62 = vld [vmem:[#allocation12 + $0x2c] ss:$16 sps:$4 sm:$0xff]   ;;  %v6125_v13 = vld [vmem:[#allocation12 + $0x44] ss:$16 sps:$4 sm:$0xff]  }
 0x956   :  { %3142 = vmatprep.subr.bf16.mxu1 %v6036_v4  ;;  %v6120_v4 = vld [vmem:[#allocation12 + $0x28] ss:$16 sps:$4 sm:$0xff]  }
 0x958   :  { %3182 = vmatpush1.bf16.msra.mxu0 %v6037_v26  ;;  %v6358_v26 = vmov 0  }
 0x959   :  { %3143 = vmatpush1.bf16.msra.mxu1 %v6034_v24  ;;  %3183 = vmatprep.subr.bf16.mxu0 %v6045_v27  ;;  %v6128_v24 = vld [vmem:[#allocation12 + $0x4c] ss:$16 sps:$4 sm:$0xff]   ;;  %v6126_v27 = vld [vmem:[#allocation12 + $0x48] ss:$16 sps:$4 sm:$0xff]  }
 0x95a   :  { %3144 = vmatprep.subr.bf16.mxu1 %v6042_v52  ;;  %v6123_v52 = vld [vmem:[#allocation12 + $0x40] ss:$16 sps:$4 sm:$0xff]  }
 0x95c   :  { %3184 = vmatpush1.bf16.msra.mxu0 %v6043_v42  ;;  %v6132_v42 = vld [vmem:[#allocation12 + $0x68] ss:$16 sps:$4 sm:$0xff]  }
 0x95d   :  { %3145 = vmatpush1.bf16.msra.mxu1 %v6040_v31  ;;  %3185 = vmatprep.subr.bf16.mxu0 %v6051_v46  ;;  %v6134_v31 = vld [vmem:[#allocation12 + $0x6c] ss:$16 sps:$4 sm:$0xff]  }
 0x95e   :  { %3146 = vmatprep.subr.bf16.mxu1 %v6048_v45  ;;  %v6137_v45 = vld [vmem:[#allocation12 + $0x84] ss:$16 sps:$4 sm:$0xff]   ;;  %v6140_v46 = vld [vmem:[#allocation12 + $0x8c] ss:$16 sps:$4 sm:$0xff]  }
 0x960   :  { %3186 = vmatpush1.bf16.msra.mxu0 %v6049_v18  ;;  %v6138_v18 = vld [vmem:[#allocation12 + $0x88] ss:$16 sps:$4 sm:$0xff]  }
 0x961   :  { %3147 = vmatpush1.bf16.msra.mxu1 %v6046_v53  ;;  %3187 = vmatprep.subr.bf16.mxu0 %v6057_v63  ;;  %v6135_v53 = vld [vmem:[#allocation12 + $0x80] ss:$16 sps:$4 sm:$0xff]   ;;  %v6146_v63 = vld [vmem:[#allocation12 + $0xac] ss:$16 sps:$4 sm:$0xff]  }
 0x962   :  { %3148 = vmatprep.subr.bf16.mxu1 %v6054_v61  ;;  %v6143_v61 = vld [vmem:[#allocation12 + $0xa4] ss:$16 sps:$4 sm:$0xff]  }
 0x964   :  { %3188 = vmatpush1.bf16.msra.mxu0 %v6055_v10  ;;  %v6144_v10 = vld [vmem:[#allocation12 + $0xa8] ss:$16 sps:$4 sm:$0xff]  }
 0x965   :  { %3149 = vmatpush1.bf16.msra.mxu1 %v6052_v0  ;;  %3189 = vmatprep.subr.bf16.mxu0 %v6063_v16  ;;  %v6141_v0 = vld [vmem:[#allocation12 + $0xa0] ss:$16 sps:$4 sm:$0xff]   ;;  %v6152_v16 = vld [vmem:[#allocation12 + $0xcc] ss:$16 sps:$4 sm:$0xff]  }
 0x966   :  { %3150 = vmatprep.subr.bf16.mxu1 %v6060_v15  ;;  %v6149_v15 = vld [vmem:[#allocation12 + $0xc4] ss:$16 sps:$4 sm:$0xff]  }
 0x968   :  { %3190 = vmatpush1.bf16.msra.mxu0 %v6061_v58  ;;  %v6150_v58 = vld [vmem:[#allocation12 + $0xc8] ss:$16 sps:$4 sm:$0xff]  }
 0x969   :  { %3151 = vmatpush1.bf16.msra.mxu1 %v6058_v28  ;;  %3191 = vmatprep.subr.bf16.mxu0 %v6069_v8  ;;  %v6147_v28 = vld [vmem:[#allocation12 + $0xc0] ss:$16 sps:$4 sm:$0xff]   ;;  %v6158_v8 = vld [vmem:[#allocation12 + $0xec] ss:$16 sps:$4 sm:$0xff]  }
 0x96a   :  { %3152 = vmatprep.subr.bf16.mxu1 %v6066_v57  ;;  %v6155_v57 = vld [vmem:[#allocation12 + $0xe4] ss:$16 sps:$4 sm:$0xff]  }
 0x96c   :  { %3192 = vmatpush1.bf16.msra.mxu0 %v6067_v44  ;;  %v6156_v44 = vld [vmem:[#allocation12 + $0xe8] ss:$16 sps:$4 sm:$0xff]  }
 0x96d   :  { %3153 = vmatpush1.bf16.msra.mxu1 %v6064_v22  ;;  %3193 = vmatprep.subr.bf16.mxu0 %v6075_v48  ;;  %v6153_v22 = vld [vmem:[#allocation12 + $0xe0] ss:$16 sps:$4 sm:$0xff]  }
 0x96e   :  { %3154 = vmatprep.subr.bf16.mxu1 %v6072_v60 }
 0x970   :  { %3194 = vmatpush1.bf16.msra.mxu0 %v6073_v12 }
 0x971   :  { %3155 = vmatpush1.bf16.msra.mxu1 %v6070_v17  ;;  %3195 = vmatprep.subr.bf16.mxu0 %v6081_v1 }
 0x972   :  { %3156 = vmatprep.subr.bf16.mxu1 %v6078_v23 }
 0x974   :  { %3196 = vmatpush1.bf16.msra.mxu0 %v6079_v5 }
 0x975   :  { %3157 = vmatpush1.bf16.msra.mxu1 %v6076_v56  ;;  %3197 = vmatprep.subr.bf16.mxu0 %v6087_v7 }
 0x976   :  { %3158 = vmatprep.subr.bf16.mxu1 %v6084_v54 }
 0x978   :  { %3198 = vmatpush1.bf16.msra.mxu0 %v6085_v59 }
 0x979   :  { %3159 = vmatpush1.bf16.msra.mxu1 %v6082_v29  ;;  %3199 = vmatprep.subr.bf16.mxu0 %v6093_v2 }
 0x97a   :  { %3160 = vmatprep.subr.bf16.mxu1 %v6090_v33 }
 0x97c   :  { %3200 = vmatpush1.bf16.msra.mxu0 %v6091_v11 }
 0x97d   :  { %3161 = vmatpush1.bf16.msra.mxu1 %v6088_v14  ;;  %3201 = vmatprep.subr.bf16.mxu0 %v6099_v34 }
 0x97e   :  { %3162 = vmatprep.subr.bf16.mxu1 %v6096_v30 }
 0x980   :  { %3202 = vmatpush1.bf16.msra.mxu0 %v6097_v35  ;;  %v3460_v35 = vld [vmem:[%s7496_s6] sm:$0xf] }
 0x981   :  { %3163 = vmatpush1.bf16.msra.mxu1 %v6094_v38  ;;  %3203 = vmatprep.subr.bf16.mxu0 %v6105_v40 }
 0x982   :  { %3164 = vmatprep.subr.bf16.mxu1 %v6102_v39  ;;  %v7588_v39 = vld [vmem:[#allocation47_spill] sm:$0xff] }
 0x983   :  { %v3465_v40 = vrot.slane %v3460_v35, %v7588_v39 }
 0x984   :  { %3204 = vmatpush1.bf16.msra.mxu0 %v6103_v6 }
 0x985   :  { %3165 = vmatpush1.bf16.msra.mxu1 %v6100_v47  ;;  %5107 = vmatprep.subr.msk.bf16.mxu0 %vm3041_vm3, %v5104_v20  ;;  %v3473_v47 = vrot.slane %v3460_v35, %v7589_v9  ;;  %v7590_v20 = vld [vmem:[#allocation49_spill] sm:$0xff] }
 0x986   :  { %3166 = vmatprep.subr.bf16.mxu1 %v6108_v19  ;;  %v3469_v21 = vrot.slane %v3460_v35, %v7590_v20 }
 0x988   :  { %3206 = vmatpush1.bf16.msra.mxu0 %v3049_v32 }
 0x989   :  { %3167 = vmatpush1.bf16.msra.mxu1 %v6106_v25  ;;  %3378 = vmatprep.subr.bf16.mxu0 %v6113_v36  ;;  %v7591_v25 = vld [vmem:[#allocation48_spill] sm:$0xff] }
 0x98a   :  { %3419 = vmatprep.subr.bf16.mxu1 %v6116_v41  ;;  %v3477_v32 = vrot.slane %v3460_v35, %v7591_v25 }
 0x98b   :  { %3210 = vmatmul.mubr.bf16.vlgmr.msra.gmra.mrb[36].mxu0 %v7586_v37  ;;  %v6129_v37 = vld [vmem:[#allocation12 + $0x60] ss:$16 sps:$4 sm:$0xff]  }
 0x98c   :  { %3169 = vmatmul.mubr.bf16.vlgmr.msra.gmra.mrb[36].mxu1 %v7587_v55  ;;  %3379 = vmatpush1.bf16.msra.mxu0 %v6111_v49  ;;  %v6131_v55 = vld [vmem:[#allocation12 + $0x64] ss:$16 sps:$4 sm:$0xff]  }
 0x98d   :  { %3420 = vmatpush1.bf16.msra.mxu1 %v6114_v50  ;;  %3380 = vmatprep.subr.bf16.mxu0 %v6119_v51 }
 0x98e   :  { %3421 = vmatprep.subr.bf16.mxu1 %v6122_v62  ;;  %3410 = vmatprep.mubr.bf16.mxu0 %v6358_v26 }
 0x98f   :  { %3451 = vmatprep.mubr.bf16.mxu1 %v6358_v26 }
 0x990   :  { %3381 = vmatpush1.bf16.msra.mxu0 %v6117_v3 }
 0x991   :  { %3422 = vmatpush1.bf16.msra.mxu1 %v6120_v4  ;;  %3382 = vmatprep.subr.bf16.mxu0 %v6125_v13 }
 0x992   :  { %3423 = vmatprep.subr.bf16.mxu1 %v6128_v24 }
 0x994   :  { %3383 = vmatpush1.bf16.msra.mxu0 %v6123_v52 }
 0x995   :  { %3424 = vmatpush1.bf16.msra.mxu1 %v6126_v27  ;;  %3384 = vmatprep.subr.bf16.mxu0 %v6131_v55 }
 0x996   :  { %3425 = vmatprep.subr.bf16.mxu1 %v6134_v31 }
 0x998   :  { %3385 = vmatpush1.bf16.msra.mxu0 %v6129_v37 }
 0x999   :  { %3426 = vmatpush1.bf16.msra.mxu1 %v6132_v42  ;;  %3386 = vmatprep.subr.bf16.mxu0 %v6137_v45 }
 0x99a   :  { %3427 = vmatprep.subr.bf16.mxu1 %v6140_v46 }
 0x99c   :  { %3387 = vmatpush1.bf16.msra.mxu0 %v6135_v53 }
 0x99d   :  { %3428 = vmatpush1.bf16.msra.mxu1 %v6138_v18  ;;  %3388 = vmatprep.subr.bf16.mxu0 %v6143_v61 }
 0x99e   :  { %3429 = vmatprep.subr.bf16.mxu1 %v6146_v63 }
 0x9a0   :  { %3389 = vmatpush1.bf16.msra.mxu0 %v6141_v0 }
 0x9a1   :  { %3430 = vmatpush1.bf16.msra.mxu1 %v6144_v10  ;;  %3390 = vmatprep.subr.bf16.mxu0 %v6149_v15 }
 0x9a2   :  { %3431 = vmatprep.subr.bf16.mxu1 %v6152_v16 }
 0x9a4   :  { %3391 = vmatpush1.bf16.msra.mxu0 %v6147_v28 }
 0x9a5   :  { %3432 = vmatpush1.bf16.msra.mxu1 %v6150_v58  ;;  %3392 = vmatprep.subr.bf16.mxu0 %v6155_v57 }
 0x9a6   :  { %3433 = vmatprep.subr.bf16.mxu1 %v6158_v8 }
 0x9a8   :  { %3393 = vmatpush1.bf16.msra.mxu0 %v6153_v22 }
 0x9a9   :  { %3434 = vmatpush1.bf16.msra.mxu1 %v6156_v44 }
 0x9ab   :  { %3411 = vmatmul.mubr.bf16.vlgmr.msra.gmra.mrb[40].mxu0 %v7363_v43 }
 0x9ac   :  { %3452 = vmatmul.mubr.bf16.vlgmr.msra.gmra.mrb[40].mxu1 %v7363_v43 }
 0xa1f   :  { %v3129_v60 = vpop.f32.mrb[32].mxu1 }
 0xa20   :  { %v3131_v48 = vpop.f32.mrb[33].mxu1 }
 0xa21   :  { %v3133_v17 = vpop.f32.mrb[34].mxu1 }
 0xa22   :  { %v3134_v12 = vpop.f32.mrb[35].mxu1  ;;  %v3088_v23 = vpop.f32.mrb[32].mxu0 }
 0xa23   :  { %v3130_v1 = vadd.f32 %v3129_v60, %v3088_v23  ;;  %v3090_v56 = vpop.f32.mrb[33].mxu0 }
 0xa24   :  { %v3132_v5 = vadd.f32 %v3131_v48, %v3090_v56  ;;  %v3092_v54 = vpop.f32.mrb[34].mxu0 }
 0xa25   :  { %v3093_v7 = vpop.f32.mrb[35].mxu0 }
 0xa5e   :  { %v3211_v59 = vpop.f32.mrb[36].mxu0 }
 0xa5f   :  { %v3170_v29 = vpop.f32.mrb[36].mxu1  ;;  %v3213_v14 = vpop.f32.mrb[37].mxu0 }
 0xa60   :  { %v3212_v33 = vadd.f32 %v3211_v59, %v3170_v29  ;;  %v3172_v2 = vpop.f32.mrb[37].mxu1  ;;  %v3215_v34 = vpop.f32.mrb[38].mxu0 }
 0xa61   :  { %v3214_v11 = vadd.f32 %v3213_v14, %v3172_v2  ;;  %v3174_v30 = vpop.f32.mrb[38].mxu1  ;;  %v3216_v43 = vpop.f32.mrb[39].mxu0 }
 0xa62   :  { %v3175_v38 = vpop.f32.mrb[39].mxu1 }
 0xa7e   :  { %v3412_v6 = vpop.f32.mrb[40].mxu0 }
 0xa7f   :  { %v3453_v19 = vpop.f32.mrb[40].mxu1  ;;  %v3413_v36 = vadd.f32 %v3412_v6, %v3130_v1  ;;  %v3414_v49 = vpop.f32.mrb[41].mxu0 }
 0xa80   :  { %v3454_v41 = vadd.f32 %v3453_v19, %v3212_v33  ;;  %v3455_v50 = vpop.f32.mrb[41].mxu1  ;;  %v3415_v51 = vadd.f32 %v3414_v49, %v3132_v5  ;;  %v3416_v3 = vpop.f32.mrb[42].mxu0 }
 0xa81   :  { %v3456_v62 = vadd.f32 %v3455_v50, %v3214_v11  ;;  %v3457_v4 = vpop.f32.mrb[42].mxu1  ;;  %v7388_v13 = vadd.f32 %v3465_v40, %v3413_v36  ;;  %v3417_v26 = vpop.f32.mrb[43].mxu0 }
 0xa82   :  { %v7390_v24 = vadd.f32 %v3473_v47, %v3454_v41  ;;  %v3458_v52 = vpop.f32.mrb[43].mxu1  ;;  %v3483_v27 = vadd.f32 %v3469_v21, %v3415_v51 }
 0xa83   :  { %v7392_v55 = vadd.f32 %v3477_v32, %v3456_v62  ;;  %v3486_v31 = vmax.f32 %v7388_v13, 0.0 }
 0xa84   :  { %v3488_v37 = vmax.f32 %v7390_v24, 0.0  ;;  %v3487_v42 = vmax.f32 %v3483_v27, 0.0 }
 0xa85   :  { %v3489_v45 = vmax.f32 %v7392_v55, 0.0 }
 0xa86   :  { %6323 = dma.done.wait [#allocation8 + $0x1], 16384 }
 0xa87   :  { %6324 = vsyncadd [#allocation8 + $0x1], 4294950912  ;;  %v3495_v46 = vpack.c.bf16 %v3487_v42, %v3487_v42  ;;  %v3499_v53 = vld [vmem:[#allocation4 + $0x8] sm:$0xff]  ;;  %v3501_v18 = vld [vmem:[#allocation4 + $0x18] sm:$0xff] }
 0xa88   :  { %v3498_v61 = vld [vmem:[#allocation4] sm:$0xff]  ;;  %3648 = vmatprep.subr.bf16.mxu0 %v3499_v53  ;;  %3730 = vmatprep.subr.bf16.mxu1 %v3501_v18  ;;  %v3500_v63 = vld [vmem:[#allocation4 + $0x10] sm:$0xff]  ;;  %v3503_v0 = vld [vmem:[#allocation4 + $0x28] sm:$0xff] }
 0xa89   :  { %3680 = vmatprep.mubr.bf16.mxu0 %v3495_v46  ;;  %3762 = vmatprep.mubr.bf16.mxu1 %v3495_v46  ;;  %v3505_v10 = vld [vmem:[#allocation4 + $0x38] sm:$0xff]  ;;  %v3502_v15 = vld [vmem:[#allocation4 + $0x20] sm:$0xff]  ;;  %v3504_v16 = vld [vmem:[#allocation4 + $0x30] sm:$0xff] }
 0xa8a   :  { %3649 = vmatpush1.bf16.msra.mxu0 %v3498_v61  ;;  %3731 = vmatpush1.bf16.msra.mxu1 %v3500_v63  ;;  %v3507_v28 = vld [vmem:[#allocation4 + $0x48] sm:$0xff]  ;;  %v3509_v58 = vld [vmem:[#allocation4 + $0x58] sm:$0xff]  ;;  %v3506_v57 = vld [vmem:[#allocation4 + $0x40] sm:$0xff] }
 0xa8b   :  { %3650 = vmatprep.subr.bf16.mxu0 %v3503_v0  ;;  %3732 = vmatprep.subr.bf16.mxu1 %v3505_v10  ;;  %v3508_v8 = vld [vmem:[#allocation4 + $0x50] sm:$0xff]  ;;  %v3511_v22 = vld [vmem:[#allocation4 + $0x68] sm:$0xff]  ;;  %v3513_v44 = vld [vmem:[#allocation4 + $0x78] sm:$0xff] }
 0xa8c   :  { %v3510_v60 = vld [vmem:[#allocation4 + $0x60] sm:$0xff]  ;;  %v3512_v48 = vld [vmem:[#allocation4 + $0x70] sm:$0xff]  ;;  %v3515_v17 = vld [vmem:[#allocation4 + $0x88] sm:$0xff] }
 0xa8d   :  { %v3517_v12 = vld [vmem:[#allocation4 + $0x98] sm:$0xff]  ;;  %v3514_v23 = vld [vmem:[#allocation4 + $0x80] sm:$0xff]  ;;  %v3516_v1 = vld [vmem:[#allocation4 + $0x90] sm:$0xff] }
 0xa8e   :  { %3651 = vmatpush1.bf16.msra.mxu0 %v3502_v15  ;;  %3733 = vmatpush1.bf16.msra.mxu1 %v3504_v16  ;;  %v3519_v56 = vld [vmem:[#allocation4 + $0xa8] sm:$0xff]  ;;  %v3521_v5 = vld [vmem:[#allocation4 + $0xb8] sm:$0xff]  ;;  %v3518_v54 = vld [vmem:[#allocation4 + $0xa0] sm:$0xff] }
 0xa8f   :  { %3652 = vmatprep.subr.bf16.mxu0 %v3507_v28  ;;  %3734 = vmatprep.subr.bf16.mxu1 %v3509_v58  ;;  %v3520_v7 = vld [vmem:[#allocation4 + $0xb0] sm:$0xff]  ;;  %v3523_v29 = vld [vmem:[#allocation4 + $0xc8] sm:$0xff]  ;;  %v3525_v59 = vld [vmem:[#allocation4 + $0xd8] sm:$0xff] }
 0xa90   :  { %v3522_v33 = vld [vmem:[#allocation4 + $0xc0] sm:$0xff]  ;;  %v3524_v2 = vld [vmem:[#allocation4 + $0xd0] sm:$0xff]  ;;  %v3527_v14 = vld [vmem:[#allocation4 + $0xe8] sm:$0xff] }
 0xa91   :  { %v3529_v11 = vld [vmem:[#allocation4 + $0xf8] sm:$0xff]  ;;  %v3526_v30 = vld [vmem:[#allocation4 + $0xe0] sm:$0xff]  ;;  %v3528_v34 = vld [vmem:[#allocation4 + $0xf0] sm:$0xff] }
 0xa92   :  { %3653 = vmatpush1.bf16.msra.mxu0 %v3506_v57  ;;  %3735 = vmatpush1.bf16.msra.mxu1 %v3508_v8  ;;  %v3531_v38 = vld [vmem:[#allocation4 + $0x108] sm:$0xff]  ;;  %v3533_v43 = vld [vmem:[#allocation4 + $0x118] sm:$0xff]  ;;  %v3530_v35 = vld [vmem:[#allocation4 + $0x100] sm:$0xff] }
 0xa93   :  { %3654 = vmatprep.subr.bf16.mxu0 %v3511_v22  ;;  %3736 = vmatprep.subr.bf16.mxu1 %v3513_v44  ;;  %v3532_v40 = vld [vmem:[#allocation4 + $0x110] sm:$0xff]  ;;  %v3535_v47 = vld [vmem:[#allocation4 + $0x128] sm:$0xff]  ;;  %v3537_v6 = vld [vmem:[#allocation4 + $0x138] sm:$0xff]  ;;  %v3494_v22 = vpack.c.bf16 %v3486_v31, %v3486_v31 }
 0xa94   :  { %v3534_v19 = vld [vmem:[#allocation4 + $0x120] sm:$0xff]  ;;  %v3536_v21 = vld [vmem:[#allocation4 + $0x130] sm:$0xff]  ;;  %v3539_v32 = vld [vmem:[#allocation4 + $0x148] sm:$0xff] }
 0xa95   :  { %v3541_v36 = vld [vmem:[#allocation4 + $0x158] sm:$0xff]  ;;  %v3538_v41 = vld [vmem:[#allocation4 + $0x140] sm:$0xff]  ;;  %v3540_v49 = vld [vmem:[#allocation4 + $0x150] sm:$0xff] }
 0xa96   :  { %3655 = vmatpush1.bf16.msra.mxu0 %v3510_v60  ;;  %3737 = vmatpush1.bf16.msra.mxu1 %v3512_v48  ;;  %v3543_v50 = vld [vmem:[#allocation4 + $0x168] sm:$0xff]  ;;  %v3545_v51 = vld [vmem:[#allocation4 + $0x178] sm:$0xff]  ;;  %v3542_v62 = vld [vmem:[#allocation4 + $0x160] sm:$0xff] }
 0xa97   :  { %3656 = vmatprep.subr.bf16.mxu0 %v3515_v17  ;;  %3738 = vmatprep.subr.bf16.mxu1 %v3517_v12  ;;  %v3544_v3 = vld [vmem:[#allocation4 + $0x170] sm:$0xff]  ;;  %v3547_v4 = vld [vmem:[#allocation4 + $0x188] sm:$0xff]  ;;  %v3549_v26 = vld [vmem:[#allocation4 + $0x198] sm:$0xff]  ;;  %v3497_v12 = vpack.c.bf16 %v3489_v45, %v3489_v45 }
 0xa98   :  { %v3546_v52 = vld [vmem:[#allocation4 + $0x180] sm:$0xff]  ;;  %v3548_v27 = vld [vmem:[#allocation4 + $0x190] sm:$0xff]  ;;  %v3551_v42 = vld [vmem:[#allocation4 + $0x1a8] sm:$0xff] }
 0xa99   :  { %v3553_v46 = vld [vmem:[#allocation4 + $0x1b8] sm:$0xff]  ;;  %v3550_v53 = vld [vmem:[#allocation4 + $0x1a0] sm:$0xff]  ;;  %v3552_v18 = vld [vmem:[#allocation4 + $0x1b0] sm:$0xff] }
 0xa9a   :  { %3657 = vmatpush1.bf16.msra.mxu0 %v3514_v23  ;;  %3739 = vmatpush1.bf16.msra.mxu1 %v3516_v1  ;;  %v3555_v61 = vld [vmem:[#allocation4 + $0x1c8] sm:$0xff]  ;;  %v3557_v63 = vld [vmem:[#allocation4 + $0x1d8] sm:$0xff]  ;;  %v3554_v0 = vld [vmem:[#allocation4 + $0x1c0] sm:$0xff] }
 0xa9b   :  { %3658 = vmatprep.subr.bf16.mxu0 %v3519_v56  ;;  %3740 = vmatprep.subr.bf16.mxu1 %v3521_v5  ;;  %v3556_v10 = vld [vmem:[#allocation4 + $0x1d0] sm:$0xff]  ;;  %v3559_v15 = vld [vmem:[#allocation4 + $0x1e8] sm:$0xff]  ;;  %v3561_v16 = vld [vmem:[#allocation4 + $0x1f8] sm:$0xff] }
 0xa9c   :  { %v3558_v28 = vld [vmem:[#allocation4 + $0x1e0] sm:$0xff]  ;;  %v3560_v58 = vld [vmem:[#allocation4 + $0x1f0] sm:$0xff]  ;;  %v3563_v57 = vld [vmem:[#allocation4 + $0x208] sm:$0xff] }
 0xa9d   :  { %v3565_v8 = vld [vmem:[#allocation4 + $0x218] sm:$0xff]  ;;  %v3562_v44 = vld [vmem:[#allocation4 + $0x200] sm:$0xff]  ;;  %v3564_v60 = vld [vmem:[#allocation4 + $0x210] sm:$0xff] }
 0xa9e   :  { %3659 = vmatpush1.bf16.msra.mxu0 %v3518_v54  ;;  %3741 = vmatpush1.bf16.msra.mxu1 %v3520_v7  ;;  %v3567_v48 = vld [vmem:[#allocation4 + $0x228] sm:$0xff]  ;;  %v3569_v17 = vld [vmem:[#allocation4 + $0x238] sm:$0xff]  ;;  %v3566_v13 = vld [vmem:[#allocation4 + $0x220] sm:$0xff] }
 0xa9f   :  { %3660 = vmatprep.subr.bf16.mxu0 %v3523_v29  ;;  %3742 = vmatprep.subr.bf16.mxu1 %v3525_v59  ;;  %v3568_v31 = vld [vmem:[#allocation4 + $0x230] sm:$0xff]  ;;  %v3571_v23 = vld [vmem:[#allocation4 + $0x248] sm:$0xff]  ;;  %v3573_v1 = vld [vmem:[#allocation4 + $0x258] sm:$0xff] }
 0xaa0   :  { %v3570_v56 = vld [vmem:[#allocation4 + $0x240] sm:$0xff]  ;;  %v3572_v55 = vld [vmem:[#allocation4 + $0x250] sm:$0xff]  ;;  %v3575_v5 = vld [vmem:[#allocation4 + $0x268] sm:$0xff] }
 0xaa1   :  { %v3577_v45 = vld [vmem:[#allocation4 + $0x278] sm:$0xff]  ;;  %v3574_v54 = vld [vmem:[#allocation4 + $0x260] sm:$0xff]  ;;  %v3576_v7 = vld [vmem:[#allocation4 + $0x270] sm:$0xff] }
 0xaa2   :  { %3661 = vmatpush1.bf16.msra.mxu0 %v3522_v33  ;;  %3743 = vmatpush1.bf16.msra.mxu1 %v3524_v2  ;;  %v3579_v29 = vld [vmem:[#allocation4 + $0x288] sm:$0xff]  ;;  %v3581_v59 = vld [vmem:[#allocation4 + $0x298] sm:$0xff]  ;;  %v3578_v33 = vld [vmem:[#allocation4 + $0x280] sm:$0xff] }
 0xaa3   :  { %3662 = vmatprep.subr.bf16.mxu0 %v3527_v14  ;;  %3744 = vmatprep.subr.bf16.mxu1 %v3529_v11  ;;  %v3580_v2 = vld [vmem:[#allocation4 + $0x290] sm:$0xff]  ;;  %v3583_v14 = vld [vmem:[#allocation4 + $0x2a8] sm:$0xff]  ;;  %v3585_v11 = vld [vmem:[#allocation4 + $0x2b8] sm:$0xff] }
 0xaa6   :  { %3663 = vmatpush1.bf16.msra.mxu0 %v3526_v30  ;;  %3745 = vmatpush1.bf16.msra.mxu1 %v3528_v34  ;;  %v3582_v30 = vld [vmem:[#allocation4 + $0x2a0] sm:$0xff]  ;;  %v3584_v34 = vld [vmem:[#allocation4 + $0x2b0] sm:$0xff] }
 0xaa7   :  { %3664 = vmatprep.subr.bf16.mxu0 %v3531_v38  ;;  %3746 = vmatprep.subr.bf16.mxu1 %v3533_v43  ;;  %v3587_v38 = vld [vmem:[#allocation4 + $0x2c8] sm:$0xff]  ;;  %v3589_v43 = vld [vmem:[#allocation4 + $0x2d8] sm:$0xff] }
 0xaaa   :  { %3665 = vmatpush1.bf16.msra.mxu0 %v3530_v35  ;;  %3747 = vmatpush1.bf16.msra.mxu1 %v3532_v40  ;;  %v3586_v35 = vld [vmem:[#allocation4 + $0x2c0] sm:$0xff]  ;;  %v3588_v40 = vld [vmem:[#allocation4 + $0x2d0] sm:$0xff] }
 0xaab   :  { %3666 = vmatprep.subr.bf16.mxu0 %v3535_v47  ;;  %3748 = vmatprep.subr.bf16.mxu1 %v3537_v6  ;;  %v3591_v47 = vld [vmem:[#allocation4 + $0x2e8] sm:$0xff]  ;;  %v3593_v6 = vld [vmem:[#allocation4 + $0x2f8] sm:$0xff] }
 0xaae   :  { %3667 = vmatpush1.bf16.msra.mxu0 %v3534_v19  ;;  %3749 = vmatpush1.bf16.msra.mxu1 %v3536_v21  ;;  %v3590_v19 = vld [vmem:[#allocation4 + $0x2e0] sm:$0xff]  ;;  %v3592_v21 = vld [vmem:[#allocation4 + $0x2f0] sm:$0xff] }
 0xaaf   :  { %3668 = vmatprep.subr.bf16.mxu0 %v3539_v32  ;;  %3750 = vmatprep.subr.bf16.mxu1 %v3541_v36  ;;  %v3595_v32 = vld [vmem:[#allocation4 + $0x308] sm:$0xff]  ;;  %v3597_v36 = vld [vmem:[#allocation4 + $0x318] sm:$0xff] }
 0xab2   :  { %3669 = vmatpush1.bf16.msra.mxu0 %v3538_v41  ;;  %3751 = vmatpush1.bf16.msra.mxu1 %v3540_v49  ;;  %v3594_v41 = vld [vmem:[#allocation4 + $0x300] sm:$0xff]  ;;  %v3596_v49 = vld [vmem:[#allocation4 + $0x310] sm:$0xff] }
 0xab3   :  { %3670 = vmatprep.subr.bf16.mxu0 %v3543_v50  ;;  %3752 = vmatprep.subr.bf16.mxu1 %v3545_v51  ;;  %v3599_v50 = vld [vmem:[#allocation4 + $0x328] sm:$0xff]  ;;  %v3601_v51 = vld [vmem:[#allocation4 + $0x338] sm:$0xff] }
 0xab6   :  { %3671 = vmatpush1.bf16.msra.mxu0 %v3542_v62  ;;  %3753 = vmatpush1.bf16.msra.mxu1 %v3544_v3  ;;  %v3598_v62 = vld [vmem:[#allocation4 + $0x320] sm:$0xff]  ;;  %v3600_v3 = vld [vmem:[#allocation4 + $0x330] sm:$0xff] }
 0xab7   :  { %3672 = vmatprep.subr.bf16.mxu0 %v3547_v4  ;;  %3754 = vmatprep.subr.bf16.mxu1 %v3549_v26  ;;  %v3603_v4 = vld [vmem:[#allocation4 + $0x348] sm:$0xff]  ;;  %v3605_v26 = vld [vmem:[#allocation4 + $0x358] sm:$0xff] }
 0xaba   :  { %3673 = vmatpush1.bf16.msra.mxu0 %v3546_v52  ;;  %3755 = vmatpush1.bf16.msra.mxu1 %v3548_v27  ;;  %v3602_v52 = vld [vmem:[#allocation4 + $0x340] sm:$0xff]  ;;  %v3604_v27 = vld [vmem:[#allocation4 + $0x350] sm:$0xff] }
 0xabb   :  { %3674 = vmatprep.subr.bf16.mxu0 %v3551_v42  ;;  %3756 = vmatprep.subr.bf16.mxu1 %v3553_v46  ;;  %v3607_v42 = vld [vmem:[#allocation4 + $0x368] sm:$0xff]  ;;  %v3609_v46 = vld [vmem:[#allocation4 + $0x378] sm:$0xff] }
 0xabe   :  { %3675 = vmatpush1.bf16.msra.mxu0 %v3550_v53  ;;  %3757 = vmatpush1.bf16.msra.mxu1 %v3552_v18  ;;  %v3606_v53 = vld [vmem:[#allocation4 + $0x360] sm:$0xff]  ;;  %v3608_v18 = vld [vmem:[#allocation4 + $0x370] sm:$0xff] }
 0xabf   :  { %3676 = vmatprep.subr.bf16.mxu0 %v3555_v61  ;;  %3758 = vmatprep.subr.bf16.mxu1 %v3557_v63  ;;  %v3611_v61 = vld [vmem:[#allocation4 + $0x388] sm:$0xff]  ;;  %v3613_v63 = vld [vmem:[#allocation4 + $0x398] sm:$0xff] }
 0xac2   :  { %3677 = vmatpush1.bf16.msra.mxu0 %v3554_v0  ;;  %3759 = vmatpush1.bf16.msra.mxu1 %v3556_v10  ;;  %v3610_v0 = vld [vmem:[#allocation4 + $0x380] sm:$0xff]  ;;  %v3612_v10 = vld [vmem:[#allocation4 + $0x390] sm:$0xff] }
 0xac3   :  { %3678 = vmatprep.subr.bf16.mxu0 %v3559_v15  ;;  %3760 = vmatprep.subr.bf16.mxu1 %v3561_v16  ;;  %v3615_v15 = vld [vmem:[#allocation4 + $0x3a8] sm:$0xff]  ;;  %v3617_v16 = vld [vmem:[#allocation4 + $0x3b8] sm:$0xff] }
 0xac6   :  { %3679 = vmatpush1.bf16.msra.mxu0 %v3558_v28  ;;  %3761 = vmatpush1.bf16.msra.mxu1 %v3560_v58  ;;  %v3614_v28 = vld [vmem:[#allocation4 + $0x3a0] sm:$0xff]  ;;  %v3616_v58 = vld [vmem:[#allocation4 + $0x3b0] sm:$0xff] }
 0xac7   :  { %3689 = vmatprep.subr.bf16.mxu0 %v3563_v57  ;;  %3771 = vmatprep.subr.bf16.mxu1 %v3565_v8  ;;  %v3619_v57 = vld [vmem:[#allocation4 + $0x3c8] sm:$0xff]  ;;  %v3621_v8 = vld [vmem:[#allocation4 + $0x3d8] sm:$0xff] }
 0xac9   :  { %3681 = vmatmul.mubr.bf16.vlgmr.msra.gmra.mrb[44].mxu0 %v3494_v22  ;;  %3763 = vmatmul.mubr.bf16.vlgmr.msra.gmra.mrb[44].mxu1 %v3494_v22  ;;  %v3618_v22 = vld [vmem:[#allocation4 + $0x3c0] sm:$0xff] }
 0xaca   :  { %3690 = vmatpush1.bf16.msra.mxu0 %v3562_v44  ;;  %3772 = vmatpush1.bf16.msra.mxu1 %v3564_v60  ;;  %v3620_v44 = vld [vmem:[#allocation4 + $0x3d0] sm:$0xff]  ;;  %v3623_v60 = vld [vmem:[#allocation4 + $0x3e8] sm:$0xff] }
 0xacb   :  { %3691 = vmatprep.subr.bf16.mxu0 %v3567_v48  ;;  %3773 = vmatprep.subr.bf16.mxu1 %v3569_v17  ;;  %v3625_v48 = vld [vmem:[#allocation4 + $0x3f8] sm:$0xff]  ;;  %v3622_v17 = vld [vmem:[#allocation4 + $0x3e0] sm:$0xff] }
 0xacc   :  { %3721 = vmatprep.mubr.bf16.mxu0 %v3497_v12  ;;  %3803 = vmatprep.mubr.bf16.mxu1 %v3497_v12  ;;  %v3624_v12 = vld [vmem:[#allocation4 + $0x3f0] sm:$0xff] }
 0xace   :  { %3692 = vmatpush1.bf16.msra.mxu0 %v3566_v13  ;;  %3774 = vmatpush1.bf16.msra.mxu1 %v3568_v31  ;;  %v3496_v13 = vpack.c.bf16 %v3488_v37, %v3488_v37  ;;  %v3626_v31 = vld [vmem:[#allocation14] sm:$0xf] }
 0xacf   :  { %3693 = vmatprep.subr.bf16.mxu0 %v3571_v23  ;;  %3775 = vmatprep.subr.bf16.mxu1 %v3573_v1  ;;  %v3631_v23 = vrot.slane %v3626_v31, %v7588_v39  ;;  %v3639_v1 = vrot.slane %v3626_v31, %v7589_v9 }
 0xad2   :  { %3694 = vmatpush1.bf16.msra.mxu0 %v3570_v56  ;;  %3776 = vmatpush1.bf16.msra.mxu1 %v3572_v55  ;;  %v3635_v56 = vrot.slane %v3626_v31, %v7590_v20  ;;  %v3643_v55 = vrot.slane %v3626_v31, %v7591_v25 }
 0xad3   :  { %3695 = vmatprep.subr.bf16.mxu0 %v3575_v5  ;;  %3777 = vmatprep.subr.bf16.mxu1 %v3577_v45 }
 0xad6   :  { %3696 = vmatpush1.bf16.msra.mxu0 %v3574_v54  ;;  %3778 = vmatpush1.bf16.msra.mxu1 %v3576_v7 }
 0xad7   :  { %3697 = vmatprep.subr.bf16.mxu0 %v3579_v29  ;;  %3779 = vmatprep.subr.bf16.mxu1 %v3581_v59 }
 0xada   :  { %3698 = vmatpush1.bf16.msra.mxu0 %v3578_v33  ;;  %3780 = vmatpush1.bf16.msra.mxu1 %v3580_v2 }
 0xadb   :  { %3699 = vmatprep.subr.bf16.mxu0 %v3583_v14  ;;  %3781 = vmatprep.subr.bf16.mxu1 %v3585_v11 }
 0xade   :  { %3700 = vmatpush1.bf16.msra.mxu0 %v3582_v30  ;;  %3782 = vmatpush1.bf16.msra.mxu1 %v3584_v34 }
 0xadf   :  { %3701 = vmatprep.subr.bf16.mxu0 %v3587_v38  ;;  %3783 = vmatprep.subr.bf16.mxu1 %v3589_v43 }
 0xae2   :  { %3702 = vmatpush1.bf16.msra.mxu0 %v3586_v35  ;;  %3784 = vmatpush1.bf16.msra.mxu1 %v3588_v40 }
 0xae3   :  { %3703 = vmatprep.subr.bf16.mxu0 %v3591_v47  ;;  %3785 = vmatprep.subr.bf16.mxu1 %v3593_v6 }
 0xae6   :  { %3704 = vmatpush1.bf16.msra.mxu0 %v3590_v19  ;;  %3786 = vmatpush1.bf16.msra.mxu1 %v3592_v21 }
 0xae7   :  { %3705 = vmatprep.subr.bf16.mxu0 %v3595_v32  ;;  %3787 = vmatprep.subr.bf16.mxu1 %v3597_v36 }
 0xaea   :  { %3706 = vmatpush1.bf16.msra.mxu0 %v3594_v41  ;;  %3788 = vmatpush1.bf16.msra.mxu1 %v3596_v49 }
 0xaeb   :  { %3707 = vmatprep.subr.bf16.mxu0 %v3599_v50  ;;  %3789 = vmatprep.subr.bf16.mxu1 %v3601_v51 }
 0xaee   :  { %3708 = vmatpush1.bf16.msra.mxu0 %v3598_v62  ;;  %3790 = vmatpush1.bf16.msra.mxu1 %v3600_v3 }
 0xaef   :  { %3709 = vmatprep.subr.bf16.mxu0 %v3603_v4  ;;  %3791 = vmatprep.subr.bf16.mxu1 %v3605_v26 }
 0xaf2   :  { %3710 = vmatpush1.bf16.msra.mxu0 %v3602_v52  ;;  %3792 = vmatpush1.bf16.msra.mxu1 %v3604_v27 }
 0xaf3   :  { %3711 = vmatprep.subr.bf16.mxu0 %v3607_v42  ;;  %3793 = vmatprep.subr.bf16.mxu1 %v3609_v46 }
 0xaf6   :  { %3712 = vmatpush1.bf16.msra.mxu0 %v3606_v53  ;;  %3794 = vmatpush1.bf16.msra.mxu1 %v3608_v18 }
 0xaf7   :  { %3713 = vmatprep.subr.bf16.mxu0 %v3611_v61  ;;  %3795 = vmatprep.subr.bf16.mxu1 %v3613_v63 }
 0xafa   :  { %3714 = vmatpush1.bf16.msra.mxu0 %v3610_v0  ;;  %3796 = vmatpush1.bf16.msra.mxu1 %v3612_v10 }
 0xafb   :  { %3715 = vmatprep.subr.bf16.mxu0 %v3615_v15  ;;  %3797 = vmatprep.subr.bf16.mxu1 %v3617_v16 }
 0xafe   :  { %3716 = vmatpush1.bf16.msra.mxu0 %v3614_v28  ;;  %3798 = vmatpush1.bf16.msra.mxu1 %v3616_v58 }
 0xaff   :  { %3717 = vmatprep.subr.bf16.mxu0 %v3619_v57  ;;  %3799 = vmatprep.subr.bf16.mxu1 %v3621_v8 }
 0xb02   :  { %3718 = vmatpush1.bf16.msra.mxu0 %v3618_v22  ;;  %3800 = vmatpush1.bf16.msra.mxu1 %v3620_v44 }
 0xb03   :  { %3719 = vmatprep.subr.bf16.mxu0 %v3623_v60  ;;  %3801 = vmatprep.subr.bf16.mxu1 %v3625_v48 }
 0xb06   :  { %3720 = vmatpush1.bf16.msra.mxu0 %v3622_v17  ;;  %3802 = vmatpush1.bf16.msra.mxu1 %v3624_v12 }
 0xb09   :  { %3722 = vmatmul.mubr.bf16.vlgmr.msra.gmra.mrb[44].mxu0 %v3496_v13  ;;  %3804 = vmatmul.mubr.bf16.vlgmr.msra.gmra.mrb[44].mxu1 %v3496_v13 }
 0xbdc   :  { %v3723_v5 = vpop.f32.mrb[44].mxu0  ;;  %v3805_v45 = vpop.f32.mrb[44].mxu1 }
 0xbdd   :  { %v7410_v54 = vadd.f32 %v3723_v5, %v3631_v23  ;;  %v7412_v24 = vadd.f32 %v3805_v45, %v3639_v1  ;;  %v3725_v37 = vpop.f32.mrb[45].mxu0  ;;  %v3807_v7 = vpop.f32.mrb[45].mxu1 }
 0xbde   :  { %v5660_v29 = vadd.f32 %v3725_v37, %v3635_v56  ;;  %v7414_v59 = vadd.f32 %v3807_v7, %v3643_v55  ;;  %v3727_v33 = vpop.f32.mrb[46].mxu0  ;;  %v3809_v2 = vpop.f32.mrb[46].mxu1 }
 0xbdf   :  { %v3812_v14 = vmax.f32 %v7410_v54, 0.0  ;;  %v3814_v11 = vmax.f32 %v7412_v24, 0.0  ;;  %v3728_v30 = vpop.f32.mrb[47].mxu0  ;;  %v3810_v34 = vpop.f32.mrb[47].mxu1 }
 0xbe0   :  { %v3813_v38 = vmax.f32 %v5660_v29, 0.0  ;;  %v3815_v43 = vmax.f32 %v7414_v59, 0.0 }
 0xbe1   :  { %6325 = dma.done.wait [#allocation8 + $0x2], 16384 }
 0xbe2   :  { %6326 = vsyncadd [#allocation8 + $0x2], 4294950912  ;;  %v3819_v35 = vpack.c.bf16 %v3813_v38, %v3813_v38  ;;  %v3823_v40 = vld [vmem:[#allocation5 + $0x8] sm:$0xff]  ;;  %v3825_v47 = vld [vmem:[#allocation5 + $0x18] sm:$0xff] }
 0xbe3   :  { %v3822_v6 = vld [vmem:[#allocation5] sm:$0xff]  ;;  %3972 = vmatprep.subr.bf16.mxu0 %v3823_v40  ;;  %4054 = vmatprep.subr.bf16.mxu1 %v3825_v47  ;;  %v3824_v19 = vld [vmem:[#allocation5 + $0x10] sm:$0xff]  ;;  %v3827_v21 = vld [vmem:[#allocation5 + $0x28] sm:$0xff] }
 0xbe4   :  { %4004 = vmatprep.mubr.bf16.mxu0 %v3819_v35  ;;  %4086 = vmatprep.mubr.bf16.mxu1 %v3819_v35  ;;  %v3829_v32 = vld [vmem:[#allocation5 + $0x38] sm:$0xff]  ;;  %v3826_v36 = vld [vmem:[#allocation5 + $0x20] sm:$0xff]  ;;  %v3828_v41 = vld [vmem:[#allocation5 + $0x30] sm:$0xff] }
 0xbe5   :  { %3973 = vmatpush1.bf16.msra.mxu0 %v3822_v6  ;;  %4055 = vmatpush1.bf16.msra.mxu1 %v3824_v19  ;;  %v3831_v49 = vld [vmem:[#allocation5 + $0x48] sm:$0xff]  ;;  %v3833_v50 = vld [vmem:[#allocation5 + $0x58] sm:$0xff]  ;;  %v3830_v51 = vld [vmem:[#allocation5 + $0x40] sm:$0xff] }
 0xbe6   :  { %3974 = vmatprep.subr.bf16.mxu0 %v3827_v21  ;;  %4056 = vmatprep.subr.bf16.mxu1 %v3829_v32  ;;  %v3832_v62 = vld [vmem:[#allocation5 + $0x50] sm:$0xff]  ;;  %v3835_v3 = vld [vmem:[#allocation5 + $0x68] sm:$0xff]  ;;  %v3837_v4 = vld [vmem:[#allocation5 + $0x78] sm:$0xff] }
 0xbe7   :  { %v3834_v26 = vld [vmem:[#allocation5 + $0x60] sm:$0xff]  ;;  %v3836_v52 = vld [vmem:[#allocation5 + $0x70] sm:$0xff]  ;;  %v3839_v27 = vld [vmem:[#allocation5 + $0x88] sm:$0xff] }
 0xbe8   :  { %v3841_v42 = vld [vmem:[#allocation5 + $0x98] sm:$0xff]  ;;  %v3838_v46 = vld [vmem:[#allocation5 + $0x80] sm:$0xff]  ;;  %v3840_v53 = vld [vmem:[#allocation5 + $0x90] sm:$0xff] }
 0xbe9   :  { %3975 = vmatpush1.bf16.msra.mxu0 %v3826_v36  ;;  %4057 = vmatpush1.bf16.msra.mxu1 %v3828_v41  ;;  %v3843_v18 = vld [vmem:[#allocation5 + $0xa8] sm:$0xff]  ;;  %v3845_v61 = vld [vmem:[#allocation5 + $0xb8] sm:$0xff]  ;;  %v3842_v63 = vld [vmem:[#allocation5 + $0xa0] sm:$0xff] }
 0xbea   :  { %3976 = vmatprep.subr.bf16.mxu0 %v3831_v49  ;;  %4058 = vmatprep.subr.bf16.mxu1 %v3833_v50  ;;  %v3844_v0 = vld [vmem:[#allocation5 + $0xb0] sm:$0xff]  ;;  %v3847_v10 = vld [vmem:[#allocation5 + $0xc8] sm:$0xff]  ;;  %v3849_v15 = vld [vmem:[#allocation5 + $0xd8] sm:$0xff] }
 0xbeb   :  { %v3846_v16 = vld [vmem:[#allocation5 + $0xc0] sm:$0xff]  ;;  %v3848_v28 = vld [vmem:[#allocation5 + $0xd0] sm:$0xff]  ;;  %v3851_v58 = vld [vmem:[#allocation5 + $0xe8] sm:$0xff] }
 0xbec   :  { %v3853_v57 = vld [vmem:[#allocation5 + $0xf8] sm:$0xff]  ;;  %v3850_v8 = vld [vmem:[#allocation5 + $0xe0] sm:$0xff]  ;;  %v3852_v22 = vld [vmem:[#allocation5 + $0xf0] sm:$0xff] }
 0xbed   :  { %3977 = vmatpush1.bf16.msra.mxu0 %v3830_v51  ;;  %4059 = vmatpush1.bf16.msra.mxu1 %v3832_v62  ;;  %v3855_v44 = vld [vmem:[#allocation5 + $0x108] sm:$0xff]  ;;  %v3857_v60 = vld [vmem:[#allocation5 + $0x118] sm:$0xff]  ;;  %v3854_v48 = vld [vmem:[#allocation5 + $0x100] sm:$0xff] }
 0xbee   :  { %3978 = vmatprep.subr.bf16.mxu0 %v3835_v3  ;;  %4060 = vmatprep.subr.bf16.mxu1 %v3837_v4  ;;  %v3856_v17 = vld [vmem:[#allocation5 + $0x110] sm:$0xff]  ;;  %v3859_v12 = vld [vmem:[#allocation5 + $0x128] sm:$0xff]  ;;  %v3861_v13 = vld [vmem:[#allocation5 + $0x138] sm:$0xff]  ;;  %v3818_v3 = vpack.c.bf16 %v3812_v14, %v3812_v14 }
 0xbef   :  { %v3858_v31 = vld [vmem:[#allocation5 + $0x120] sm:$0xff]  ;;  %v3860_v23 = vld [vmem:[#allocation5 + $0x130] sm:$0xff]  ;;  %v3863_v1 = vld [vmem:[#allocation5 + $0x148] sm:$0xff] }
 0xbf0   :  { %v3865_v56 = vld [vmem:[#allocation5 + $0x158] sm:$0xff]  ;;  %v3862_v55 = vld [vmem:[#allocation5 + $0x140] sm:$0xff]  ;;  %v3864_v5 = vld [vmem:[#allocation5 + $0x150] sm:$0xff] }
 0xbf1   :  { %3979 = vmatpush1.bf16.msra.mxu0 %v3834_v26  ;;  %4061 = vmatpush1.bf16.msra.mxu1 %v3836_v52  ;;  %v3867_v45 = vld [vmem:[#allocation5 + $0x168] sm:$0xff]  ;;  %v3869_v37 = vld [vmem:[#allocation5 + $0x178] sm:$0xff]  ;;  %v3866_v7 = vld [vmem:[#allocation5 + $0x160] sm:$0xff] }
 0xbf2   :  { %3980 = vmatprep.subr.bf16.mxu0 %v3839_v27  ;;  %4062 = vmatprep.subr.bf16.mxu1 %v3841_v42  ;;  %v3868_v29 = vld [vmem:[#allocation5 + $0x170] sm:$0xff]  ;;  %v3871_v33 = vld [vmem:[#allocation5 + $0x188] sm:$0xff]  ;;  %v3873_v2 = vld [vmem:[#allocation5 + $0x198] sm:$0xff]  ;;  %v3821_v42 = vpack.c.bf16 %v3815_v43, %v3815_v43 }
 0xbf3   :  { %v3870_v30 = vld [vmem:[#allocation5 + $0x180] sm:$0xff]  ;;  %v3872_v34 = vld [vmem:[#allocation5 + $0x190] sm:$0xff]  ;;  %v3875_v38 = vld [vmem:[#allocation5 + $0x1a8] sm:$0xff] }
 0xbf4   :  { %v3877_v35 = vld [vmem:[#allocation5 + $0x1b8] sm:$0xff]  ;;  %v3874_v40 = vld [vmem:[#allocation5 + $0x1a0] sm:$0xff]  ;;  %v3876_v47 = vld [vmem:[#allocation5 + $0x1b0] sm:$0xff] }
 0xbf5   :  { %3981 = vmatpush1.bf16.msra.mxu0 %v3838_v46  ;;  %4063 = vmatpush1.bf16.msra.mxu1 %v3840_v53  ;;  %v3879_v6 = vld [vmem:[#allocation5 + $0x1c8] sm:$0xff]  ;;  %v3881_v19 = vld [vmem:[#allocation5 + $0x1d8] sm:$0xff]  ;;  %v3878_v21 = vld [vmem:[#allocation5 + $0x1c0] sm:$0xff] }
 0xbf6   :  { %3982 = vmatprep.subr.bf16.mxu0 %v3843_v18  ;;  %4064 = vmatprep.subr.bf16.mxu1 %v3845_v61  ;;  %v3880_v32 = vld [vmem:[#allocation5 + $0x1d0] sm:$0xff]  ;;  %v3883_v36 = vld [vmem:[#allocation5 + $0x1e8] sm:$0xff]  ;;  %v3885_v41 = vld [vmem:[#allocation5 + $0x1f8] sm:$0xff] }
 0xbf7   :  { %v3882_v49 = vld [vmem:[#allocation5 + $0x1e0] sm:$0xff]  ;;  %v3884_v50 = vld [vmem:[#allocation5 + $0x1f0] sm:$0xff]  ;;  %v3887_v51 = vld [vmem:[#allocation5 + $0x208] sm:$0xff] }
 0xbf8   :  { %v3889_v62 = vld [vmem:[#allocation5 + $0x218] sm:$0xff]  ;;  %v3886_v4 = vld [vmem:[#allocation5 + $0x200] sm:$0xff]  ;;  %v3888_v26 = vld [vmem:[#allocation5 + $0x210] sm:$0xff] }
 0xbf9   :  { %3983 = vmatpush1.bf16.msra.mxu0 %v3842_v63  ;;  %4065 = vmatpush1.bf16.msra.mxu1 %v3844_v0  ;;  %v3891_v52 = vld [vmem:[#allocation5 + $0x228] sm:$0xff]  ;;  %v3893_v27 = vld [vmem:[#allocation5 + $0x238] sm:$0xff]  ;;  %v3890_v54 = vld [vmem:[#allocation5 + $0x220] sm:$0xff] }
 0xbfa   :  { %3984 = vmatprep.subr.bf16.mxu0 %v3847_v10  ;;  %4066 = vmatprep.subr.bf16.mxu1 %v3849_v15  ;;  %v3892_v14 = vld [vmem:[#allocation5 + $0x230] sm:$0xff]  ;;  %v3895_v46 = vld [vmem:[#allocation5 + $0x248] sm:$0xff]  ;;  %v3897_v53 = vld [vmem:[#allocation5 + $0x258] sm:$0xff] }
 0xbfb   :  { %v3894_v18 = vld [vmem:[#allocation5 + $0x240] sm:$0xff]  ;;  %v3896_v59 = vld [vmem:[#allocation5 + $0x250] sm:$0xff]  ;;  %v3899_v61 = vld [vmem:[#allocation5 + $0x268] sm:$0xff] }
 0xbfc   :  { %v3901_v43 = vld [vmem:[#allocation5 + $0x278] sm:$0xff]  ;;  %v3898_v63 = vld [vmem:[#allocation5 + $0x260] sm:$0xff]  ;;  %v3900_v0 = vld [vmem:[#allocation5 + $0x270] sm:$0xff] }
 0xbfd   :  { %3985 = vmatpush1.bf16.msra.mxu0 %v3846_v16  ;;  %4067 = vmatpush1.bf16.msra.mxu1 %v3848_v28  ;;  %v3903_v10 = vld [vmem:[#allocation5 + $0x288] sm:$0xff]  ;;  %v3905_v15 = vld [vmem:[#allocation5 + $0x298] sm:$0xff]  ;;  %v3902_v16 = vld [vmem:[#allocation5 + $0x280] sm:$0xff] }
 0xbfe   :  { %3986 = vmatprep.subr.bf16.mxu0 %v3851_v58  ;;  %4068 = vmatprep.subr.bf16.mxu1 %v3853_v57  ;;  %v3904_v28 = vld [vmem:[#allocation5 + $0x290] sm:$0xff]  ;;  %v3907_v58 = vld [vmem:[#allocation5 + $0x2a8] sm:$0xff]  ;;  %v3909_v57 = vld [vmem:[#allocation5 + $0x2b8] sm:$0xff] }
 0xc01   :  { %3987 = vmatpush1.bf16.msra.mxu0 %v3850_v8  ;;  %4069 = vmatpush1.bf16.msra.mxu1 %v3852_v22  ;;  %v3906_v8 = vld [vmem:[#allocation5 + $0x2a0] sm:$0xff]  ;;  %v3908_v22 = vld [vmem:[#allocation5 + $0x2b0] sm:$0xff] }
 0xc02   :  { %3988 = vmatprep.subr.bf16.mxu0 %v3855_v44  ;;  %4070 = vmatprep.subr.bf16.mxu1 %v3857_v60  ;;  %v3911_v44 = vld [vmem:[#allocation5 + $0x2c8] sm:$0xff]  ;;  %v3913_v60 = vld [vmem:[#allocation5 + $0x2d8] sm:$0xff] }
 0xc05   :  { %3989 = vmatpush1.bf16.msra.mxu0 %v3854_v48  ;;  %4071 = vmatpush1.bf16.msra.mxu1 %v3856_v17  ;;  %v3910_v48 = vld [vmem:[#allocation5 + $0x2c0] sm:$0xff]  ;;  %v3912_v17 = vld [vmem:[#allocation5 + $0x2d0] sm:$0xff] }
 0xc06   :  { %3990 = vmatprep.subr.bf16.mxu0 %v3859_v12  ;;  %4072 = vmatprep.subr.bf16.mxu1 %v3861_v13  ;;  %v3915_v12 = vld [vmem:[#allocation5 + $0x2e8] sm:$0xff]  ;;  %v3917_v13 = vld [vmem:[#allocation5 + $0x2f8] sm:$0xff] }
 0xc09   :  { %3991 = vmatpush1.bf16.msra.mxu0 %v3858_v31  ;;  %4073 = vmatpush1.bf16.msra.mxu1 %v3860_v23  ;;  %v3914_v31 = vld [vmem:[#allocation5 + $0x2e0] sm:$0xff]  ;;  %v3916_v23 = vld [vmem:[#allocation5 + $0x2f0] sm:$0xff] }
 0xc0a   :  { %3992 = vmatprep.subr.bf16.mxu0 %v3863_v1  ;;  %4074 = vmatprep.subr.bf16.mxu1 %v3865_v56  ;;  %v3919_v1 = vld [vmem:[#allocation5 + $0x308] sm:$0xff]  ;;  %v3921_v56 = vld [vmem:[#allocation5 + $0x318] sm:$0xff] }
 0xc0d   :  { %3993 = vmatpush1.bf16.msra.mxu0 %v3862_v55  ;;  %4075 = vmatpush1.bf16.msra.mxu1 %v3864_v5  ;;  %v3918_v55 = vld [vmem:[#allocation5 + $0x300] sm:$0xff]  ;;  %v3920_v5 = vld [vmem:[#allocation5 + $0x310] sm:$0xff] }
 0xc0e   :  { %3994 = vmatprep.subr.bf16.mxu0 %v3867_v45  ;;  %4076 = vmatprep.subr.bf16.mxu1 %v3869_v37  ;;  %v3923_v45 = vld [vmem:[#allocation5 + $0x328] sm:$0xff]  ;;  %v3925_v37 = vld [vmem:[#allocation5 + $0x338] sm:$0xff] }
 0xc11   :  { %3995 = vmatpush1.bf16.msra.mxu0 %v3866_v7  ;;  %4077 = vmatpush1.bf16.msra.mxu1 %v3868_v29  ;;  %v3922_v7 = vld [vmem:[#allocation5 + $0x320] sm:$0xff]  ;;  %v3924_v29 = vld [vmem:[#allocation5 + $0x330] sm:$0xff] }
 0xc12   :  { %3996 = vmatprep.subr.bf16.mxu0 %v3871_v33  ;;  %4078 = vmatprep.subr.bf16.mxu1 %v3873_v2  ;;  %v3927_v33 = vld [vmem:[#allocation5 + $0x348] sm:$0xff]  ;;  %v3929_v2 = vld [vmem:[#allocation5 + $0x358] sm:$0xff] }
 0xc15   :  { %3997 = vmatpush1.bf16.msra.mxu0 %v3870_v30  ;;  %4079 = vmatpush1.bf16.msra.mxu1 %v3872_v34  ;;  %v3926_v30 = vld [vmem:[#allocation5 + $0x340] sm:$0xff]  ;;  %v3928_v34 = vld [vmem:[#allocation5 + $0x350] sm:$0xff] }
 0xc16   :  { %3998 = vmatprep.subr.bf16.mxu0 %v3875_v38  ;;  %4080 = vmatprep.subr.bf16.mxu1 %v3877_v35  ;;  %v3931_v38 = vld [vmem:[#allocation5 + $0x368] sm:$0xff]  ;;  %v3933_v35 = vld [vmem:[#allocation5 + $0x378] sm:$0xff] }
 0xc19   :  { %3999 = vmatpush1.bf16.msra.mxu0 %v3874_v40  ;;  %4081 = vmatpush1.bf16.msra.mxu1 %v3876_v47  ;;  %v3930_v40 = vld [vmem:[#allocation5 + $0x360] sm:$0xff]  ;;  %v3932_v47 = vld [vmem:[#allocation5 + $0x370] sm:$0xff] }
 0xc1a   :  { %4000 = vmatprep.subr.bf16.mxu0 %v3879_v6  ;;  %4082 = vmatprep.subr.bf16.mxu1 %v3881_v19  ;;  %v3935_v6 = vld [vmem:[#allocation5 + $0x388] sm:$0xff]  ;;  %v3937_v19 = vld [vmem:[#allocation5 + $0x398] sm:$0xff] }
 0xc1d   :  { %4001 = vmatpush1.bf16.msra.mxu0 %v3878_v21  ;;  %4083 = vmatpush1.bf16.msra.mxu1 %v3880_v32  ;;  %v3934_v21 = vld [vmem:[#allocation5 + $0x380] sm:$0xff]  ;;  %v3936_v32 = vld [vmem:[#allocation5 + $0x390] sm:$0xff] }
 0xc1e   :  { %4002 = vmatprep.subr.bf16.mxu0 %v3883_v36  ;;  %4084 = vmatprep.subr.bf16.mxu1 %v3885_v41  ;;  %v3939_v36 = vld [vmem:[#allocation5 + $0x3a8] sm:$0xff]  ;;  %v3941_v41 = vld [vmem:[#allocation5 + $0x3b8] sm:$0xff] }
 0xc21   :  { %4003 = vmatpush1.bf16.msra.mxu0 %v3882_v49  ;;  %4085 = vmatpush1.bf16.msra.mxu1 %v3884_v50  ;;  %v3938_v49 = vld [vmem:[#allocation5 + $0x3a0] sm:$0xff]  ;;  %v3940_v50 = vld [vmem:[#allocation5 + $0x3b0] sm:$0xff] }
 0xc22   :  { %4013 = vmatprep.subr.bf16.mxu0 %v3887_v51  ;;  %4095 = vmatprep.subr.bf16.mxu1 %v3889_v62  ;;  %v3943_v51 = vld [vmem:[#allocation5 + $0x3c8] sm:$0xff]  ;;  %v3945_v62 = vld [vmem:[#allocation5 + $0x3d8] sm:$0xff] }
 0xc24   :  { %4005 = vmatmul.mubr.bf16.vlgmr.msra.gmra.mrb[48].mxu0 %v3818_v3  ;;  %4087 = vmatmul.mubr.bf16.vlgmr.msra.gmra.mrb[48].mxu1 %v3818_v3  ;;  %v3942_v3 = vld [vmem:[#allocation5 + $0x3c0] sm:$0xff] }
 0xc25   :  { %4014 = vmatpush1.bf16.msra.mxu0 %v3886_v4  ;;  %4096 = vmatpush1.bf16.msra.mxu1 %v3888_v26  ;;  %v3944_v4 = vld [vmem:[#allocation5 + $0x3d0] sm:$0xff]  ;;  %v3947_v26 = vld [vmem:[#allocation5 + $0x3e8] sm:$0xff] }
 0xc26   :  { %4015 = vmatprep.subr.bf16.mxu0 %v3891_v52  ;;  %4097 = vmatprep.subr.bf16.mxu1 %v3893_v27  ;;  %v3949_v52 = vld [vmem:[#allocation5 + $0x3f8] sm:$0xff]  ;;  %v3946_v27 = vld [vmem:[#allocation5 + $0x3e0] sm:$0xff] }
 0xc27   :  { %4045 = vmatprep.mubr.bf16.mxu0 %v3821_v42  ;;  %4127 = vmatprep.mubr.bf16.mxu1 %v3821_v42  ;;  %v3948_v42 = vld [vmem:[#allocation5 + $0x3f0] sm:$0xff] }
 0xc29   :  { %4016 = vmatpush1.bf16.msra.mxu0 %v3890_v54  ;;  %4098 = vmatpush1.bf16.msra.mxu1 %v3892_v14  ;;  %v3820_v54 = vpack.c.bf16 %v3814_v11, %v3814_v11  ;;  %v3950_v14 = vld [vmem:[#allocation15] sm:$0xf] }
 0xc2a   :  { %4017 = vmatprep.subr.bf16.mxu0 %v3895_v46  ;;  %4099 = vmatprep.subr.bf16.mxu1 %v3897_v53  ;;  %v3955_v46 = vrot.slane %v3950_v14, %v7588_v39  ;;  %v3963_v53 = vrot.slane %v3950_v14, %v7589_v9 }
 0xc2d   :  { %4018 = vmatpush1.bf16.msra.mxu0 %v3894_v18  ;;  %4100 = vmatpush1.bf16.msra.mxu1 %v3896_v59  ;;  %v3959_v18 = vrot.slane %v3950_v14, %v7590_v20  ;;  %v3967_v59 = vrot.slane %v3950_v14, %v7591_v25 }
 0xc2e   :  { %4019 = vmatprep.subr.bf16.mxu0 %v3899_v61  ;;  %4101 = vmatprep.subr.bf16.mxu1 %v3901_v43 }
 0xc31   :  { %4020 = vmatpush1.bf16.msra.mxu0 %v3898_v63  ;;  %4102 = vmatpush1.bf16.msra.mxu1 %v3900_v0 }
 0xc32   :  { %4021 = vmatprep.subr.bf16.mxu0 %v3903_v10  ;;  %4103 = vmatprep.subr.bf16.mxu1 %v3905_v15 }
 0xc35   :  { %4022 = vmatpush1.bf16.msra.mxu0 %v3902_v16  ;;  %4104 = vmatpush1.bf16.msra.mxu1 %v3904_v28 }
 0xc36   :  { %4023 = vmatprep.subr.bf16.mxu0 %v3907_v58  ;;  %4105 = vmatprep.subr.bf16.mxu1 %v3909_v57 }
 0xc39   :  { %4024 = vmatpush1.bf16.msra.mxu0 %v3906_v8  ;;  %4106 = vmatpush1.bf16.msra.mxu1 %v3908_v22 }
 0xc3a   :  { %4025 = vmatprep.subr.bf16.mxu0 %v3911_v44  ;;  %4107 = vmatprep.subr.bf16.mxu1 %v3913_v60 }
 0xc3d   :  { %4026 = vmatpush1.bf16.msra.mxu0 %v3910_v48  ;;  %4108 = vmatpush1.bf16.msra.mxu1 %v3912_v17 }
 0xc3e   :  { %4027 = vmatprep.subr.bf16.mxu0 %v3915_v12  ;;  %4109 = vmatprep.subr.bf16.mxu1 %v3917_v13 }
 0xc41   :  { %4028 = vmatpush1.bf16.msra.mxu0 %v3914_v31  ;;  %4110 = vmatpush1.bf16.msra.mxu1 %v3916_v23 }
 0xc42   :  { %4029 = vmatprep.subr.bf16.mxu0 %v3919_v1  ;;  %4111 = vmatprep.subr.bf16.mxu1 %v3921_v56 }
 0xc45   :  { %4030 = vmatpush1.bf16.msra.mxu0 %v3918_v55  ;;  %4112 = vmatpush1.bf16.msra.mxu1 %v3920_v5 }
 0xc46   :  { %4031 = vmatprep.subr.bf16.mxu0 %v3923_v45  ;;  %4113 = vmatprep.subr.bf16.mxu1 %v3925_v37 }
 0xc49   :  { %4032 = vmatpush1.bf16.msra.mxu0 %v3922_v7  ;;  %4114 = vmatpush1.bf16.msra.mxu1 %v3924_v29 }
 0xc4a   :  { %4033 = vmatprep.subr.bf16.mxu0 %v3927_v33  ;;  %4115 = vmatprep.subr.bf16.mxu1 %v3929_v2 }
 0xc4d   :  { %4034 = vmatpush1.bf16.msra.mxu0 %v3926_v30  ;;  %4116 = vmatpush1.bf16.msra.mxu1 %v3928_v34 }
 0xc4e   :  { %4035 = vmatprep.subr.bf16.mxu0 %v3931_v38  ;;  %4117 = vmatprep.subr.bf16.mxu1 %v3933_v35 }
 0xc51   :  { %4036 = vmatpush1.bf16.msra.mxu0 %v3930_v40  ;;  %4118 = vmatpush1.bf16.msra.mxu1 %v3932_v47 }
 0xc52   :  { %4037 = vmatprep.subr.bf16.mxu0 %v3935_v6  ;;  %4119 = vmatprep.subr.bf16.mxu1 %v3937_v19 }
 0xc55   :  { %4038 = vmatpush1.bf16.msra.mxu0 %v3934_v21  ;;  %4120 = vmatpush1.bf16.msra.mxu1 %v3936_v32 }
 0xc56   :  { %4039 = vmatprep.subr.bf16.mxu0 %v3939_v36  ;;  %4121 = vmatprep.subr.bf16.mxu1 %v3941_v41 }
 0xc59   :  { %4040 = vmatpush1.bf16.msra.mxu0 %v3938_v49  ;;  %4122 = vmatpush1.bf16.msra.mxu1 %v3940_v50 }
 0xc5a   :  { %4041 = vmatprep.subr.bf16.mxu0 %v3943_v51  ;;  %4123 = vmatprep.subr.bf16.mxu1 %v3945_v62 }
 0xc5d   :  { %4042 = vmatpush1.bf16.msra.mxu0 %v3942_v3  ;;  %4124 = vmatpush1.bf16.msra.mxu1 %v3944_v4 }
 0xc5e   :  { %4043 = vmatprep.subr.bf16.mxu0 %v3947_v26  ;;  %4125 = vmatprep.subr.bf16.mxu1 %v3949_v52 }
 0xc61   :  { %4044 = vmatpush1.bf16.msra.mxu0 %v3946_v27  ;;  %4126 = vmatpush1.bf16.msra.mxu1 %v3948_v42 }
 0xc64   :  { %4046 = vmatmul.mubr.bf16.vlgmr.msra.gmra.mrb[48].mxu0 %v3820_v54  ;;  %4128 = vmatmul.mubr.bf16.vlgmr.msra.gmra.mrb[48].mxu1 %v3820_v54 }
 0xd37   :  { %v4047_v61 = vpop.f32.mrb[48].mxu0  ;;  %v4129_v43 = vpop.f32.mrb[48].mxu1 }
 0xd38   :  { %v7432_v63 = vadd.f32 %v4047_v61, %v3955_v46  ;;  %v7434_v24 = vadd.f32 %v4129_v43, %v3963_v53  ;;  %v4049_v11 = vpop.f32.mrb[49].mxu0  ;;  %v4131_v0 = vpop.f32.mrb[49].mxu1 }
 0xd39   :  { %v5664_v10 = vadd.f32 %v4049_v11, %v3959_v18  ;;  %v7436_v15 = vadd.f32 %v4131_v0, %v3967_v59  ;;  %v4051_v16 = vpop.f32.mrb[50].mxu0  ;;  %v4133_v28 = vpop.f32.mrb[50].mxu1 }
 0xd3a   :  { %v4136_v58 = vmax.f32 %v7432_v63, 0.0  ;;  %v4138_v57 = vmax.f32 %v7434_v24, 0.0  ;;  %v4052_v8 = vpop.f32.mrb[51].mxu0  ;;  %v4134_v22 = vpop.f32.mrb[51].mxu1 }
 0xd3b   :  { %v4137_v44 = vmax.f32 %v5664_v10, 0.0  ;;  %v4139_v60 = vmax.f32 %v7436_v15, 0.0 }
 0xd3c   :  { %6327 = dma.done.wait [#allocation8 + $0x3], 16384 }
 0xd3d   :  { %6328 = vsyncadd [#allocation8 + $0x3], 4294950912  ;;  %v4143_v48 = vpack.c.bf16 %v4137_v44, %v4137_v44  ;;  %v4147_v17 = vld [vmem:[#allocation6 + $0x8] sm:$0xff]  ;;  %v4149_v12 = vld [vmem:[#allocation6 + $0x18] sm:$0xff] }
 0xd3e   :  { %v4146_v13 = vld [vmem:[#allocation6] sm:$0xff]  ;;  %4296 = vmatprep.subr.bf16.mxu0 %v4147_v17  ;;  %4378 = vmatprep.subr.bf16.mxu1 %v4149_v12  ;;  %v4148_v31 = vld [vmem:[#allocation6 + $0x10] sm:$0xff]  ;;  %v4151_v23 = vld [vmem:[#allocation6 + $0x28] sm:$0xff] }
 0xd3f   :  { %4328 = vmatprep.mubr.bf16.mxu0 %v4143_v48  ;;  %4410 = vmatprep.mubr.bf16.mxu1 %v4143_v48  ;;  %v4153_v1 = vld [vmem:[#allocation6 + $0x38] sm:$0xff]  ;;  %v4150_v56 = vld [vmem:[#allocation6 + $0x20] sm:$0xff]  ;;  %v4152_v55 = vld [vmem:[#allocation6 + $0x30] sm:$0xff] }
 0xd40   :  { %4297 = vmatpush1.bf16.msra.mxu0 %v4146_v13  ;;  %4379 = vmatpush1.bf16.msra.mxu1 %v4148_v31  ;;  %v4155_v5 = vld [vmem:[#allocation6 + $0x48] sm:$0xff]  ;;  %v4157_v45 = vld [vmem:[#allocation6 + $0x58] sm:$0xff]  ;;  %v4154_v37 = vld [vmem:[#allocation6 + $0x40] sm:$0xff] }
 0xd41   :  { %4298 = vmatprep.subr.bf16.mxu0 %v4151_v23  ;;  %4380 = vmatprep.subr.bf16.mxu1 %v4153_v1  ;;  %v4156_v7 = vld [vmem:[#allocation6 + $0x50] sm:$0xff]  ;;  %v4159_v29 = vld [vmem:[#allocation6 + $0x68] sm:$0xff]  ;;  %v4161_v33 = vld [vmem:[#allocation6 + $0x78] sm:$0xff] }
 0xd42   :  { %v4158_v2 = vld [vmem:[#allocation6 + $0x60] sm:$0xff]  ;;  %v4160_v30 = vld [vmem:[#allocation6 + $0x70] sm:$0xff]  ;;  %v4163_v34 = vld [vmem:[#allocation6 + $0x88] sm:$0xff] }
 0xd43   :  { %v4165_v38 = vld [vmem:[#allocation6 + $0x98] sm:$0xff]  ;;  %v4162_v35 = vld [vmem:[#allocation6 + $0x80] sm:$0xff]  ;;  %v4164_v40 = vld [vmem:[#allocation6 + $0x90] sm:$0xff] }
 0xd44   :  { %4299 = vmatpush1.bf16.msra.mxu0 %v4150_v56  ;;  %4381 = vmatpush1.bf16.msra.mxu1 %v4152_v55  ;;  %v4167_v47 = vld [vmem:[#allocation6 + $0xa8] sm:$0xff]  ;;  %v4169_v6 = vld [vmem:[#allocation6 + $0xb8] sm:$0xff]  ;;  %v4166_v19 = vld [vmem:[#allocation6 + $0xa0] sm:$0xff] }
 0xd45   :  { %4300 = vmatprep.subr.bf16.mxu0 %v4155_v5  ;;  %4382 = vmatprep.subr.bf16.mxu1 %v4157_v45  ;;  %v4168_v21 = vld [vmem:[#allocation6 + $0xb0] sm:$0xff]  ;;  %v4171_v32 = vld [vmem:[#allocation6 + $0xc8] sm:$0xff]  ;;  %v4173_v36 = vld [vmem:[#allocation6 + $0xd8] sm:$0xff] }
 0xd46   :  { %v4170_v41 = vld [vmem:[#allocation6 + $0xc0] sm:$0xff]  ;;  %v4172_v49 = vld [vmem:[#allocation6 + $0xd0] sm:$0xff]  ;;  %v4175_v50 = vld [vmem:[#allocation6 + $0xe8] sm:$0xff] }
 0xd47   :  { %v4177_v51 = vld [vmem:[#allocation6 + $0xf8] sm:$0xff]  ;;  %v4174_v62 = vld [vmem:[#allocation6 + $0xe0] sm:$0xff]  ;;  %v4176_v3 = vld [vmem:[#allocation6 + $0xf0] sm:$0xff] }
 0xd48   :  { %4301 = vmatpush1.bf16.msra.mxu0 %v4154_v37  ;;  %4383 = vmatpush1.bf16.msra.mxu1 %v4156_v7  ;;  %v4179_v4 = vld [vmem:[#allocation6 + $0x108] sm:$0xff]  ;;  %v4181_v26 = vld [vmem:[#allocation6 + $0x118] sm:$0xff]  ;;  %v4178_v52 = vld [vmem:[#allocation6 + $0x100] sm:$0xff] }
 0xd49   :  { %4302 = vmatprep.subr.bf16.mxu0 %v4159_v29  ;;  %4384 = vmatprep.subr.bf16.mxu1 %v4161_v33  ;;  %v4180_v27 = vld [vmem:[#allocation6 + $0x110] sm:$0xff]  ;;  %v4183_v42 = vld [vmem:[#allocation6 + $0x128] sm:$0xff]  ;;  %v4185_v54 = vld [vmem:[#allocation6 + $0x138] sm:$0xff]  ;;  %v4142_v29 = vpack.c.bf16 %v4136_v58, %v4136_v58 }
 0xd4a   :  { %v4182_v14 = vld [vmem:[#allocation6 + $0x120] sm:$0xff]  ;;  %v4184_v46 = vld [vmem:[#allocation6 + $0x130] sm:$0xff]  ;;  %v4187_v53 = vld [vmem:[#allocation6 + $0x148] sm:$0xff] }
 0xd4b   :  { %v4189_v18 = vld [vmem:[#allocation6 + $0x158] sm:$0xff]  ;;  %v4186_v59 = vld [vmem:[#allocation6 + $0x140] sm:$0xff]  ;;  %v4188_v61 = vld [vmem:[#allocation6 + $0x150] sm:$0xff] }
 0xd4c   :  { %4303 = vmatpush1.bf16.msra.mxu0 %v4158_v2  ;;  %4385 = vmatpush1.bf16.msra.mxu1 %v4160_v30  ;;  %v4191_v43 = vld [vmem:[#allocation6 + $0x168] sm:$0xff]  ;;  %v4193_v11 = vld [vmem:[#allocation6 + $0x178] sm:$0xff]  ;;  %v4190_v0 = vld [vmem:[#allocation6 + $0x160] sm:$0xff] }
 0xd4d   :  { %4304 = vmatprep.subr.bf16.mxu0 %v4163_v34  ;;  %4386 = vmatprep.subr.bf16.mxu1 %v4165_v38  ;;  %v4192_v10 = vld [vmem:[#allocation6 + $0x170] sm:$0xff]  ;;  %v4195_v16 = vld [vmem:[#allocation6 + $0x188] sm:$0xff]  ;;  %v4197_v28 = vld [vmem:[#allocation6 + $0x198] sm:$0xff]  ;;  %v4145_v38 = vpack.c.bf16 %v4139_v60, %v4139_v60 }
 0xd4e   :  { %v4194_v8 = vld [vmem:[#allocation6 + $0x180] sm:$0xff]  ;;  %v4196_v22 = vld [vmem:[#allocation6 + $0x190] sm:$0xff]  ;;  %v4199_v44 = vld [vmem:[#allocation6 + $0x1a8] sm:$0xff] }
 0xd4f   :  { %v4201_v48 = vld [vmem:[#allocation6 + $0x1b8] sm:$0xff]  ;;  %v4198_v17 = vld [vmem:[#allocation6 + $0x1a0] sm:$0xff]  ;;  %v4200_v12 = vld [vmem:[#allocation6 + $0x1b0] sm:$0xff] }
 0xd50   :  { %4305 = vmatpush1.bf16.msra.mxu0 %v4162_v35  ;;  %4387 = vmatpush1.bf16.msra.mxu1 %v4164_v40  ;;  %v4203_v13 = vld [vmem:[#allocation6 + $0x1c8] sm:$0xff]  ;;  %v4205_v31 = vld [vmem:[#allocation6 + $0x1d8] sm:$0xff]  ;;  %v4202_v23 = vld [vmem:[#allocation6 + $0x1c0] sm:$0xff] }
 0xd51   :  { %4306 = vmatprep.subr.bf16.mxu0 %v4167_v47  ;;  %4388 = vmatprep.subr.bf16.mxu1 %v4169_v6  ;;  %v4204_v1 = vld [vmem:[#allocation6 + $0x1d0] sm:$0xff]  ;;  %v4207_v56 = vld [vmem:[#allocation6 + $0x1e8] sm:$0xff]  ;;  %v4209_v55 = vld [vmem:[#allocation6 + $0x1f8] sm:$0xff] }
 0xd52   :  { %v4206_v5 = vld [vmem:[#allocation6 + $0x1e0] sm:$0xff]  ;;  %v4208_v45 = vld [vmem:[#allocation6 + $0x1f0] sm:$0xff]  ;;  %v4211_v37 = vld [vmem:[#allocation6 + $0x208] sm:$0xff] }
 0xd53   :  { %v4213_v7 = vld [vmem:[#allocation6 + $0x218] sm:$0xff]  ;;  %v4210_v33 = vld [vmem:[#allocation6 + $0x200] sm:$0xff]  ;;  %v4212_v2 = vld [vmem:[#allocation6 + $0x210] sm:$0xff] }
 0xd54   :  { %4307 = vmatpush1.bf16.msra.mxu0 %v4166_v19  ;;  %4389 = vmatpush1.bf16.msra.mxu1 %v4168_v21  ;;  %v4215_v30 = vld [vmem:[#allocation6 + $0x228] sm:$0xff]  ;;  %v4217_v34 = vld [vmem:[#allocation6 + $0x238] sm:$0xff]  ;;  %v4214_v63 = vld [vmem:[#allocation6 + $0x220] sm:$0xff] }
 0xd55   :  { %4308 = vmatprep.subr.bf16.mxu0 %v4171_v32  ;;  %4390 = vmatprep.subr.bf16.mxu1 %v4173_v36  ;;  %v4216_v58 = vld [vmem:[#allocation6 + $0x230] sm:$0xff]  ;;  %v4219_v35 = vld [vmem:[#allocation6 + $0x248] sm:$0xff]  ;;  %v4221_v40 = vld [vmem:[#allocation6 + $0x258] sm:$0xff] }
 0xd56   :  { %v4218_v47 = vld [vmem:[#allocation6 + $0x240] sm:$0xff]  ;;  %v4220_v15 = vld [vmem:[#allocation6 + $0x250] sm:$0xff]  ;;  %v4223_v6 = vld [vmem:[#allocation6 + $0x268] sm:$0xff] }
 0xd57   :  { %v4225_v60 = vld [vmem:[#allocation6 + $0x278] sm:$0xff]  ;;  %v4222_v19 = vld [vmem:[#allocation6 + $0x260] sm:$0xff]  ;;  %v4224_v21 = vld [vmem:[#allocation6 + $0x270] sm:$0xff] }
 0xd58   :  { %4309 = vmatpush1.bf16.msra.mxu0 %v4170_v41  ;;  %4391 = vmatpush1.bf16.msra.mxu1 %v4172_v49  ;;  %v4227_v32 = vld [vmem:[#allocation6 + $0x288] sm:$0xff]  ;;  %v4229_v36 = vld [vmem:[#allocation6 + $0x298] sm:$0xff]  ;;  %v4226_v41 = vld [vmem:[#allocation6 + $0x280] sm:$0xff] }
 0xd59   :  { %4310 = vmatprep.subr.bf16.mxu0 %v4175_v50  ;;  %4392 = vmatprep.subr.bf16.mxu1 %v4177_v51  ;;  %v4228_v49 = vld [vmem:[#allocation6 + $0x290] sm:$0xff]  ;;  %v4231_v50 = vld [vmem:[#allocation6 + $0x2a8] sm:$0xff]  ;;  %v4233_v51 = vld [vmem:[#allocation6 + $0x2b8] sm:$0xff] }
 0xd5c   :  { %4311 = vmatpush1.bf16.msra.mxu0 %v4174_v62  ;;  %4393 = vmatpush1.bf16.msra.mxu1 %v4176_v3  ;;  %v4230_v62 = vld [vmem:[#allocation6 + $0x2a0] sm:$0xff]  ;;  %v4232_v3 = vld [vmem:[#allocation6 + $0x2b0] sm:$0xff] }
 0xd5d   :  { %4312 = vmatprep.subr.bf16.mxu0 %v4179_v4  ;;  %4394 = vmatprep.subr.bf16.mxu1 %v4181_v26  ;;  %v4235_v4 = vld [vmem:[#allocation6 + $0x2c8] sm:$0xff]  ;;  %v4237_v26 = vld [vmem:[#allocation6 + $0x2d8] sm:$0xff] }
 0xd60   :  { %4313 = vmatpush1.bf16.msra.mxu0 %v4178_v52  ;;  %4395 = vmatpush1.bf16.msra.mxu1 %v4180_v27  ;;  %v4234_v52 = vld [vmem:[#allocation6 + $0x2c0] sm:$0xff]  ;;  %v4236_v27 = vld [vmem:[#allocation6 + $0x2d0] sm:$0xff] }
 0xd61   :  { %4314 = vmatprep.subr.bf16.mxu0 %v4183_v42  ;;  %4396 = vmatprep.subr.bf16.mxu1 %v4185_v54  ;;  %v4239_v42 = vld [vmem:[#allocation6 + $0x2e8] sm:$0xff]  ;;  %v4241_v54 = vld [vmem:[#allocation6 + $0x2f8] sm:$0xff] }
 0xd64   :  { %4315 = vmatpush1.bf16.msra.mxu0 %v4182_v14  ;;  %4397 = vmatpush1.bf16.msra.mxu1 %v4184_v46  ;;  %v4238_v14 = vld [vmem:[#allocation6 + $0x2e0] sm:$0xff]  ;;  %v4240_v46 = vld [vmem:[#allocation6 + $0x2f0] sm:$0xff] }
 0xd65   :  { %4316 = vmatprep.subr.bf16.mxu0 %v4187_v53  ;;  %4398 = vmatprep.subr.bf16.mxu1 %v4189_v18  ;;  %v4243_v53 = vld [vmem:[#allocation6 + $0x308] sm:$0xff]  ;;  %v4245_v18 = vld [vmem:[#allocation6 + $0x318] sm:$0xff] }
 0xd68   :  { %4317 = vmatpush1.bf16.msra.mxu0 %v4186_v59  ;;  %4399 = vmatpush1.bf16.msra.mxu1 %v4188_v61  ;;  %v4242_v59 = vld [vmem:[#allocation6 + $0x300] sm:$0xff]  ;;  %v4244_v61 = vld [vmem:[#allocation6 + $0x310] sm:$0xff] }
 0xd69   :  { %4318 = vmatprep.subr.bf16.mxu0 %v4191_v43  ;;  %4400 = vmatprep.subr.bf16.mxu1 %v4193_v11  ;;  %v4247_v43 = vld [vmem:[#allocation6 + $0x328] sm:$0xff]  ;;  %v4249_v11 = vld [vmem:[#allocation6 + $0x338] sm:$0xff] }
 0xd6c   :  { %4319 = vmatpush1.bf16.msra.mxu0 %v4190_v0  ;;  %4401 = vmatpush1.bf16.msra.mxu1 %v4192_v10  ;;  %v4246_v0 = vld [vmem:[#allocation6 + $0x320] sm:$0xff]  ;;  %v4248_v10 = vld [vmem:[#allocation6 + $0x330] sm:$0xff] }
 0xd6d   :  { %4320 = vmatprep.subr.bf16.mxu0 %v4195_v16  ;;  %4402 = vmatprep.subr.bf16.mxu1 %v4197_v28  ;;  %v4251_v16 = vld [vmem:[#allocation6 + $0x348] sm:$0xff]  ;;  %v4253_v28 = vld [vmem:[#allocation6 + $0x358] sm:$0xff] }
 0xd70   :  { %4321 = vmatpush1.bf16.msra.mxu0 %v4194_v8  ;;  %4403 = vmatpush1.bf16.msra.mxu1 %v4196_v22  ;;  %v4250_v8 = vld [vmem:[#allocation6 + $0x340] sm:$0xff]  ;;  %v4252_v22 = vld [vmem:[#allocation6 + $0x350] sm:$0xff] }
 0xd71   :  { %4322 = vmatprep.subr.bf16.mxu0 %v4199_v44  ;;  %4404 = vmatprep.subr.bf16.mxu1 %v4201_v48  ;;  %v4255_v44 = vld [vmem:[#allocation6 + $0x368] sm:$0xff]  ;;  %v4257_v48 = vld [vmem:[#allocation6 + $0x378] sm:$0xff] }
 0xd74   :  { %4323 = vmatpush1.bf16.msra.mxu0 %v4198_v17  ;;  %4405 = vmatpush1.bf16.msra.mxu1 %v4200_v12  ;;  %v4254_v17 = vld [vmem:[#allocation6 + $0x360] sm:$0xff]  ;;  %v4256_v12 = vld [vmem:[#allocation6 + $0x370] sm:$0xff] }
 0xd75   :  { %4324 = vmatprep.subr.bf16.mxu0 %v4203_v13  ;;  %4406 = vmatprep.subr.bf16.mxu1 %v4205_v31  ;;  %v4259_v13 = vld [vmem:[#allocation6 + $0x388] sm:$0xff]  ;;  %v4261_v31 = vld [vmem:[#allocation6 + $0x398] sm:$0xff] }
 0xd78   :  { %4325 = vmatpush1.bf16.msra.mxu0 %v4202_v23  ;;  %4407 = vmatpush1.bf16.msra.mxu1 %v4204_v1  ;;  %v4258_v23 = vld [vmem:[#allocation6 + $0x380] sm:$0xff]  ;;  %v4260_v1 = vld [vmem:[#allocation6 + $0x390] sm:$0xff] }
 0xd79   :  { %4326 = vmatprep.subr.bf16.mxu0 %v4207_v56  ;;  %4408 = vmatprep.subr.bf16.mxu1 %v4209_v55  ;;  %v4263_v56 = vld [vmem:[#allocation6 + $0x3a8] sm:$0xff]  ;;  %v4265_v55 = vld [vmem:[#allocation6 + $0x3b8] sm:$0xff] }
 0xd7c   :  { %4327 = vmatpush1.bf16.msra.mxu0 %v4206_v5  ;;  %4409 = vmatpush1.bf16.msra.mxu1 %v4208_v45  ;;  %v4262_v5 = vld [vmem:[#allocation6 + $0x3a0] sm:$0xff]  ;;  %v4264_v45 = vld [vmem:[#allocation6 + $0x3b0] sm:$0xff] }
 0xd7d   :  { %4337 = vmatprep.subr.bf16.mxu0 %v4211_v37  ;;  %4419 = vmatprep.subr.bf16.mxu1 %v4213_v7  ;;  %v4267_v37 = vld [vmem:[#allocation6 + $0x3c8] sm:$0xff]  ;;  %v4269_v7 = vld [vmem:[#allocation6 + $0x3d8] sm:$0xff] }
 0xd7f   :  { %4329 = vmatmul.mubr.bf16.vlgmr.msra.gmra.mrb[52].mxu0 %v4142_v29  ;;  %4411 = vmatmul.mubr.bf16.vlgmr.msra.gmra.mrb[52].mxu1 %v4142_v29  ;;  %v4266_v29 = vld [vmem:[#allocation6 + $0x3c0] sm:$0xff] }
 0xd80   :  { %4338 = vmatpush1.bf16.msra.mxu0 %v4210_v33  ;;  %4420 = vmatpush1.bf16.msra.mxu1 %v4212_v2  ;;  %v4268_v33 = vld [vmem:[#allocation6 + $0x3d0] sm:$0xff]  ;;  %v4271_v2 = vld [vmem:[#allocation6 + $0x3e8] sm:$0xff] }
 0xd81   :  { %4339 = vmatprep.subr.bf16.mxu0 %v4215_v30  ;;  %4421 = vmatprep.subr.bf16.mxu1 %v4217_v34  ;;  %v4273_v30 = vld [vmem:[#allocation6 + $0x3f8] sm:$0xff]  ;;  %v4270_v34 = vld [vmem:[#allocation6 + $0x3e0] sm:$0xff] }
 0xd82   :  { %4369 = vmatprep.mubr.bf16.mxu0 %v4145_v38  ;;  %4451 = vmatprep.mubr.bf16.mxu1 %v4145_v38  ;;  %v4272_v38 = vld [vmem:[#allocation6 + $0x3f0] sm:$0xff] }
 0xd84   :  { %4340 = vmatpush1.bf16.msra.mxu0 %v4214_v63  ;;  %4422 = vmatpush1.bf16.msra.mxu1 %v4216_v58  ;;  %v4144_v63 = vpack.c.bf16 %v4138_v57, %v4138_v57  ;;  %v4274_v58 = vld [vmem:[%s7504_s14] sm:$0xf] }
 0xd85   :  { %4341 = vmatprep.subr.bf16.mxu0 %v4219_v35  ;;  %4423 = vmatprep.subr.bf16.mxu1 %v4221_v40  ;;  %v4279_v35 = vrot.slane %v4274_v58, %v7588_v39  ;;  %v4287_v40 = vrot.slane %v4274_v58, %v7589_v9 }
 0xd88   :  { %4342 = vmatpush1.bf16.msra.mxu0 %v4218_v47  ;;  %4424 = vmatpush1.bf16.msra.mxu1 %v4220_v15  ;;  %v4283_v47 = vrot.slane %v4274_v58, %v7590_v20  ;;  %v4291_v15 = vrot.slane %v4274_v58, %v7591_v25 }
 0xd89   :  { %4343 = vmatprep.subr.bf16.mxu0 %v4223_v6  ;;  %4425 = vmatprep.subr.bf16.mxu1 %v4225_v60 }
 0xd8c   :  { %4344 = vmatpush1.bf16.msra.mxu0 %v4222_v19  ;;  %4426 = vmatpush1.bf16.msra.mxu1 %v4224_v21 }
 0xd8d   :  { %4345 = vmatprep.subr.bf16.mxu0 %v4227_v32  ;;  %4427 = vmatprep.subr.bf16.mxu1 %v4229_v36 }
 0xd90   :  { %4346 = vmatpush1.bf16.msra.mxu0 %v4226_v41  ;;  %4428 = vmatpush1.bf16.msra.mxu1 %v4228_v49 }
 0xd91   :  { %4347 = vmatprep.subr.bf16.mxu0 %v4231_v50  ;;  %4429 = vmatprep.subr.bf16.mxu1 %v4233_v51 }
 0xd94   :  { %4348 = vmatpush1.bf16.msra.mxu0 %v4230_v62  ;;  %4430 = vmatpush1.bf16.msra.mxu1 %v4232_v3 }
 0xd95   :  { %4349 = vmatprep.subr.bf16.mxu0 %v4235_v4  ;;  %4431 = vmatprep.subr.bf16.mxu1 %v4237_v26 }
 0xd98   :  { %4350 = vmatpush1.bf16.msra.mxu0 %v4234_v52  ;;  %4432 = vmatpush1.bf16.msra.mxu1 %v4236_v27 }
 0xd99   :  { %4351 = vmatprep.subr.bf16.mxu0 %v4239_v42  ;;  %4433 = vmatprep.subr.bf16.mxu1 %v4241_v54 }
 0xd9c   :  { %4352 = vmatpush1.bf16.msra.mxu0 %v4238_v14  ;;  %4434 = vmatpush1.bf16.msra.mxu1 %v4240_v46 }
 0xd9d   :  { %4353 = vmatprep.subr.bf16.mxu0 %v4243_v53  ;;  %4435 = vmatprep.subr.bf16.mxu1 %v4245_v18 }
 0xda0   :  { %4354 = vmatpush1.bf16.msra.mxu0 %v4242_v59  ;;  %4436 = vmatpush1.bf16.msra.mxu1 %v4244_v61 }
 0xda1   :  { %4355 = vmatprep.subr.bf16.mxu0 %v4247_v43  ;;  %4437 = vmatprep.subr.bf16.mxu1 %v4249_v11 }
 0xda4   :  { %4356 = vmatpush1.bf16.msra.mxu0 %v4246_v0  ;;  %4438 = vmatpush1.bf16.msra.mxu1 %v4248_v10 }
 0xda5   :  { %4357 = vmatprep.subr.bf16.mxu0 %v4251_v16  ;;  %4439 = vmatprep.subr.bf16.mxu1 %v4253_v28 }
 0xda8   :  { %4358 = vmatpush1.bf16.msra.mxu0 %v4250_v8  ;;  %4440 = vmatpush1.bf16.msra.mxu1 %v4252_v22 }
 0xda9   :  { %4359 = vmatprep.subr.bf16.mxu0 %v4255_v44  ;;  %4441 = vmatprep.subr.bf16.mxu1 %v4257_v48 }
 0xdac   :  { %4360 = vmatpush1.bf16.msra.mxu0 %v4254_v17  ;;  %4442 = vmatpush1.bf16.msra.mxu1 %v4256_v12 }
 0xdad   :  { %4361 = vmatprep.subr.bf16.mxu0 %v4259_v13  ;;  %4443 = vmatprep.subr.bf16.mxu1 %v4261_v31 }
 0xdb0   :  { %4362 = vmatpush1.bf16.msra.mxu0 %v4258_v23  ;;  %4444 = vmatpush1.bf16.msra.mxu1 %v4260_v1 }
 0xdb1   :  { %4363 = vmatprep.subr.bf16.mxu0 %v4263_v56  ;;  %4445 = vmatprep.subr.bf16.mxu1 %v4265_v55 }
 0xdb4   :  { %4364 = vmatpush1.bf16.msra.mxu0 %v4262_v5  ;;  %4446 = vmatpush1.bf16.msra.mxu1 %v4264_v45 }
 0xdb5   :  { %4365 = vmatprep.subr.bf16.mxu0 %v4267_v37  ;;  %4447 = vmatprep.subr.bf16.mxu1 %v4269_v7 }
 0xdb8   :  { %4366 = vmatpush1.bf16.msra.mxu0 %v4266_v29  ;;  %4448 = vmatpush1.bf16.msra.mxu1 %v4268_v33 }
 0xdb9   :  { %4367 = vmatprep.subr.bf16.mxu0 %v4271_v2  ;;  %4449 = vmatprep.subr.bf16.mxu1 %v4273_v30 }
 0xdbc   :  { %4368 = vmatpush1.bf16.msra.mxu0 %v4270_v34  ;;  %4450 = vmatpush1.bf16.msra.mxu1 %v4272_v38 }
 0xdbf   :  { %4370 = vmatmul.mubr.bf16.vlgmr.msra.gmra.mrb[52].mxu0 %v4144_v63  ;;  %4452 = vmatmul.mubr.bf16.vlgmr.msra.gmra.mrb[52].mxu1 %v4144_v63 }
 0xe92   :  { %v4371_v6 = vpop.f32.mrb[52].mxu0  ;;  %v4453_v24 = vpop.f32.mrb[52].mxu1 }
 0xe93   :  { %v7457_v60 = vadd.f32 %v4371_v6, %v4279_v35  ;;  %v7459_v57 = vadd.f32 %v4453_v24, %v4287_v40  ;;  %v4373_v19 = vpop.f32.mrb[53].mxu0  ;;  %v4455_v21 = vpop.f32.mrb[53].mxu1 }
 0xe94   :  { %v5668_v32 = vadd.f32 %v4373_v19, %v4283_v47  ;;  %v7461_v36 = vadd.f32 %v4455_v21, %v4291_v15  ;;  %v4375_v41 = vpop.f32.mrb[54].mxu0  ;;  %v4457_v49 = vpop.f32.mrb[54].mxu1 }
 0xe95   :  { %v4460_v50 = vmax.f32 %v7457_v60, 0.0  ;;  %v4462_v51 = vmax.f32 %v7459_v57, 0.0  ;;  %v4376_v62 = vpop.f32.mrb[55].mxu0  ;;  %v4458_v3 = vpop.f32.mrb[55].mxu1 }
 0xe96   :  { %v4461_v4 = vmax.f32 %v5668_v32, 0.0  ;;  %v4463_v26 = vmax.f32 %v7461_v36, 0.0 }
 0xe97   :  { %6329 = dma.done.wait [#allocation8 + $0x4], 16384 }
 0xe98   :  { %6330 = vsyncadd [#allocation8 + $0x4], 4294950912  ;;  %v4467_v52 = vpack.c.bf16 %v4461_v4, %v4461_v4  ;;  %v4471_v27 = vld [vmem:[#allocation7 + $0x8] sm:$0xff]  ;;  %v4473_v42 = vld [vmem:[#allocation7 + $0x18] sm:$0xff]  ;;  %vm4844_vm4 = vcmask 7168  }
 0xe99   :  { %v4470_v54 = vld [vmem:[#allocation7] sm:$0xff]  ;;  %4620 = vmatprep.subr.bf16.mxu0 %v4471_v27  ;;  %4702 = vmatprep.subr.bf16.mxu1 %v4473_v42  ;;  %v4472_v14 = vld [vmem:[#allocation7 + $0x10] sm:$0xff]  ;;  %v4475_v46 = vld [vmem:[#allocation7 + $0x28] sm:$0xff] }
 0xe9a   :  { %4652 = vmatprep.mubr.bf16.mxu0 %v4467_v52  ;;  %4734 = vmatprep.mubr.bf16.mxu1 %v4467_v52  ;;  %v4477_v53 = vld [vmem:[#allocation7 + $0x38] sm:$0xff]  ;;  %v4474_v18 = vld [vmem:[#allocation7 + $0x20] sm:$0xff]  ;;  %v4476_v59 = vld [vmem:[#allocation7 + $0x30] sm:$0xff] }
 0xe9b   :  { %4621 = vmatpush1.bf16.msra.mxu0 %v4470_v54  ;;  %4703 = vmatpush1.bf16.msra.mxu1 %v4472_v14  ;;  %v4479_v61 = vld [vmem:[#allocation7 + $0x48] sm:$0xff]  ;;  %v4481_v43 = vld [vmem:[#allocation7 + $0x58] sm:$0xff]  ;;  %v4478_v11 = vld [vmem:[#allocation7 + $0x40] sm:$0xff] }
 0xe9c   :  { %4622 = vmatprep.subr.bf16.mxu0 %v4475_v46  ;;  %4704 = vmatprep.subr.bf16.mxu1 %v4477_v53  ;;  %v4480_v0 = vld [vmem:[#allocation7 + $0x50] sm:$0xff]  ;;  %v4483_v10 = vld [vmem:[#allocation7 + $0x68] sm:$0xff]  ;;  %v4485_v16 = vld [vmem:[#allocation7 + $0x78] sm:$0xff] }
 0xe9d   :  { %v4482_v28 = vld [vmem:[#allocation7 + $0x60] sm:$0xff]  ;;  %v4484_v8 = vld [vmem:[#allocation7 + $0x70] sm:$0xff]  ;;  %v4487_v22 = vld [vmem:[#allocation7 + $0x88] sm:$0xff] }
 0xe9e   :  { %v4489_v44 = vld [vmem:[#allocation7 + $0x98] sm:$0xff]  ;;  %v4486_v48 = vld [vmem:[#allocation7 + $0x80] sm:$0xff]  ;;  %v4488_v17 = vld [vmem:[#allocation7 + $0x90] sm:$0xff] }
 0xe9f   :  { %4623 = vmatpush1.bf16.msra.mxu0 %v4474_v18  ;;  %4705 = vmatpush1.bf16.msra.mxu1 %v4476_v59  ;;  %v4491_v12 = vld [vmem:[#allocation7 + $0xa8] sm:$0xff]  ;;  %v4493_v13 = vld [vmem:[#allocation7 + $0xb8] sm:$0xff]  ;;  %v4490_v31 = vld [vmem:[#allocation7 + $0xa0] sm:$0xff] }
 0xea0   :  { %4624 = vmatprep.subr.bf16.mxu0 %v4479_v61  ;;  %4706 = vmatprep.subr.bf16.mxu1 %v4481_v43  ;;  %v4492_v23 = vld [vmem:[#allocation7 + $0xb0] sm:$0xff]  ;;  %v4495_v1 = vld [vmem:[#allocation7 + $0xc8] sm:$0xff]  ;;  %v4497_v56 = vld [vmem:[#allocation7 + $0xd8] sm:$0xff] }
 0xea1   :  { %v4494_v55 = vld [vmem:[#allocation7 + $0xc0] sm:$0xff]  ;;  %v4496_v5 = vld [vmem:[#allocation7 + $0xd0] sm:$0xff]  ;;  %v4499_v45 = vld [vmem:[#allocation7 + $0xe8] sm:$0xff] }
 0xea2   :  { %v4501_v37 = vld [vmem:[#allocation7 + $0xf8] sm:$0xff]  ;;  %v4498_v7 = vld [vmem:[#allocation7 + $0xe0] sm:$0xff]  ;;  %v4500_v29 = vld [vmem:[#allocation7 + $0xf0] sm:$0xff] }
 0xea3   :  { %4625 = vmatpush1.bf16.msra.mxu0 %v4478_v11  ;;  %4707 = vmatpush1.bf16.msra.mxu1 %v4480_v0  ;;  %v4503_v33 = vld [vmem:[#allocation7 + $0x108] sm:$0xff]  ;;  %v4505_v2 = vld [vmem:[#allocation7 + $0x118] sm:$0xff]  ;;  %v4502_v30 = vld [vmem:[#allocation7 + $0x100] sm:$0xff] }
 0xea4   :  { %4626 = vmatprep.subr.bf16.mxu0 %v4483_v10  ;;  %4708 = vmatprep.subr.bf16.mxu1 %v4485_v16  ;;  %v4504_v34 = vld [vmem:[#allocation7 + $0x110] sm:$0xff]  ;;  %v4507_v38 = vld [vmem:[#allocation7 + $0x128] sm:$0xff]  ;;  %v4509_v63 = vld [vmem:[#allocation7 + $0x138] sm:$0xff]  ;;  %v4466_v10 = vpack.c.bf16 %v4460_v50, %v4460_v50 }
 0xea5   :  { %v4506_v58 = vld [vmem:[#allocation7 + $0x120] sm:$0xff]  ;;  %v4508_v35 = vld [vmem:[#allocation7 + $0x130] sm:$0xff]  ;;  %v4511_v40 = vld [vmem:[#allocation7 + $0x148] sm:$0xff] }
 0xea6   :  { %v4513_v47 = vld [vmem:[#allocation7 + $0x158] sm:$0xff]  ;;  %v4510_v15 = vld [vmem:[#allocation7 + $0x140] sm:$0xff]  ;;  %v4512_v6 = vld [vmem:[#allocation7 + $0x150] sm:$0xff] }
 0xea7   :  { %4627 = vmatpush1.bf16.msra.mxu0 %v4482_v28  ;;  %4709 = vmatpush1.bf16.msra.mxu1 %v4484_v8  ;;  %v4515_v24 = vld [vmem:[#allocation7 + $0x168] sm:$0xff]  ;;  %v4517_v19 = vld [vmem:[#allocation7 + $0x178] sm:$0xff]  ;;  %v4514_v21 = vld [vmem:[#allocation7 + $0x160] sm:$0xff] }
 0xea8   :  { %4628 = vmatprep.subr.bf16.mxu0 %v4487_v22  ;;  %4710 = vmatprep.subr.bf16.mxu1 %v4489_v44  ;;  %v4516_v32 = vld [vmem:[#allocation7 + $0x170] sm:$0xff]  ;;  %v4519_v41 = vld [vmem:[#allocation7 + $0x188] sm:$0xff]  ;;  %v4521_v49 = vld [vmem:[#allocation7 + $0x198] sm:$0xff]  ;;  %v4469_v44 = vpack.c.bf16 %v4463_v26, %v4463_v26 }
 0xea9   :  { %v4518_v62 = vld [vmem:[#allocation7 + $0x180] sm:$0xff]  ;;  %v4520_v3 = vld [vmem:[#allocation7 + $0x190] sm:$0xff]  ;;  %v4523_v4 = vld [vmem:[#allocation7 + $0x1a8] sm:$0xff] }
 0xeaa   :  { %v4525_v52 = vld [vmem:[#allocation7 + $0x1b8] sm:$0xff]  ;;  %v4522_v27 = vld [vmem:[#allocation7 + $0x1a0] sm:$0xff]  ;;  %v4524_v42 = vld [vmem:[#allocation7 + $0x1b0] sm:$0xff] }
 0xeab   :  { %4629 = vmatpush1.bf16.msra.mxu0 %v4486_v48  ;;  %4711 = vmatpush1.bf16.msra.mxu1 %v4488_v17  ;;  %v4527_v54 = vld [vmem:[#allocation7 + $0x1c8] sm:$0xff]  ;;  %v4529_v14 = vld [vmem:[#allocation7 + $0x1d8] sm:$0xff]  ;;  %v4526_v46 = vld [vmem:[#allocation7 + $0x1c0] sm:$0xff] }
 0xeac   :  { %4630 = vmatprep.subr.bf16.mxu0 %v4491_v12  ;;  %4712 = vmatprep.subr.bf16.mxu1 %v4493_v13  ;;  %v4528_v53 = vld [vmem:[#allocation7 + $0x1d0] sm:$0xff]  ;;  %v4531_v18 = vld [vmem:[#allocation7 + $0x1e8] sm:$0xff]  ;;  %v4533_v59 = vld [vmem:[#allocation7 + $0x1f8] sm:$0xff] }
 0xead   :  { %v4530_v61 = vld [vmem:[#allocation7 + $0x1e0] sm:$0xff]  ;;  %v4532_v43 = vld [vmem:[#allocation7 + $0x1f0] sm:$0xff]  ;;  %v4535_v11 = vld [vmem:[#allocation7 + $0x208] sm:$0xff] }
 0xeae   :  { %v4537_v0 = vld [vmem:[#allocation7 + $0x218] sm:$0xff]  ;;  %v4534_v16 = vld [vmem:[#allocation7 + $0x200] sm:$0xff]  ;;  %v4536_v28 = vld [vmem:[#allocation7 + $0x210] sm:$0xff] }
 0xeaf   :  { %4631 = vmatpush1.bf16.msra.mxu0 %v4490_v31  ;;  %4713 = vmatpush1.bf16.msra.mxu1 %v4492_v23  ;;  %v4539_v8 = vld [vmem:[#allocation7 + $0x228] sm:$0xff]  ;;  %v4541_v22 = vld [vmem:[#allocation7 + $0x238] sm:$0xff]  ;;  %v4538_v60 = vld [vmem:[#allocation7 + $0x220] sm:$0xff] }
 0xeb0   :  { %4632 = vmatprep.subr.bf16.mxu0 %v4495_v1  ;;  %4714 = vmatprep.subr.bf16.mxu1 %v4497_v56  ;;  %v4540_v50 = vld [vmem:[#allocation7 + $0x230] sm:$0xff]  ;;  %v4543_v48 = vld [vmem:[#allocation7 + $0x248] sm:$0xff]  ;;  %v4545_v17 = vld [vmem:[#allocation7 + $0x258] sm:$0xff] }
 0xeb1   :  { %v4542_v12 = vld [vmem:[#allocation7 + $0x240] sm:$0xff]  ;;  %v4544_v36 = vld [vmem:[#allocation7 + $0x250] sm:$0xff]  ;;  %v4547_v13 = vld [vmem:[#allocation7 + $0x268] sm:$0xff] }
 0xeb2   :  { %v4549_v26 = vld [vmem:[#allocation7 + $0x278] sm:$0xff]  ;;  %v4546_v31 = vld [vmem:[#allocation7 + $0x260] sm:$0xff]  ;;  %v4548_v23 = vld [vmem:[#allocation7 + $0x270] sm:$0xff] }
 0xeb3   :  { %4633 = vmatpush1.bf16.msra.mxu0 %v4494_v55  ;;  %4715 = vmatpush1.bf16.msra.mxu1 %v4496_v5  ;;  %v4551_v1 = vld [vmem:[#allocation7 + $0x288] sm:$0xff]  ;;  %v4553_v56 = vld [vmem:[#allocation7 + $0x298] sm:$0xff]  ;;  %v4550_v55 = vld [vmem:[#allocation7 + $0x280] sm:$0xff] }
 0xeb4   :  { %4634 = vmatprep.subr.bf16.mxu0 %v4499_v45  ;;  %4716 = vmatprep.subr.bf16.mxu1 %v4501_v37  ;;  %v4552_v5 = vld [vmem:[#allocation7 + $0x290] sm:$0xff]  ;;  %v4555_v45 = vld [vmem:[#allocation7 + $0x2a8] sm:$0xff]  ;;  %v4557_v37 = vld [vmem:[#allocation7 + $0x2b8] sm:$0xff] }
 0xeb7   :  { %4635 = vmatpush1.bf16.msra.mxu0 %v4498_v7  ;;  %4717 = vmatpush1.bf16.msra.mxu1 %v4500_v29  ;;  %v4554_v7 = vld [vmem:[#allocation7 + $0x2a0] sm:$0xff]  ;;  %v4556_v29 = vld [vmem:[#allocation7 + $0x2b0] sm:$0xff] }
 0xeb8   :  { %4636 = vmatprep.subr.bf16.mxu0 %v4503_v33  ;;  %4718 = vmatprep.subr.bf16.mxu1 %v4505_v2  ;;  %v4559_v33 = vld [vmem:[#allocation7 + $0x2c8] sm:$0xff]  ;;  %v4561_v2 = vld [vmem:[#allocation7 + $0x2d8] sm:$0xff] }
 0xebb   :  { %4637 = vmatpush1.bf16.msra.mxu0 %v4502_v30  ;;  %4719 = vmatpush1.bf16.msra.mxu1 %v4504_v34  ;;  %v4558_v30 = vld [vmem:[#allocation7 + $0x2c0] sm:$0xff]  ;;  %v4560_v34 = vld [vmem:[#allocation7 + $0x2d0] sm:$0xff] }
 0xebc   :  { %4638 = vmatprep.subr.bf16.mxu0 %v4507_v38  ;;  %4720 = vmatprep.subr.bf16.mxu1 %v4509_v63  ;;  %v4563_v38 = vld [vmem:[#allocation7 + $0x2e8] sm:$0xff]  ;;  %v4565_v63 = vld [vmem:[#allocation7 + $0x2f8] sm:$0xff] }
 0xebf   :  { %4639 = vmatpush1.bf16.msra.mxu0 %v4506_v58  ;;  %4721 = vmatpush1.bf16.msra.mxu1 %v4508_v35  ;;  %v4562_v58 = vld [vmem:[#allocation7 + $0x2e0] sm:$0xff]  ;;  %v4564_v35 = vld [vmem:[#allocation7 + $0x2f0] sm:$0xff] }
 0xec0   :  { %4640 = vmatprep.subr.bf16.mxu0 %v4511_v40  ;;  %4722 = vmatprep.subr.bf16.mxu1 %v4513_v47  ;;  %v4567_v40 = vld [vmem:[#allocation7 + $0x308] sm:$0xff]  ;;  %v4569_v47 = vld [vmem:[#allocation7 + $0x318] sm:$0xff] }
 0xec3   :  { %4641 = vmatpush1.bf16.msra.mxu0 %v4510_v15  ;;  %4723 = vmatpush1.bf16.msra.mxu1 %v4512_v6  ;;  %v4566_v15 = vld [vmem:[#allocation7 + $0x300] sm:$0xff]  ;;  %v4568_v6 = vld [vmem:[#allocation7 + $0x310] sm:$0xff] }
 0xec4   :  { %4642 = vmatprep.subr.bf16.mxu0 %v4515_v24  ;;  %4724 = vmatprep.subr.bf16.mxu1 %v4517_v19  ;;  %v4571_v24 = vld [vmem:[#allocation7 + $0x328] sm:$0xff]  ;;  %v4573_v19 = vld [vmem:[#allocation7 + $0x338] sm:$0xff] }
 0xec7   :  { %4643 = vmatpush1.bf16.msra.mxu0 %v4514_v21  ;;  %4725 = vmatpush1.bf16.msra.mxu1 %v4516_v32  ;;  %v4570_v21 = vld [vmem:[#allocation7 + $0x320] sm:$0xff]  ;;  %v4572_v32 = vld [vmem:[#allocation7 + $0x330] sm:$0xff] }
 0xec8   :  { %4644 = vmatprep.subr.bf16.mxu0 %v4519_v41  ;;  %4726 = vmatprep.subr.bf16.mxu1 %v4521_v49  ;;  %v4575_v41 = vld [vmem:[#allocation7 + $0x348] sm:$0xff]  ;;  %v4577_v49 = vld [vmem:[#allocation7 + $0x358] sm:$0xff] }
 0xecb   :  { %4645 = vmatpush1.bf16.msra.mxu0 %v4518_v62  ;;  %4727 = vmatpush1.bf16.msra.mxu1 %v4520_v3  ;;  %v4574_v62 = vld [vmem:[#allocation7 + $0x340] sm:$0xff]  ;;  %v4576_v3 = vld [vmem:[#allocation7 + $0x350] sm:$0xff] }
 0xecc   :  { %4646 = vmatprep.subr.bf16.mxu0 %v4523_v4  ;;  %4728 = vmatprep.subr.bf16.mxu1 %v4525_v52  ;;  %v4579_v4 = vld [vmem:[#allocation7 + $0x368] sm:$0xff]  ;;  %v4581_v52 = vld [vmem:[#allocation7 + $0x378] sm:$0xff] }
 0xecf   :  { %4647 = vmatpush1.bf16.msra.mxu0 %v4522_v27  ;;  %4729 = vmatpush1.bf16.msra.mxu1 %v4524_v42  ;;  %v4578_v27 = vld [vmem:[#allocation7 + $0x360] sm:$0xff]  ;;  %v4580_v42 = vld [vmem:[#allocation7 + $0x370] sm:$0xff] }
 0xed0   :  { %4648 = vmatprep.subr.bf16.mxu0 %v4527_v54  ;;  %4730 = vmatprep.subr.bf16.mxu1 %v4529_v14  ;;  %v4583_v54 = vld [vmem:[#allocation7 + $0x388] sm:$0xff]  ;;  %v4585_v14 = vld [vmem:[#allocation7 + $0x398] sm:$0xff] }
 0xed3   :  { %4649 = vmatpush1.bf16.msra.mxu0 %v4526_v46  ;;  %4731 = vmatpush1.bf16.msra.mxu1 %v4528_v53  ;;  %v4582_v46 = vld [vmem:[#allocation7 + $0x380] sm:$0xff]  ;;  %v4584_v53 = vld [vmem:[#allocation7 + $0x390] sm:$0xff] }
 0xed4   :  { %4650 = vmatprep.subr.bf16.mxu0 %v4531_v18  ;;  %4732 = vmatprep.subr.bf16.mxu1 %v4533_v59  ;;  %v4587_v18 = vld [vmem:[#allocation7 + $0x3a8] sm:$0xff]  ;;  %v4589_v59 = vld [vmem:[#allocation7 + $0x3b8] sm:$0xff] }
 0xed7   :  { %4651 = vmatpush1.bf16.msra.mxu0 %v4530_v61  ;;  %4733 = vmatpush1.bf16.msra.mxu1 %v4532_v43  ;;  %v4586_v61 = vld [vmem:[#allocation7 + $0x3a0] sm:$0xff]  ;;  %v4588_v43 = vld [vmem:[#allocation7 + $0x3b0] sm:$0xff] }
 0xed8   :  { %4661 = vmatprep.subr.bf16.mxu0 %v4535_v11  ;;  %4743 = vmatprep.subr.bf16.mxu1 %v4537_v0  ;;  %v4591_v11 = vld [vmem:[#allocation7 + $0x3c8] sm:$0xff]  ;;  %v4593_v0 = vld [vmem:[#allocation7 + $0x3d8] sm:$0xff] }
 0xeda   :  { %4653 = vmatmul.mubr.bf16.vlgmr.msra.gmra.mrb[56].mxu0 %v4466_v10  ;;  %4735 = vmatmul.mubr.bf16.vlgmr.msra.gmra.mrb[56].mxu1 %v4466_v10  ;;  %v4590_v10 = vld [vmem:[#allocation7 + $0x3c0] sm:$0xff] }
 0xedb   :  { %4662 = vmatpush1.bf16.msra.mxu0 %v4534_v16  ;;  %4744 = vmatpush1.bf16.msra.mxu1 %v4536_v28  ;;  %v4592_v16 = vld [vmem:[#allocation7 + $0x3d0] sm:$0xff]  ;;  %v4595_v28 = vld [vmem:[#allocation7 + $0x3e8] sm:$0xff] }
 0xedc   :  { %4663 = vmatprep.subr.bf16.mxu0 %v4539_v8  ;;  %4745 = vmatprep.subr.bf16.mxu1 %v4541_v22  ;;  %v4597_v8 = vld [vmem:[#allocation7 + $0x3f8] sm:$0xff]  ;;  %v4594_v22 = vld [vmem:[#allocation7 + $0x3e0] sm:$0xff] }
 0xedd   :  { %4693 = vmatprep.mubr.bf16.mxu0 %v4469_v44  ;;  %4775 = vmatprep.mubr.bf16.mxu1 %v4469_v44  ;;  %v4596_v44 = vld [vmem:[#allocation7 + $0x3f0] sm:$0xff] }
 0xedf   :  { %4664 = vmatpush1.bf16.msra.mxu0 %v4538_v60  ;;  %4746 = vmatpush1.bf16.msra.mxu1 %v4540_v50  ;;  %v4468_v60 = vpack.c.bf16 %v4462_v51, %v4462_v51  ;;  %v4788_v50 = vld [vmem:[#allocation18] sm:$0xf] }
 0xee0   :  { %4665 = vmatprep.subr.bf16.mxu0 %v4543_v48  ;;  %4747 = vmatprep.subr.bf16.mxu1 %v4545_v17  ;;  %v4789_v48 = vunpack.c.l.bf16 %v4788_v50  ;;  %v4598_v17 = vld [vmem:[#allocation17] sm:$0xf] }
 0xee1   :  { %v4615_v51 = vrot.slane %v4598_v17, %v7591_v25 }
 0xee2   :  { %v4798_v57 = vrot.slane %v4789_v48, %v7589_v9 }
 0xee3   :  { %4666 = vmatpush1.bf16.msra.mxu0 %v4542_v12  ;;  %4748 = vmatpush1.bf16.msra.mxu1 %v4544_v36  ;;  %v7592_v12 = vld [vmem:[#allocation45_spill] sm:$0xff] }
 0xee4   :  { %4667 = vmatprep.subr.bf16.mxu0 %v4547_v13  ;;  %4749 = vmatprep.subr.bf16.mxu1 %v4549_v26  ;;  %v4801_v36 = vsub.s32 4, %v7592_v12  ;;  %v4603_v13 = vrot.slane %v4598_v17, %v7588_v39  ;;  %v4794_v26 = vrot.slane %v4789_v48, %v7588_v39 }
 0xee7   :  { %4668 = vmatpush1.bf16.msra.mxu0 %v4546_v31  ;;  %4750 = vmatpush1.bf16.msra.mxu1 %v4548_v23  ;;  %v4611_v31 = vrot.slane %v4598_v17, %v7589_v9  ;;  %v4607_v23 = vrot.slane %v4598_v17, %v7590_v20 }
 0xee8   :  { %4669 = vmatprep.subr.bf16.mxu0 %v4551_v1  ;;  %4751 = vmatprep.subr.bf16.mxu1 %v4553_v56  ;;  %v4805_v1 = vsub.s32 6, %v7592_v12 }
 0xeea   :  { %v4806_v9 = vrot.slane %v4789_v48, %v4805_v1 }
 0xeeb   :  { %4670 = vmatpush1.bf16.msra.mxu0 %v4550_v55  ;;  %4752 = vmatpush1.bf16.msra.mxu1 %v4552_v5  ;;  %v4802_v5 = vrot.slane %v4789_v48, %v4801_v36 }
 0xeec   :  { %4671 = vmatprep.subr.bf16.mxu0 %v4555_v45  ;;  %4753 = vmatprep.subr.bf16.mxu1 %v4557_v37  ;;  %v4814_v37 = vrot.slane %v4794_v26, %v7588_v39 }
 0xeef   :  { %4672 = vmatpush1.bf16.msra.mxu0 %v4554_v7  ;;  %4754 = vmatpush1.bf16.msra.mxu1 %v4556_v29 }
 0xef0   :  { %4673 = vmatprep.subr.bf16.mxu0 %v4559_v33  ;;  %4755 = vmatprep.subr.bf16.mxu1 %v4561_v2 }
 0xef3   :  { %4674 = vmatpush1.bf16.msra.mxu0 %v4558_v30  ;;  %4756 = vmatpush1.bf16.msra.mxu1 %v4560_v34  ;;  %v4818_v30 = vrot.slane %v4798_v57, %v7588_v39 }
 0xef4   :  { %4675 = vmatprep.subr.bf16.mxu0 %v4563_v38  ;;  %4757 = vmatprep.subr.bf16.mxu1 %v4565_v63 }
 0xef7   :  { %4676 = vmatpush1.bf16.msra.mxu0 %v4562_v58  ;;  %4758 = vmatpush1.bf16.msra.mxu1 %v4564_v35 }
 0xef8   :  { %4677 = vmatprep.subr.bf16.mxu0 %v4567_v40  ;;  %4759 = vmatprep.subr.bf16.mxu1 %v4569_v47  ;;  %v4822_v40 = vrot.slane %v4802_v5, %v7588_v39 }
 0xefb   :  { %4678 = vmatpush1.bf16.msra.mxu0 %v4566_v15  ;;  %4760 = vmatpush1.bf16.msra.mxu1 %v4568_v6 }
 0xefc   :  { %4679 = vmatprep.subr.bf16.mxu0 %v4571_v24  ;;  %4761 = vmatprep.subr.bf16.mxu1 %v4573_v19  ;;  %v4826_v19 = vrot.slane %v4806_v9, %v7588_v39 }
 0xeff   :  { %4680 = vmatpush1.bf16.msra.mxu0 %v4570_v21  ;;  %4762 = vmatpush1.bf16.msra.mxu1 %v4572_v32 }
 0xf00   :  { %4681 = vmatprep.subr.bf16.mxu0 %v4575_v41  ;;  %4763 = vmatprep.subr.bf16.mxu1 %v4577_v49 }
 0xf03   :  { %4682 = vmatpush1.bf16.msra.mxu0 %v4574_v62  ;;  %4764 = vmatpush1.bf16.msra.mxu1 %v4576_v3  ;;  %v5141_v3 = vld [vmem:[#allocation9] ss:$0 sm:$0xff] }
 0xf04   :  { %4683 = vmatprep.subr.bf16.mxu0 %v4579_v4  ;;  %4765 = vmatprep.subr.bf16.mxu1 %v4581_v52 }
 0xf07   :  { %4684 = vmatpush1.bf16.msra.mxu0 %v4578_v27  ;;  %4766 = vmatpush1.bf16.msra.mxu1 %v4580_v42 }
 0xf08   :  { %4685 = vmatprep.subr.bf16.mxu0 %v4583_v54  ;;  %4767 = vmatprep.subr.bf16.mxu1 %v4585_v14 }
 0xf0b   :  { %4686 = vmatpush1.bf16.msra.mxu0 %v4582_v46  ;;  %4768 = vmatpush1.bf16.msra.mxu1 %v4584_v53 }
 0xf0c   :  { %4687 = vmatprep.subr.bf16.mxu0 %v4587_v18  ;;  %4769 = vmatprep.subr.bf16.mxu1 %v4589_v59 }
 0xf0f   :  { %4688 = vmatpush1.bf16.msra.mxu0 %v4586_v61  ;;  %4770 = vmatpush1.bf16.msra.mxu1 %v4588_v43 }
 0xf10   :  { %4689 = vmatprep.subr.bf16.mxu0 %v4591_v11  ;;  %4771 = vmatprep.subr.bf16.mxu1 %v4593_v0 }
 0xf13   :  { %4690 = vmatpush1.bf16.msra.mxu0 %v4590_v10  ;;  %4772 = vmatpush1.bf16.msra.mxu1 %v4592_v16 }
 0xf14   :  { %4691 = vmatprep.subr.bf16.mxu0 %v4595_v28  ;;  %4773 = vmatprep.subr.bf16.mxu1 %v4597_v8 }
 0xf17   :  { %4692 = vmatpush1.bf16.msra.mxu0 %v4594_v22  ;;  %4774 = vmatpush1.bf16.msra.mxu1 %v4596_v44 }
 0xf1a   :  { %4694 = vmatmul.mubr.bf16.vlgmr.msra.gmra.mrb[56].mxu0 %v4468_v60  ;;  %4776 = vmatmul.mubr.bf16.vlgmr.msra.gmra.mrb[56].mxu1 %v4468_v60 }
 0xfed   :  { %v4695_v56 = vpop.f32.mrb[56].mxu0  ;;  %v4777_v55 = vpop.f32.mrb[56].mxu1 }
 0xfee   :  { %v5671_v45 = vadd.f32 %v4695_v56, %v4603_v13  ;;  %v5673_v7 = vadd.f32 %v4777_v55, %v4611_v31  ;;  %v4697_v29 = vpop.f32.mrb[57].mxu0  ;;  %v4779_v33 = vpop.f32.mrb[57].mxu1 }
 0xfef   :  { %v5672_v2 = vadd.f32 %v4697_v29, %v4607_v23  ;;  %v5674_v34 = vadd.f32 %v4779_v33, %v4615_v51  ;;  %v4699_v20 = vpop.f32.mrb[58].mxu0  ;;  %v4781_v38 = vpop.f32.mrb[58].mxu1 }
 0xff0   :  { %v4784_v63 = vmax.f32 %v5671_v45, 0.0  ;;  %v4700_v25 = vpop.f32.mrb[59].mxu0  ;;  %v4782_v58 = vpop.f32.mrb[59].mxu1  ;;  %v4786_v35 = vmax.f32 %v5673_v7, 0.0 }
 0xff1   :  { %v4785_v47 = vmax.f32 %v5672_v2, 0.0  ;;  %v4787_v24 = vmax.f32 %v5674_v34, 0.0 }
 0xff2   :  { %v4827_v15 = vmul.f32 %v4814_v37, %v4784_v63  ;;  %v4829_v21 = vmul.f32 %v4822_v40, %v4786_v35 }
 0xff3   :  { %v4828_v6 = vmul.f32 %v4818_v30, %v4785_v47  ;;  %v4830_v41 = vmul.f32 %v4826_v19, %v4787_v24 }
 0xff5   :  { %v4831_v32 = vadd.f32 %v4828_v6, %v4827_v15 }
 0xff7   :  { %v4832_v49 = vadd.f32 %v4831_v32, %v4829_v21 }
 0xff9   :  { %v4833_v62 = vadd.f32 %v4832_v49, %v4830_v41 }
 0xffb   :  { %4834 = vadd.xlane.f32.xlu0 %v4833_v62 }
0x1088   :  { %v4835_v4 = vpop.xlane.xlu0 %4834 }
0x1089   :  { %v4843_v52 = vadd.f32 %v5141_v3, %v4835_v4 }
0x108b   :  { %4845 = vst.msk [vmem:[%s7508_s18] sm:$0xff] %vm4844_vm4, %v4843_v52 }
0x108c   :  { %4850 = vsyncpa [#allocation11], 1 }
0x108d   :  { %4851 = vsyncpa [#allocation13], 1 }
0x108e   :  { %4852 = vsyncpa [#allocation16], 1 }
0x108f   :  { %4853 = vsyncpa [#allocation19], 1 }
0x1090   :  { %4854 = vsyncmov [#allocation8] }
0x1093   :  { %s4855_s28 = vpop.sfrf %4854 }
0x1094   :  { %p5142_p0 = scmp.ne.s32.totalorder %s4855_s28, 0 }
0x1096   :  { %4859 = shalt.err (%p5142_p0)  }
0x1097   :  { %4861 = vsyncmov [#allocation8 + $0x1] }
0x109a   :  { %s4862_s23 = vpop.sfrf %4861 }
0x109b   :  { %p5143_p1 = scmp.ne.s32.totalorder %s4862_s23, 0 }
0x109d   :  { %4866 = shalt.err (%p5143_p1)  }
0x109e   :  { %4868 = vsyncmov [#allocation8 + $0x2] }
0x10a1   :  { %s4869_s21 = vpop.sfrf %4868 }
0x10a2   :  { %p5144_p2 = scmp.ne.s32.totalorder %s4869_s21, 0 }
0x10a4   :  { %4873 = shalt.err (%p5144_p2)  }
0x10a5   :  { %4875 = vsyncmov [#allocation8 + $0x3] }
0x10a8   :  { %s4876_s22 = vpop.sfrf %4875 }
0x10a9   :  { %p5145_p3 = scmp.ne.s32.totalorder %s4876_s22, 0 }
0x10ab   :  { %4880 = shalt.err (%p5145_p3)  }
0x10ac   :  { %4882 = vsyncmov [#allocation8 + $0x4] }
0x10af   :  { %s4883_s18 = vpop.sfrf %4882 }
0x10b0   :  { %p5146_p4 = scmp.ne.s32.totalorder %s4883_s18, 0 }
0x10b2   :  { %4887 = shalt.err (%p5146_p4)  }

</bundles_post_ra>
